<compile_context>
chip_gen: v5e
topology: v5e:2x2
jax: 0.10.0
libtpu: 0.0.40
codegen_flags: <defaults>
</compile_context>

<pallas_src>
import functools

import numpy as np
import jax
import jax.numpy as jnp
from jax.experimental import pallas as pl
from jax.experimental.pallas import tpu as pltpu

LANE = 128


def _round_up(x, m):
    return (x + m - 1) // m * m


# -----------------------------------------------------------------------------
# Fused kernel: in-VMEM im2col (shifted slices) + conv-as-matmul + ReLU +
# masked GAP (XLU reduce) + fused linear heads + BatchNorm1d, single program.
# -----------------------------------------------------------------------------
def _rrcnet_kernel(x_ref, wk_ref, pmask_ref, wh_ref, bh_ref, gamma_ref,
                   beta_ref, feat_ref, heads_ref, bn_ref, *, H, W):
    B, F = feat_ref.shape
    Wp = W + 2
    RO = H * Wp                       # over-computed conv raster rows / batch

    ones_col = jnp.ones((RO, 1), jnp.bfloat16)   # folds the conv bias row
    pmask = pmask_ref[...]                        # (RO, 1) f32: 1/HW or 0

    # --- 3x3 SAME conv as one MXU matmul per batch, fused with GAP ----------
    feat_rows = []
    for b in range(B):                # tiny B: static unroll
        x_b = x_ref[b]                # (R_alloc, C) bf16, whole padded image
        taps = [x_b[di * Wp + dj: di * Wp + dj + RO, :]
                for di in range(3) for dj in range(3)]
        patch = jnp.concatenate(taps + [ones_col], axis=-1)   # (RO, 9C+1) bf16
        y = jnp.dot(patch, wk_ref[...],
                    preferred_element_type=jnp.float32)        # (RO, F) f32
        y = jnp.maximum(y, 0.0)
        # Global average pool: pmask zeroes the 2 garbage columns of the
        # padded-width raster and carries the 1/HW scale; reduce on the XLU.
        feat_rows.append(jnp.sum(y * pmask, axis=0, keepdims=True))   # (1, F)

    feat = jnp.concatenate(feat_rows, axis=0)      # (B, F) f32
    feat_ref[...] = feat

    # --- fused classifier + aux-classifier heads (bf16 MXU, f32 accum) ------
    heads_ref[...] = (jnp.dot(feat.astype(jnp.bfloat16), wh_ref[...],
                              preferred_element_type=jnp.float32)
                      + bh_ref[...])               # (B, 128)

    # --- BatchNorm1d, training mode: biased batch variance, eps = 1e-5 ------
    mu = jnp.mean(feat, axis=0, keepdims=True)
    var = jnp.mean((feat - mu) ** 2, axis=0, keepdims=True)
    bn_ref[...] = ((feat - mu) * jax.lax.rsqrt(var + 1e-5)
                   * gamma_ref[...] + beta_ref[...])


def _rrcnet_pallas(x_flat, wk, pmask, w_heads, b_heads, gamma, beta,
                   *, H, W, B, F, HP):
    kernel = functools.partial(_rrcnet_kernel, H=H, W=W)
    vmem = pl.BlockSpec(memory_space=pltpu.MemorySpace.VMEM)
    Kc = wk.shape[0]
    RO = H * (W + 2)
    flops = 2 * B * RO * Kc * F + 2 * B * F * HP
    bytes_accessed = (x_flat.size * 2 + wk.size * 2 + w_heads.size * 2
                      + (pmask.size + b_heads.size + gamma.size + beta.size) * 4
                      + (2 * B * F + B * HP) * 4)
    return pl.pallas_call(
        kernel,
        out_shape=(
            jax.ShapeDtypeStruct((B, F), jnp.float32),    # feat
            jax.ShapeDtypeStruct((B, HP), jnp.float32),   # fused cls|aux logits
            jax.ShapeDtypeStruct((B, F), jnp.float32),    # feat_bn
        ),
        in_specs=[vmem] * 7,
        out_specs=(vmem, vmem, vmem),
        compiler_params=pltpu.CompilerParams(
            # Safe on every generation (v7x has only 64 MiB physical VMEM).
            vmem_limit_bytes=32 * 1024 * 1024),
        cost_estimate=pl.CostEstimate(flops=flops, transcendentals=B * F,
                                      bytes_accessed=bytes_accessed),
    )(x_flat, wk, pmask, w_heads, b_heads, gamma, beta)


# -----------------------------------------------------------------------------
# Wrapper: layout plumbing only (transpose, pad=1 spatial pad, flatten, dtype
# casts) -- no 9x im2col amplification and no O(B^2*HW) pooling matrix.
# -----------------------------------------------------------------------------
def rrcnet_forward(x_nchw, params, num_classes):
    # x_nchw: (B, C, H, W) -- PyTorch layout; transpose to NHWC.
    x_nhwc = jnp.transpose(x_nchw, (0, 2, 3, 1))
    B, H, W, C = x_nhwc.shape
    Hp, Wp = H + 2, W + 2
    F = params["w_conv"].shape[1]
    RO = H * Wp                                  # over-computed raster rows
    max_off = 2 * Wp + 2                         # largest tap offset
    R_alloc = _round_up(RO + max_off, 8)         # slack so taps never read OOB

    # Spatial zero-pad for SAME 3x3 conv, flatten the padded grid, bf16 cast.
    x_pad = jnp.pad(x_nhwc, ((0, 0), (1, 1), (1, 1), (0, 0)))
    x_flat = x_pad.reshape(B, Hp * Wp, C)
    x_flat = jnp.pad(x_flat, ((0, 0), (0, R_alloc - Hp * Wp), (0, 0)))
    x_flat = x_flat.astype(jnp.bfloat16)

    # Conv weight (tap-major rows) with the bias folded in as a trailing row
    # (matches the ones-column appended to the in-kernel patch).
    wk = jnp.concatenate([params["w_conv"], params["b_conv"]],
                         axis=0).astype(jnp.bfloat16)           # (9*C+1, F)

    # Pooling mask over the over-computed raster: 1/HW on valid columns,
    # 0 on the 2 garbage columns per padded-width row.
    valid = (np.arange(RO) % Wp) < W
    pmask = jnp.asarray(valid[:, None].astype(np.float32) / (H * W))

    # Fuse cls + aux heads and lane-pad their output width to 128.
    HP = _round_up(2 * num_classes, LANE)
    w_heads = jnp.concatenate([params["w_cls"], params["w_aux"]], axis=1)
    w_heads = jnp.pad(w_heads,
                      ((0, 0), (0, HP - 2 * num_classes))).astype(jnp.bfloat16)
    b_heads = jnp.concatenate([params["b_cls"], params["b_aux"]], axis=1)
    b_heads = jnp.pad(b_heads, ((0, 0), (0, HP - 2 * num_classes)))

    feat, heads, feat_bn = _rrcnet_pallas(
        x_flat, wk, pmask, w_heads, b_heads,
        params["bn_gamma"], params["bn_beta"],
        H=H, W=W, B=B, F=F, HP=HP)

    logits = heads[:, :num_classes]
    logits_aux = heads[:, num_classes:2 * num_classes]
    return {"logits": logits, "feat": feat,
            "logits_aux": logits_aux, "feat_bn": feat_bn}


# -----------------------------------------------------------------------------
# Pure-JAX reference for verification (mixed precision: bf16 matmul operands,
# f32 accumulation -- same precision policy as the kernel's MXU path).
# -----------------------------------------------------------------------------
def im2col(x_nhwc, k=3, pad=1):
    B, H, W, C = x_nhwc.shape
    xp = jnp.pad(x_nhwc, ((0, 0), (pad, pad), (pad, pad), (0, 0)))
    cols = []
    for di in range(k):
        for dj in range(k):
            cols.append(xp[:, di:di + H, dj:dj + W, :])
    patches = jnp.concatenate(cols, axis=-1)        # (B, H, W, k*k*C)
    return patches.reshape(B, H * W, k * k * C)


def rrcnet_reference(x_nchw, params):
    x_nhwc = jnp.transpose(x_nchw, (0, 2, 3, 1))
    patches = im2col(x_nhwc).astype(jnp.bfloat16)
    w_conv = params["w_conv"].astype(jnp.bfloat16)
    b_conv = params["b_conv"].astype(jnp.bfloat16).astype(jnp.float32)
    y = jnp.einsum("bpk,kf->bpf", patches, w_conv,
                   preferred_element_type=jnp.float32) + b_conv
    y = jnp.maximum(y, 0.0)
    feat = jnp.mean(y, axis=1)                       # (B, F) f32
    f_bf = feat.astype(jnp.bfloat16)
    logits = jnp.dot(f_bf, params["w_cls"].astype(jnp.bfloat16),
                     preferred_element_type=jnp.float32) + params["b_cls"]
    logits_aux = jnp.dot(f_bf, params["w_aux"].astype(jnp.bfloat16),
                         preferred_element_type=jnp.float32) + params["b_aux"]
    mu = jnp.mean(feat, axis=0, keepdims=True)
    var = jnp.mean((feat - mu) ** 2, axis=0, keepdims=True)
    feat_bn = (feat - mu) / jnp.sqrt(var + 1e-5) * params["bn_gamma"] \
        + params["bn_beta"]
    return {"logits": logits, "feat": feat,
            "logits_aux": logits_aux, "feat_bn": feat_bn}


if __name__ == "__main__":
    B, C, H, W = 2, 4, 16, 16
    num_features = 128
    num_classes = 10
    K = C * 3 * 3

    key = jax.random.PRNGKey(0)
    kx, kwc, kbc, kcls, kbcls, kaux, kbaux = jax.random.split(key, 7)

    x = jax.random.normal(kx, (B, C, H, W), dtype=jnp.float32)

    params = {
        # backbone: conv weight (K, F) == torch (F, C, 3, 3) re-laid out, bias
        "w_conv": jax.random.normal(kwc, (K, num_features), jnp.float32) * 0.1,
        "b_conv": jax.random.normal(kbc, (1, num_features), jnp.float32) * 0.1,
        # backbone classifier head
        "w_cls": jax.random.normal(kcls, (num_features, num_classes),
                                   jnp.float32) * 0.1,
        "b_cls": jax.random.normal(kbcls, (1, num_classes), jnp.float32) * 0.1,
        # RRC aux_classifier (nn.Linear(num_features, num_classes))
        "w_aux": jax.random.normal(kaux, (num_features, num_classes),
                                   jnp.float32) * 0.1,
        "b_aux": jax.random.normal(kbaux, (1, num_classes), jnp.float32) * 0.1,
        # RRC BatchNorm1d affine params (PyTorch defaults: ones / zeros)
        "bn_gamma": jnp.ones((1, num_features), jnp.float32),
        "bn_beta": jnp.zeros((1, num_features), jnp.float32),
    }

    fwd = jax.jit(rrcnet_forward, static_argnums=2)
    out = fwd(x, params, num_classes)
    jax.block_until_ready(out)

    ref = rrcnet_reference(x, params)
    for name in ("logits", "feat", "logits_aux", "feat_bn"):
        np.testing.assert_allclose(np.asarray(out[name]),
                                   np.asarray(ref[name]),
                                   rtol=2e-3, atol=2e-3)

    print("KERNEL_OK")
</pallas_src>

<mosaic_0001>
module attributes {stable_mosaic.version = 11 : i64} {
  func.func @_rrcnet_kernel(%arg0: memref<2x328x4xbf16, #tpu.memory_space<vmem>>, %arg1: memref<37x128xbf16, #tpu.memory_space<vmem>>, %arg2: memref<288x1xf32, #tpu.memory_space<vmem>>, %arg3: memref<128x128xbf16, #tpu.memory_space<vmem>>, %arg4: memref<1x128xf32, #tpu.memory_space<vmem>>, %arg5: memref<1x128xf32, #tpu.memory_space<vmem>>, %arg6: memref<1x128xf32, #tpu.memory_space<vmem>>, %arg7: memref<2x128xf32, #tpu.memory_space<vmem>>, %arg8: memref<2x128xf32, #tpu.memory_space<vmem>>, %arg9: memref<2x128xf32, #tpu.memory_space<vmem>>) attributes {dimension_semantics = [], scalar_prefetch = 0 : i64, scratch_operands = 0 : i64, tpu.core_type = #tpu.core_type<tc>} {
    %cst = arith.constant 1.000000e+00 : bf16
    %0 = vector.broadcast %cst : bf16 to vector<288x1xbf16>
    %c0 = arith.constant 0 : index
    %c0_0 = arith.constant 0 : index
    %1 = vector.load %arg2[%c0, %c0_0] : memref<288x1xf32, #tpu.memory_space<vmem>>, vector<288x1xf32>
    %c0_1 = arith.constant 0 : index
    %c0_2 = arith.constant 0 : index
    %c0_3 = arith.constant 0 : index
    %2 = vector.load %arg0[%c0_1, %c0_2, %c0_3] : memref<2x328x4xbf16, #tpu.memory_space<vmem>>, vector<1x328x4xbf16>
    %3 = vector.shape_cast %2 : vector<1x328x4xbf16> to vector<328x4xbf16>
    %4 = vector.extract_strided_slice %3 {offsets = [0, 0], sizes = [288, 4], strides = [1, 1]} : vector<328x4xbf16> to vector<288x4xbf16>
    %5 = vector.extract_strided_slice %3 {offsets = [1, 0], sizes = [288, 4], strides = [1, 1]} : vector<328x4xbf16> to vector<288x4xbf16>
    %6 = vector.extract_strided_slice %3 {offsets = [2, 0], sizes = [288, 4], strides = [1, 1]} : vector<328x4xbf16> to vector<288x4xbf16>
    %7 = vector.extract_strided_slice %3 {offsets = [18, 0], sizes = [288, 4], strides = [1, 1]} : vector<328x4xbf16> to vector<288x4xbf16>
    %8 = vector.extract_strided_slice %3 {offsets = [19, 0], sizes = [288, 4], strides = [1, 1]} : vector<328x4xbf16> to vector<288x4xbf16>
    %9 = vector.extract_strided_slice %3 {offsets = [20, 0], sizes = [288, 4], strides = [1, 1]} : vector<328x4xbf16> to vector<288x4xbf16>
    %10 = vector.extract_strided_slice %3 {offsets = [36, 0], sizes = [288, 4], strides = [1, 1]} : vector<328x4xbf16> to vector<288x4xbf16>
    %11 = vector.extract_strided_slice %3 {offsets = [37, 0], sizes = [288, 4], strides = [1, 1]} : vector<328x4xbf16> to vector<288x4xbf16>
    %12 = vector.extract_strided_slice %3 {offsets = [38, 0], sizes = [288, 4], strides = [1, 1]} : vector<328x4xbf16> to vector<288x4xbf16>
    %13 = tpu.concatenate %4, %5, %6, %7, %8, %9, %10, %11, %12, %0 in 1 : vector<288x4xbf16>, vector<288x4xbf16>, vector<288x4xbf16>, vector<288x4xbf16>, vector<288x4xbf16>, vector<288x4xbf16>, vector<288x4xbf16>, vector<288x4xbf16>, vector<288x4xbf16>, vector<288x1xbf16> -> vector<288x37xbf16>
    %c0_4 = arith.constant 0 : index
    %c0_5 = arith.constant 0 : index
    %14 = vector.load %arg1[%c0_4, %c0_5] : memref<37x128xbf16, #tpu.memory_space<vmem>>, vector<37x128xbf16>
    %cst_6 = arith.constant dense<0.000000e+00> : vector<288x128xf32>
    %15 = tpu.matmul %13, %14, %cst_6 {dimension_numbers = #tpu.dot_dimension_numbers<[1], [0], [0], [1], [0, 0, 1, 1], [], []>} : vector<288x37xbf16>, vector<37x128xbf16>, vector<288x128xf32> -> vector<288x128xf32>
    %cst_7 = arith.constant 0.000000e+00 : f32
    %16 = vector.broadcast %cst_7 : f32 to vector<288x128xf32>
    %17 = arith.maximumf %15, %16 : vector<288x128xf32>
    %18 = vector.broadcast %1 : vector<288x1xf32> to vector<288x128xf32>
    %19 = arith.mulf %17, %18 : vector<288x128xf32>
    %cst_8 = arith.constant dense<0.000000e+00> : vector<128xf32>
    %20 = vector.multi_reduction <add>, %19, %cst_8 [0] : vector<288x128xf32> to vector<128xf32>
    %21 = vector.shape_cast %20 : vector<128xf32> to vector<1x128xf32>
    %c1 = arith.constant 1 : index
    %c0_9 = arith.constant 0 : index
    %c0_10 = arith.constant 0 : index
    %22 = vector.load %arg0[%c1, %c0_9, %c0_10] : memref<2x328x4xbf16, #tpu.memory_space<vmem>>, vector<1x328x4xbf16>
    %23 = vector.shape_cast %22 : vector<1x328x4xbf16> to vector<328x4xbf16>
    %24 = vector.extract_strided_slice %23 {offsets = [0, 0], sizes = [288, 4], strides = [1, 1]} : vector<328x4xbf16> to vector<288x4xbf16>
    %25 = vector.extract_strided_slice %23 {offsets = [1, 0], sizes = [288, 4], strides = [1, 1]} : vector<328x4xbf16> to vector<288x4xbf16>
    %26 = vector.extract_strided_slice %23 {offsets = [2, 0], sizes = [288, 4], strides = [1, 1]} : vector<328x4xbf16> to vector<288x4xbf16>
    %27 = vector.extract_strided_slice %23 {offsets = [18, 0], sizes = [288, 4], strides = [1, 1]} : vector<328x4xbf16> to vector<288x4xbf16>
    %28 = vector.extract_strided_slice %23 {offsets = [19, 0], sizes = [288, 4], strides = [1, 1]} : vector<328x4xbf16> to vector<288x4xbf16>
    %29 = vector.extract_strided_slice %23 {offsets = [20, 0], sizes = [288, 4], strides = [1, 1]} : vector<328x4xbf16> to vector<288x4xbf16>
    %30 = vector.extract_strided_slice %23 {offsets = [36, 0], sizes = [288, 4], strides = [1, 1]} : vector<328x4xbf16> to vector<288x4xbf16>
    %31 = vector.extract_strided_slice %23 {offsets = [37, 0], sizes = [288, 4], strides = [1, 1]} : vector<328x4xbf16> to vector<288x4xbf16>
    %32 = vector.extract_strided_slice %23 {offsets = [38, 0], sizes = [288, 4], strides = [1, 1]} : vector<328x4xbf16> to vector<288x4xbf16>
    %33 = tpu.concatenate %24, %25, %26, %27, %28, %29, %30, %31, %32, %0 in 1 : vector<288x4xbf16>, vector<288x4xbf16>, vector<288x4xbf16>, vector<288x4xbf16>, vector<288x4xbf16>, vector<288x4xbf16>, vector<288x4xbf16>, vector<288x4xbf16>, vector<288x4xbf16>, vector<288x1xbf16> -> vector<288x37xbf16>
    %c0_11 = arith.constant 0 : index
    %c0_12 = arith.constant 0 : index
    %34 = vector.load %arg1[%c0_11, %c0_12] : memref<37x128xbf16, #tpu.memory_space<vmem>>, vector<37x128xbf16>
    %cst_13 = arith.constant dense<0.000000e+00> : vector<288x128xf32>
    %35 = tpu.matmul %33, %34, %cst_13 {dimension_numbers = #tpu.dot_dimension_numbers<[1], [0], [0], [1], [0, 0, 1, 1], [], []>} : vector<288x37xbf16>, vector<37x128xbf16>, vector<288x128xf32> -> vector<288x128xf32>
    %cst_14 = arith.constant 0.000000e+00 : f32
    %36 = vector.broadcast %cst_14 : f32 to vector<288x128xf32>
    %37 = arith.maximumf %35, %36 : vector<288x128xf32>
    %38 = vector.broadcast %1 : vector<288x1xf32> to vector<288x128xf32>
    %39 = arith.mulf %37, %38 : vector<288x128xf32>
    %cst_15 = arith.constant dense<0.000000e+00> : vector<128xf32>
    %40 = vector.multi_reduction <add>, %39, %cst_15 [0] : vector<288x128xf32> to vector<128xf32>
    %41 = vector.shape_cast %40 : vector<128xf32> to vector<1x128xf32>
    %42 = tpu.concatenate %21, %41 in 0 : vector<1x128xf32>, vector<1x128xf32> -> vector<2x128xf32>
    %c0_16 = arith.constant 0 : index
    %c0_17 = arith.constant 0 : index
    %43 = vector.load %arg7[%c0_16, %c0_17] : memref<2x128xf32, #tpu.memory_space<vmem>>, vector<2x128xf32>
    tpu.vector_store %arg7[%c0_16, %c0_17], %42 {strides = array<i32>} : memref<2x128xf32, #tpu.memory_space<vmem>>, vector<2x128xf32>,
    %44 = arith.truncf %42 : vector<2x128xf32> to vector<2x128xbf16>
    %c0_18 = arith.constant 0 : index
    %c0_19 = arith.constant 0 : index
    %45 = vector.load %arg3[%c0_18, %c0_19] : memref<128x128xbf16, #tpu.memory_space<vmem>>, vector<128x128xbf16>
    %cst_20 = arith.constant dense<0.000000e+00> : vector<2x128xf32>
    %46 = tpu.matmul %44, %45, %cst_20 {dimension_numbers = #tpu.dot_dimension_numbers<[1], [0], [0], [1], [0, 0, 1, 1], [], []>} : vector<2x128xbf16>, vector<128x128xbf16>, vector<2x128xf32> -> vector<2x128xf32>
    %c0_21 = arith.constant 0 : index
    %c0_22 = arith.constant 0 : index
    %47 = vector.load %arg4[%c0_21, %c0_22] : memref<1x128xf32, #tpu.memory_space<vmem>>, vector<1x128xf32>
    %48 = vector.broadcast %47 : vector<1x128xf32> to vector<2x128xf32>
    %49 = arith.addf %46, %48 : vector<2x128xf32>
    %c0_23 = arith.constant 0 : index
    %c0_24 = arith.constant 0 : index
    %50 = vector.load %arg8[%c0_23, %c0_24] : memref<2x128xf32, #tpu.memory_space<vmem>>, vector<2x128xf32>
    tpu.vector_store %arg8[%c0_23, %c0_24], %49 {strides = array<i32>} : memref<2x128xf32, #tpu.memory_space<vmem>>, vector<2x128xf32>,
    %cst_25 = arith.constant dense<0.000000e+00> : vector<128xf32>
    %51 = vector.multi_reduction <add>, %42, %cst_25 [0] : vector<2x128xf32> to vector<128xf32>
    %52 = vector.shape_cast %51 : vector<128xf32> to vector<1x128xf32>
    %cst_26 = arith.constant 2.000000e+00 : f32
    %53 = vector.broadcast %cst_26 : f32 to vector<1x128xf32>
    %54 = arith.divf %52, %53 : vector<1x128xf32>
    %55 = vector.broadcast %54 : vector<1x128xf32> to vector<2x128xf32>
    %56 = arith.subf %42, %55 : vector<2x128xf32>
    %57 = arith.mulf %56, %56 : vector<2x128xf32>
    %cst_27 = arith.constant dense<0.000000e+00> : vector<128xf32>
    %58 = vector.multi_reduction <add>, %57, %cst_27 [0] : vector<2x128xf32> to vector<128xf32>
    %59 = vector.shape_cast %58 : vector<128xf32> to vector<1x128xf32>
    %cst_28 = arith.constant 2.000000e+00 : f32
    %60 = vector.broadcast %cst_28 : f32 to vector<1x128xf32>
    %61 = arith.divf %59, %60 : vector<1x128xf32>
    %62 = vector.broadcast %54 : vector<1x128xf32> to vector<2x128xf32>
    %63 = arith.subf %42, %62 : vector<2x128xf32>
    %cst_29 = arith.constant 9.99999974E-6 : f32
    %64 = vector.broadcast %cst_29 : f32 to vector<1x128xf32>
    %65 = arith.addf %61, %64 : vector<1x128xf32>
    %66 = math.rsqrt %65 : vector<1x128xf32>
    %67 = vector.broadcast %66 : vector<1x128xf32> to vector<2x128xf32>
    %68 = arith.mulf %63, %67 : vector<2x128xf32>
    %c0_30 = arith.constant 0 : index
    %c0_31 = arith.constant 0 : index
    %69 = vector.load %arg5[%c0_30, %c0_31] : memref<1x128xf32, #tpu.memory_space<vmem>>, vector<1x128xf32>
    %70 = vector.broadcast %69 : vector<1x128xf32> to vector<2x128xf32>
    %71 = arith.mulf %68, %70 : vector<2x128xf32>
    %c0_32 = arith.constant 0 : index
    %c0_33 = arith.constant 0 : index
    %72 = vector.load %arg6[%c0_32, %c0_33] : memref<1x128xf32, #tpu.memory_space<vmem>>, vector<1x128xf32>
    %73 = vector.broadcast %72 : vector<1x128xf32> to vector<2x128xf32>
    %74 = arith.addf %71, %73 : vector<2x128xf32>
    %c0_34 = arith.constant 0 : index
    %c0_35 = arith.constant 0 : index
    %75 = vector.load %arg9[%c0_34, %c0_35] : memref<2x128xf32, #tpu.memory_space<vmem>>, vector<2x128xf32>
    tpu.vector_store %arg9[%c0_34, %c0_35], %74 {strides = array<i32>} : memref<2x128xf32, #tpu.memory_space<vmem>>, vector<2x128xf32>,
    return
  }
}

</mosaic_0001>

<bundles_post_ra>
// kernel: rrcnet_forward.1
= control target key start
LH: loop header
LB: loop body
LE: loop exit
PB: predicated region body
PF: predicated region fallthrough
CT: control target
= control target key end

     0   :  { %15 = vsyncpa [#allocation3], 0  ;;  %vm203_vm0 = vsmask.f32 7424  ;;  %s7023_s0 = inlined_call_operand.vmem [shape: bf16[2,328,4], index: 0, kind: input, shape index: {}]   ;;  %s7024_s1 = inlined_call_operand.vmem [shape: bf16[37,128], index: 1, kind: input, shape index: {}]   ;;  %s7025_s2 = inlined_call_operand.vmem [shape: f32[288,1], index: 2, kind: input, shape index: {}]   ;;  %s7026_s3 = inlined_call_operand.vmem [shape: bf16[128,128], index: 3, kind: input, shape index: {}]   ;;  %s7027_s4 = inlined_call_operand.vmem [shape: f32[1,128], index: 4, kind: input, shape index: {}]   ;;  %s7028_s5 = inlined_call_operand.vmem [shape: f32[1,128], index: 5, kind: input, shape index: {}]   ;;  %s7029_s6 = inlined_call_operand.vmem [shape: f32[1,128], index: 6, kind: input, shape index: {}]   ;;  %s7030_s7 = inlined_call_operand.hbm [shape: f32[2,128], index: 7, kind: output, shape index: {0}]   ;;  %s7031_s8 = inlined_call_operand.vmem [shape: f32[2,128], index: 8, kind: output, shape index: {1}]   ;;  %s7032_s9 = inlined_call_operand.hbm [shape: f32[2,128], index: 9, kind: output, shape index: {2}]  }
   0x1   :  { %v3827_v0 = vld [vmem:[%s7023_s0 + $0x20] sm:$0xff]  ;;  %v3832_v1 = vld [vmem:[%s7023_s0 + $0x28] sm:$0xff]  ;;  %v3837_v2 = vld [vmem:[%s7023_s0 + $0x10] sm:$0xff] }
   0x2   :  { %v3842_v3 = vld [vmem:[%s7023_s0 + $0x18] sm:$0xff]  ;;  %v3847_v4 = vld [vmem:[%s7023_s0] sm:$0xff]  ;;  %v3852_v5 = vld [vmem:[%s7023_s0 + $0x8] sm:$0xff]  ;;  %v3855_v6 = vshll.u32 %v3827_v0, 16  ;;  %v3858_v7 = vshrl.u32 %v3827_v0, 16  ;;  %v3861_v8 = vshll.u32 %v3832_v1, 16 }
   0x3   :  { %v3864_v9 = vshll.u32 %v3837_v2, 16  ;;  %v3869_v10 = vld [vmem:[%s7023_s0 + $0x30] sm:$0xff]  ;;  %v3872_v11 = vshrl.u32 %v3837_v2, 16  ;;  %v3875_v12 = vshll.u32 %v3842_v3, 16  ;;  %v205_v13 = vshrl.u32 %v3847_v4, 16  ;;  %v3900_v27 = vld [vmem:[%s7023_s0 + $0x40] sm:$0xff] }
   0x4   :  { %v207_v14 = vshll.u32 %v3847_v4, 16  ;;  %v238_v15 = vrot.slane %v3855_v6, 1  ;;  %v246_v16 = vrot.slane %v3861_v8, 1  ;;  %v7033_v18 = vshll.u32 %v3852_v5, 16  ;;  %7108 = vst [vmem:[#allocation8_spill] sm:$0xff] %v3900_v27  ;;  %v3905_v28 = vld [vmem:[%s7023_s0 + $0x38] sm:$0xff] }
   0x5   :  { %v222_v17 = vrot.slane %v3864_v9, 1  ;;  %v230_v19 = vrot.slane %v3875_v12, 1  ;;  %v3885_v21 = vshrl.u32 %v3832_v1, 16  ;;  %v3888_v22 = vshll.u32 %v3869_v10, 16 }
   0x6   :  { %v209_v20 = vrot.slane %v207_v14, 1  ;;  %v242_v23 = vor.u32 %v3858_v7, %v238_v15  ;;  %v214_v25 = vrot.slane %v7033_v18, 1  ;;  %v3895_v26 = vshrl.u32 %v3842_v3, 16 }
   0x7   :  { %v226_v24 = vor.u32 %v3872_v11, %v222_v17  ;;  %v7034_v30 = vshrl.u32 %v3852_v5, 16 }
   0x8   :  { %v210_v29 = vor.u32 %v209_v20, %v205_v13 }
   0x9   :  { %16 = vsyncpa [#allocation5], 0  ;;  %v247_v31 = vsel %vm203_vm0, %v242_v23, %v246_v16  ;;  %v231_v32 = vsel %vm203_vm0, %v226_v24, %v230_v19  ;;  %s3761_s27 = smov 4   ;;  %v250_v34 = vor.u32 %v3885_v21, %v246_v16  ;;  %v254_v35 = vrot.slane %v3888_v22, 1  ;;  %v3920_v37 = vld [vmem:[%s7023_s0 + $0x48] sm:$0xff]  ;;  %v3938_v44 = vld [vmem:[%s7023_s0 + $0x58] sm:$0xff] }
   0xa   :  { %360 = vrot.lane.b32.xlu2 %v247_v31, %s3761_s27  ;;  %356 = vrot.lane.b32.xlu1 %v231_v32, %s3761_s27  ;;  %v215_v33 = vsel %vm203_vm0, %v210_v29, %v214_v25  ;;  %v234_v36 = vor.u32 %v3895_v26, %v230_v19  ;;  %7109 = vst [vmem:[#allocation9_spill] sm:$0xff] %v3920_v37  ;;  %v3923_v38 = vshll.u32 %v3900_v27, 16  ;;  %v3926_v39 = vshll.u32 %v3905_v28, 16  ;;  %v3951_v49 = vld [vmem:[%s7023_s0 + $0x50] sm:$0xff]  ;;  %v3962_v52 = vld [vmem:[%s7023_s0 + $0x60] sm:$0xff]  ;;  %s3762_s28 = smov 8  }
   0xb   :  { %352 = vrot.lane.b32.xlu0 %v215_v33, %s3761_s27  ;;  %v218_v40 = vor.u32 %v7034_v30, %v214_v25  ;;  %v255_v41 = vsel %vm203_vm0, %v250_v34, %v254_v35  ;;  %v3933_v43 = vshrl.u32 %v3900_v27, 16  ;;  %7110 = vst [vmem:[#allocation10_spill] sm:$0xff] %v3938_v44  ;;  %v3942_v46 = vshll.u32 %v3920_v37, 16  ;;  %v3985_v62 = vld [vmem:[%s7023_s0 + $0x70] sm:$0xff]  ;;  %v3996_v16 = vld [vmem:[%s7023_s0 + $0x68] sm:$0xff]  ;;  %v4009_v24 = vld [vmem:[%s7023_s0 + $0x78] sm:$0xff] }
   0xc   :  { %v239_v42 = vsel %vm203_vm0, %v234_v36, %v238_v15  ;;  %v270_v45 = vrot.slane %v3923_v38, 1  ;;  %v262_v47 = vrot.slane %v3926_v39, 1  ;;  %v3946_v48 = vshrl.u32 %v3905_v28, 16  ;;  %7111 = vst [vmem:[#allocation11_spill] sm:$0xff] %v3951_v49  ;;  %v4023_v33 = vld [vmem:[%s7023_s0 + $0x90] sm:$0xff]   ;;  %s3763_s29 = smov 12  }
   0xd   :  { %v223_v50 = vsel %vm203_vm0, %v218_v40, %v222_v17  ;;  %v3955_v51 = vshrl.u32 %v3869_v10, 16  ;;  %7112 = vst [vmem:[#allocation12_spill] sm:$0xff] %v3962_v52  ;;  %v3965_v53 = vshll.u32 %v3938_v44, 16  ;;  %v278_v55 = vrot.slane %v3942_v46, 1  ;;  %s3764_s11 = smov 16   ;;  %s3765_s12 = smov 20  }
   0xe   :  { %v274_v54 = vor.u32 %v3933_v43, %v270_v45  ;;  %v266_v56 = vor.u32 %v3946_v48, %v262_v47  ;;  %v3972_v57 = vshll.u32 %v3951_v49, 16  ;;  %v3977_v60 = vshrl.u32 %v3938_v44, 16  ;;  %7113 = vst [vmem:[#allocation13_spill] sm:$0xff] %v3985_v62  ;;  %s3766_s13 = smov 24   ;;  %s3767_s16 = smov 28  }
   0xf   :  { %v258_v58 = vor.u32 %v3955_v51, %v254_v35  ;;  %v294_v59 = vrot.slane %v3965_v53, 1  ;;  %v3980_v61 = vshll.u32 %v3962_v52, 16  ;;  %v3991_v15 = vshrl.u32 %v3951_v49, 16  ;;  %7114 = vst [vmem:[#allocation14_spill] sm:$0xff] %v3996_v16  ;;  %s3768_s25 = smov 32   ;;  %s3285_s17 = sshll.u32 %s7030_s7, 4  ;;  %s3286_s17 = int_to_ptr.hbm [resolvable:$true] %s3285_s17 }
  0x10   :  { %v279_v63 = vsel %vm203_vm0, %v274_v54, %v278_v55  ;;  %v271_v13 = vsel %vm203_vm0, %v266_v56, %v270_v45  ;;  %v286_v14 = vrot.slane %v3972_v57, 1  ;;  %v4000_v19 = vshrl.u32 %v3920_v37, 16  ;;  %7115 = vst [vmem:[#allocation15_spill] sm:$0xff] %v4009_v24  ;;  %v4047_v54 = vld [vmem:[%s7023_s0 + $0x80] sm:$0xff]  ;;  %s3773_s20 = smov [#allocation4]   ;;  %s3298_s23 = sshll.u32 %s7032_s9, 4  ;;  %s3299_s23 = int_to_ptr.hbm [resolvable:$true] %s3298_s23 }
  0x11   :  { %v263_v17 = vsel %vm203_vm0, %v258_v58, %v262_v47  ;;  %v298_v20 = vor.u32 %v3977_v60, %v294_v59  ;;  %v302_v23 = vrot.slane %v3980_v61, 1  ;;  %v4012_v25 = vshll.u32 %v3985_v62, 16  ;;  %v4041_v47 = vld [vmem:[%s7023_s0 + $0x88] sm:$0xff] }
  0x12   :  { %362 = vrot.lane.b32.xlu2 %v255_v41, %s3761_s27  ;;  %358 = vrot.lane.b32.xlu1 %v239_v42, %s3761_s27  ;;  %v290_v29 = vor.u32 %v3991_v15, %v286_v14  ;;  %v4017_v31 = vshll.u32 %v3996_v16, 16  ;;  %v282_v32 = vor.u32 %v4000_v19, %v278_v55  ;;  %v4028_v36 = vshrl.u32 %v3985_v62, 16 }
  0x13   :  { %354 = vrot.lane.b32.xlu0 %v223_v50, %s3761_s27  ;;  %7116 = vst [vmem:[#allocation16_spill] sm:$0xff] %v4012_v25  ;;  %v303_v34 = vsel %vm203_vm0, %v298_v20, %v302_v23  ;;  %v318_v35 = vrot.slane %v4012_v25, 1  ;;  %v4031_v40 = vshll.u32 %v4009_v24, 16  ;;  %v4036_v45 = vshrl.u32 %v3996_v16, 16 }
  0x14   :  { %v295_v41 = vsel %vm203_vm0, %v290_v29, %v294_v59  ;;  %v310_v42 = vrot.slane %v4017_v31, 1  ;;  %v3623_v50 = vunpack.c.l.b16 %v4023_v33  ;;  %v287_v55 = vsel %vm203_vm0, %v282_v32, %v286_v14 }
  0x15   :  { %v4051_v56 = vshrl.u32 %v3962_v52, 16  ;;  %v322_v58 = vor.u32 %v4028_v36, %v318_v35  ;;  %v326_v59 = vrot.slane %v4031_v40, 1  ;;  %v4065_v14 = vshll.u32 %v4047_v54, 16 }
  0x16   :  { %v4070_v32 = vshrl.u32 %v4041_v47, 16  ;;  %vm388_vm1 = vcmask 1046528   ;;  %vm508_vm2 = vsmask.f32 6400  ;;  %vm630_vm3 = vcmask 1045504  }
  0x17   :  { %v306_v20 = vor.u32 %v4051_v56, %v302_v23  ;;  %v327_v29 = vsel %vm203_vm0, %v322_v58, %v326_v59  ;;  %v334_v18 = vrot.slane %v4065_v14, 1  ;;  %v4081_v23 = vshrl.u32 %v4009_v24, 16 }
  0x18   :  { %vm750_vm4 = vsmask.f32 5376  ;;  %vm872_vm5 = vcmask 1044480   ;;  %vm7057_vm6 = vcmask 1041408   ;;  %vm1320_vm7 = vcmask 1042432  }
  0x19   :  { %v311_v30 = vsel %vm203_vm0, %v306_v20, %v310_v42  ;;  %vm946_vm8 = vcmask 31744   ;;  %vm983_vm9 = vcmask 64512   ;;  %vm1020_vm10 = vcmask 97280  }
  0x1a   :  { %368 = vrot.lane.b32.xlu2 %v279_v63, %s3761_s27  ;;  %366 = vrot.lane.b32.xlu1 %v271_v13, %s3761_s27  ;;  %v314_v63 = vor.u32 %v4036_v45, %v310_v42  ;;  %v4059_v13 = vpack.c.b16 %v3623_v50, %v3623_v50  ;;  %vm1057_vm11 = vcmask 130048   ;;  %vm1094_vm12 = vcmask 162816  }
  0x1b   :  { %364 = vrot.lane.b32.xlu0 %v263_v17, %s3761_s27  ;;  %v4062_v17 = vshll.u32 %v4041_v47, 16  ;;  %vm1131_vm13 = vcmask 195584   ;;  %vm1168_vm14 = vcmask 228352   ;;  %vm1205_vm15 = vcmask 261120  }
  0x1d   :  { %7117 = vst [vmem:[#allocation17_spill] sm:$0xff] %v4062_v17  ;;  %v342_v50 = vrot.slane %v4062_v17, 1  ;;  %v330_v17 = vor.u32 %v4081_v23, %v326_v59  ;;  %v389_v59 = vrot.slane %v3847_v4, 1 }
  0x1f   :  { %v346_v58 = vor.u32 %v4070_v32, %v342_v50  ;;  %v335_v20 = vsel %vm203_vm0, %v330_v17, %v334_v18  ;;  %v400_v17 = vrot.slane %v3869_v10, 1 }
  0x22   :  { %374 = vrot.lane.b32.xlu2 %v303_v34, %s3761_s27  ;;  %372 = vrot.lane.b32.xlu1 %v295_v41, %s3761_s27  ;;  %v4073_v34 = vshrl.u32 %v4047_v54, 16  ;;  %v319_v41 = vsel %vm203_vm0, %v314_v63, %v318_v35 }
  0x23   :  { %370 = vrot.lane.b32.xlu0 %v287_v55, %s3761_s27  ;;  %v348_v55 = vshll.u32 %v4059_v13, 16 }
  0x24   :  { %v338_v63 = vor.u32 %v4073_v34, %v334_v18 }
  0x25   :  { %v350_v35 = vrot.slane %v348_v55, 1 }
  0x26   :  { %v343_v42 = vsel %vm203_vm0, %v338_v63, %v342_v50 }
  0x27   :  { %v351_v25 = vsel %vm203_vm0, %v346_v58, %v350_v35  ;;  %v396_v58 = vrot.slane %v3827_v0, 1 }
  0x2a   :  { %380 = vrot.lane.b32.xlu2 %v327_v29, %s3761_s27  ;;  %378 = vrot.lane.b32.xlu1 %v319_v41, %s3761_s27  ;;  %v394_v29 = vrot.slane %v3842_v3, 1  ;;  %v390_v41 = vrot.slane %v3852_v5, 1 }
  0x2b   :  { %376 = vrot.lane.b32.xlu0 %v311_v30, %s3761_s27  ;;  %v392_v30 = vrot.slane %v3837_v2, 1 }
  0x2c   :  { %v391_v18 = vsel %vm388_vm1, %v389_v59, %v390_v41  ;;  %v397_v63 = vsel %vm388_vm1, %v394_v29, %v396_v58 }
  0x2d   :  { %v395_v55 = vsel %vm388_vm1, %v392_v30, %v394_v29  ;;  %v393_v50 = vsel %vm388_vm1, %v390_v41, %v392_v30  ;;  %v402_v30 = vrot.slane %v3905_v28, 1  ;;  %v410_v29 = vrot.slane %v3938_v44, 1 }
  0x2e   :  { %v414_v44 = vrot.slane %v3996_v16, 1 }
  0x32   :  { %386 = vrot.lane.b32.xlu2 %v351_v25, %s3761_s27  ;;  %384 = vrot.lane.b32.xlu1 %v343_v42, %s3761_s27  ;;  %v398_v25 = vrot.slane %v3832_v1, 1  ;;  %v404_v42 = vrot.slane %v3900_v27, 1 }
  0x33   :  { %382 = vrot.lane.b32.xlu0 %v335_v20, %s3761_s27  ;;  %v406_v20 = vrot.slane %v3920_v37, 1 }
  0x34   :  { %v401_v4 = vsel %vm388_vm1, %v398_v25, %v400_v17  ;;  %v399_v35 = vsel %vm388_vm1, %v396_v58, %v398_v25  ;;  %v405_v59 = vsel %vm388_vm1, %v402_v30, %v404_v42  ;;  %v412_v25 = vrot.slane %v3962_v52, 1 }
  0x35   :  { %v407_v41 = vsel %vm388_vm1, %v404_v42, %v406_v20  ;;  %v408_v58 = vrot.slane %v3951_v49, 1 }
  0x36   :  { %v413_v27 = vsel %vm388_vm1, %v410_v29, %v412_v25 }
  0x37   :  { %v411_v37 = vsel %vm388_vm1, %v408_v58, %v410_v29  ;;  %v409_v42 = vsel %vm388_vm1, %v406_v20, %v408_v58  ;;  %v415_v29 = vsel %vm388_vm1, %v412_v25, %v414_v44  ;;  %v422_v20 = vrot.slane %v4041_v47, 1 }
  0x38   :  { %v424_v58 = vrot.slane %v4059_v13, 1 }
  0x3a   :  { %430 = vrot.lane.b32.xlu2 %v395_v55, %s3762_s28  ;;  %428 = vrot.lane.b32.xlu1 %v393_v50, %s3762_s28 }
  0x3b   :  { %426 = vrot.lane.b32.xlu0 %v391_v18, %s3762_s28  ;;  %v403_v18 = vsel %vm388_vm1, %v400_v17, %v402_v30  ;;  %v416_v17 = vrot.slane %v3985_v62, 1  ;;  %v418_v30 = vrot.slane %v4009_v24, 1  ;;  %v420_v62 = vrot.slane %v4047_v54, 1 }
  0x3c   :  { %v425_v24 = vsel %vm388_vm1, %v422_v20, %v424_v58  ;;  %v517_v58 = vrot.slane %v3875_v12, 2 }
  0x3d   :  { %v419_v52 = vsel %vm388_vm1, %v416_v17, %v418_v30  ;;  %v417_v49 = vsel %vm388_vm1, %v414_v44, %v416_v17  ;;  %v423_v16 = vsel %vm388_vm1, %v420_v62, %v422_v20  ;;  %v421_v17 = vsel %vm388_vm1, %v418_v30, %v420_v62 }
  0x42   :  { %436 = vrot.lane.b32.xlu2 %v401_v4, %s3762_s28  ;;  %434 = vrot.lane.b32.xlu1 %v399_v35, %s3762_s28 }
  0x43   :  { %432 = vrot.lane.b32.xlu0 %v397_v63, %s3762_s28 }
  0x4a   :  { %442 = vrot.lane.b32.xlu2 %v407_v41, %s3762_s28  ;;  %440 = vrot.lane.b32.xlu1 %v405_v59, %s3762_s28 }
  0x4b   :  { %438 = vrot.lane.b32.xlu0 %v403_v18, %s3762_s28 }
  0x52   :  { %448 = vrot.lane.b32.xlu2 %v413_v27, %s3762_s28  ;;  %446 = vrot.lane.b32.xlu1 %v411_v37, %s3762_s28 }
  0x53   :  { %444 = vrot.lane.b32.xlu0 %v409_v42, %s3762_s28 }
  0x5a   :  { %454 = vrot.lane.b32.xlu2 %v419_v52, %s3762_s28  ;;  %452 = vrot.lane.b32.xlu1 %v417_v49, %s3762_s28 }
  0x5b   :  { %450 = vrot.lane.b32.xlu0 %v415_v29, %s3762_s28 }
  0x62   :  { %460 = vrot.lane.b32.xlu2 %v425_v24, %s3762_s28  ;;  %458 = vrot.lane.b32.xlu1 %v423_v16, %s3762_s28 }
  0x63   :  { %456 = vrot.lane.b32.xlu0 %v421_v17, %s3762_s28 }
  0x64   :  { %v4150_v44 = vpop.permute.xlu2 %360 }
  0x65   :  { %7118 = vst [vmem:[#allocation18_spill] sm:$0xff] %v4150_v44 }
  0x6a   :  { %476 = vrot.lane.b32.xlu2 %v397_v63, %s3763_s29  ;;  %474 = vrot.lane.b32.xlu1 %v395_v55, %s3763_s29 }
  0x6b   :  { %472 = vrot.lane.b32.xlu0 %v393_v50, %s3763_s29 }
  0x6c   :  { %v4155_v13 = vpop.permute.xlu2 %362 }
  0x6d   :  { %7119 = vst [vmem:[#allocation19_spill] sm:$0xff] %v4155_v13 }
  0x72   :  { %482 = vrot.lane.b32.xlu2 %v403_v18, %s3763_s29  ;;  %480 = vrot.lane.b32.xlu1 %v401_v4, %s3763_s29  ;;  %v4174_v4 = vld [vmem:[%s7023_s0 + $0x98] sm:$0xff]  }
  0x73   :  { %478 = vrot.lane.b32.xlu0 %v399_v35, %s3763_s29  ;;  %v3627_v35 = vunpack.c.l.b16 %v4174_v4 }
  0x74   :  { %v4160_v62 = vpop.permute.xlu2 %368 }
  0x75   :  { %7120 = vst [vmem:[#allocation20_spill] sm:$0xff] %v4160_v62  ;;  %v4186_v18 = vpack.c.b16 %v3627_v35, %v3627_v35  ;;  %v513_v35 = vrot.slane %v3864_v9, 2 }
  0x7a   :  { %488 = vrot.lane.b32.xlu2 %v409_v42, %s3763_s29  ;;  %486 = vrot.lane.b32.xlu1 %v407_v41, %s3763_s29 }
  0x7b   :  { %484 = vrot.lane.b32.xlu0 %v405_v59, %s3763_s29 }
  0x7c   :  { %v4165_v24 = vpop.permute.xlu2 %374  ;;  %v4167_v55 = vpop.permute.xlu1 %356 }
  0x7d   :  { %7121 = vst [vmem:[#allocation21_spill] sm:$0xff] %v4165_v24  ;;  %v4169_v50 = vpop.permute.xlu0 %352 }
  0x7e   :  { %7122 = vst [vmem:[#allocation22_spill] sm:$0xff] %v4167_v55 }
  0x7f   :  { %7123 = vst [vmem:[#allocation23_spill] sm:$0xff] %v4169_v50 }
  0x82   :  { %494 = vrot.lane.b32.xlu2 %v415_v29, %s3763_s29  ;;  %492 = vrot.lane.b32.xlu1 %v413_v27, %s3763_s29  ;;  %v468_v27 = vrot.slane %v4023_v33, 1  ;;  %v516_v29 = vrot.slane %v3895_v26, 1 }
  0x83   :  { %490 = vrot.lane.b32.xlu0 %v411_v37, %s3763_s29  ;;  %v470_v37 = vrot.slane %v4186_v18, 1 }
  0x84   :  { %v4180_v63 = vpop.permute.xlu2 %380  ;;  %v4182_v41 = vpop.permute.xlu1 %358  ;;  %v518_v44 = vor.u32 %v517_v58, %v516_v29  ;;  %v532_v29 = vrot.slane %v3946_v48, 1  ;;  %v524_v58 = vrot.slane %v3885_v21, 1 }
  0x85   :  { %7124 = vst [vmem:[#allocation24_spill] sm:$0xff] %v4180_v63  ;;  %v4184_v59 = vpop.permute.xlu0 %354  ;;  %v471_v62 = vsel %vm388_vm1, %v468_v27, %v470_v37 }
  0x86   :  { %7125 = vst [vmem:[#allocation25_spill] sm:$0xff] %v4182_v41 }
  0x87   :  { %7126 = vst [vmem:[#allocation26_spill] sm:$0xff] %v4184_v59  ;;  %v586_v59 = vshrl.u32 %v4186_v18, 16 }
  0x8a   :  { %500 = vrot.lane.b32.xlu2 %v421_v17, %s3763_s29  ;;  %498 = vrot.lane.b32.xlu1 %v419_v52, %s3763_s29  ;;  %v520_v17 = vrot.slane %v3858_v7, 1  ;;  %v521_v52 = vrot.slane %v3855_v6, 2 }
  0x8b   :  { %496 = vrot.lane.b32.xlu0 %v417_v49, %s3763_s29  ;;  %v512_v49 = vrot.slane %v3872_v11, 1 }
  0x8c   :  { %v4193_v25 = vpop.permute.xlu2 %386  ;;  %v4195_v42 = vpop.permute.xlu1 %366  ;;  %v522_v41 = vor.u32 %v521_v52, %v520_v17  ;;  %v525_v17 = vrot.slane %v3861_v8, 2 }
  0x8d   :  { %7127 = vst [vmem:[#allocation27_spill] sm:$0xff] %v4193_v25  ;;  %v4197_v30 = vpop.permute.xlu0 %364  ;;  %v469_v25 = vsel %vm388_vm1, %v422_v20, %v468_v27  ;;  %v514_v24 = vor.u32 %v513_v35, %v512_v49 }
  0x8e   :  { %7128 = vst [vmem:[#allocation28_spill] sm:$0xff] %v4195_v42  ;;  %v7130_v42 = vshrl.u32 %v3852_v5, 16  ;;  %v526_v52 = vor.u32 %v525_v17, %v524_v58 }
  0x8f   :  { %7129 = vst [vmem:[#allocation29_spill] sm:$0xff] %v4197_v30  ;;  %v7131_v30 = vshll.u32 %v3852_v5, 16 }
  0x90   :  { %v509_v63 = vrot.slane %v7130_v42, 1  ;;  %v523_v42 = vsel %vm508_vm2, %v518_v44, %v522_v41 }
  0x91   :  { %v510_v13 = vrot.slane %v7131_v30, 2  ;;  %v519_v30 = vsel %vm508_vm2, %v514_v24, %v518_v44 }
  0x92   :  { %506 = vrot.lane.b32.xlu2 %v471_v62, %s3763_s29  ;;  %504 = vrot.lane.b32.xlu1 %v469_v25, %s3763_s29  ;;  %v528_v62 = vrot.slane %v3955_v51, 1  ;;  %v529_v25 = vrot.slane %v3888_v22, 2 }
  0x93   :  { %502 = vrot.lane.b32.xlu0 %v423_v16, %s3763_s29  ;;  %v511_v20 = vor.u32 %v510_v13, %v509_v63  ;;  %v533_v16 = vrot.slane %v3926_v39, 2 }
  0x94   :  { %v4214_v55 = vpop.permute.xlu2 %430  ;;  %v4216_v37 = vpop.permute.xlu1 %372  ;;  %v530_v44 = vor.u32 %v529_v25, %v528_v62  ;;  %v537_v62 = vrot.slane %v3923_v38, 2 }
  0x95   :  { %7132 = vst [vmem:[#allocation30_spill] sm:$0xff] %v4214_v55  ;;  %v4218_v27 = vpop.permute.xlu0 %370  ;;  %v515_v13 = vsel %vm508_vm2, %v511_v20, %v514_v24  ;;  %v534_v63 = vor.u32 %v533_v16, %v532_v29  ;;  %v540_v55 = vrot.slane %v4000_v19, 1  ;;  %v541_v24 = vrot.slane %v3942_v46, 2 }
  0x96   :  { %7133 = vst [vmem:[#allocation31_spill] sm:$0xff] %v4216_v37  ;;  %v544_v20 = vrot.slane %v3991_v15, 1  ;;  %v531_v29 = vsel %vm508_vm2, %v526_v52, %v530_v44  ;;  %v527_v16 = vsel %vm508_vm2, %v522_v41, %v526_v52  ;;  %v552_v41 = vrot.slane %v4051_v56, 1 }
  0x97   :  { %7134 = vst [vmem:[#allocation32_spill] sm:$0xff] %v4218_v27  ;;  %v535_v25 = vsel %vm508_vm2, %v530_v44, %v534_v63  ;;  %v542_v58 = vor.u32 %v541_v24, %v540_v55  ;;  %v553_v52 = vrot.slane %v3980_v61, 2  ;;  %v556_v55 = vrot.slane %v4036_v45, 1 }
  0x98   :  { %v557_v24 = vrot.slane %v4017_v31, 2 }
  0x9a   :  { %598 = vrot.lane.b32.xlu2 %v523_v42, %s3764_s11  ;;  %596 = vrot.lane.b32.xlu1 %v519_v30, %s3764_s11  ;;  %v545_v42 = vrot.slane %v3972_v57, 2  ;;  %v536_v30 = vrot.slane %v3933_v43, 1 }
  0x9b   :  { %594 = vrot.lane.b32.xlu0 %v515_v13, %s3764_s11 }
  0x9c   :  { %v4232_v49 = vpop.permute.xlu2 %436  ;;  %v4234_v35 = vpop.permute.xlu1 %378  ;;  %v546_v17 = vor.u32 %v545_v42, %v544_v20  ;;  %v538_v13 = vor.u32 %v537_v62, %v536_v30  ;;  %v548_v20 = vrot.slane %v3977_v60, 1  ;;  %v549_v42 = vrot.slane %v3965_v53, 2 }
  0x9d   :  { %7135 = vst [vmem:[#allocation33_spill] sm:$0xff] %v4232_v49  ;;  %v4236_v27 = vpop.permute.xlu0 %376  ;;  %v554_v62 = vor.u32 %v553_v52, %v552_v41 }
  0x9e   :  { %7136 = vst [vmem:[#allocation34_spill] sm:$0xff] %v4234_v35  ;;  %v547_v37 = vsel %vm508_vm2, %v542_v58, %v546_v17  ;;  %v543_v44 = vsel %vm508_vm2, %v538_v13, %v542_v58  ;;  %v539_v30 = vsel %vm508_vm2, %v534_v63, %v538_v13  ;;  %v568_v63 = vrot.slane %v4073_v34, 1 }
  0x9f   :  { %7137 = vst [vmem:[#allocation35_spill] sm:$0xff] %v4236_v27  ;;  %v560_v13 = vrot.slane %v4028_v36, 1 }
  0xa2   :  { %604 = vrot.lane.b32.xlu2 %v535_v25, %s3764_s11  ;;  %602 = vrot.lane.b32.xlu1 %v531_v29, %s3764_s11  ;;  %v558_v25 = vor.u32 %v557_v24, %v556_v55  ;;  %v550_v29 = vor.u32 %v549_v42, %v548_v20 }
  0xa3   :  { %600 = vrot.lane.b32.xlu0 %v527_v16, %s3764_s11 }
  0xa4   :  { %v4250_v49 = vpop.permute.xlu2 %442  ;;  %v4252_v35 = vpop.permute.xlu1 %384  ;;  %v559_v52 = vsel %vm508_vm2, %v554_v62, %v558_v25  ;;  %v555_v55 = vsel %vm508_vm2, %v550_v29, %v554_v62  ;;  %v551_v24 = vsel %vm508_vm2, %v546_v17, %v550_v29 }
  0xa5   :  { %7138 = vst [vmem:[#allocation36_spill] sm:$0xff] %v4250_v49  ;;  %v4254_v27 = vpop.permute.xlu0 %382 }
  0xa6   :  { %7139 = vst [vmem:[#allocation37_spill] sm:$0xff] %v4252_v35  ;;  %v564_v35 = vrot.slane %v4081_v23, 1 }
  0xa7   :  { %7140 = vst [vmem:[#allocation38_spill] sm:$0xff] %v4254_v27  ;;  %v565_v27 = vrot.slane %v4031_v40, 2 }
  0xa9   :  { %v566_v20 = vor.u32 %v565_v27, %v564_v35 }
  0xaa   :  { %610 = vrot.lane.b32.xlu2 %v547_v37, %s3764_s11  ;;  %608 = vrot.lane.b32.xlu1 %v543_v44, %s3764_s11  ;;  %v569_v37 = vrot.slane %v4065_v14, 2  ;;  %v7144_v44 = vld [vmem:[#allocation16_spill] sm:$0xff] }
  0xab   :  { %606 = vrot.lane.b32.xlu0 %v539_v30, %s3764_s11  ;;  %v561_v41 = vrot.slane %v7144_v44, 2 }
  0xac   :  { %v4268_v16 = vpop.permute.xlu2 %448  ;;  %v4270_v58 = vpop.permute.xlu1 %428  ;;  %v570_v42 = vor.u32 %v569_v37, %v568_v63 }
  0xad   :  { %7141 = vst [vmem:[#allocation39_spill] sm:$0xff] %v4268_v16  ;;  %v4272_v49 = vpop.permute.xlu0 %426  ;;  %v562_v30 = vor.u32 %v561_v41, %v560_v13  ;;  %v7047_v16 = vshrl.u32 %v4023_v33, 16  ;;  %v588_v13 = vrot.slane %v586_v59, 1 }
  0xae   :  { %7142 = vst [vmem:[#allocation40_spill] sm:$0xff] %v4270_v58  ;;  %v7048_v58 = vshll.u32 %v4023_v33, 16  ;;  %v571_v35 = vsel %vm508_vm2, %v566_v20, %v570_v42 }
  0xaf   :  { %7143 = vst [vmem:[#allocation41_spill] sm:$0xff] %v4272_v49  ;;  %v589_v49 = vshll.u32 %v4186_v18, 16  ;;  %v567_v29 = vsel %vm508_vm2, %v562_v30, %v566_v20  ;;  %v579_v63 = vrot.slane %v7047_v16, 1 }
  0xb0   :  { %v582_v37 = vrot.slane %v7048_v58, 2 }
  0xb1   :  { %v591_v41 = vrot.slane %v589_v49, 2 }
  0xb2   :  { %616 = vrot.lane.b32.xlu2 %v559_v52, %s3764_s11  ;;  %614 = vrot.lane.b32.xlu1 %v555_v55, %s3764_s11  ;;  %v572_v52 = vrot.slane %v4070_v32, 1  ;;  %v7148_v55 = vld [vmem:[#allocation17_spill] sm:$0xff]  ;;  %v583_v20 = vor.u32 %v582_v37, %v579_v63 }
  0xb3   :  { %612 = vrot.lane.b32.xlu0 %v551_v24, %s3764_s11  ;;  %v573_v24 = vrot.slane %v7148_v55, 2 }
  0xb4   :  { %v4290_v62 = vpop.permute.xlu2 %454  ;;  %v4292_v17 = vpop.permute.xlu1 %434 }
  0xb5   :  { %7145 = vst [vmem:[#allocation16_spill] sm:$0xff] %v4290_v62  ;;  %v4294_v27 = vpop.permute.xlu0 %432  ;;  %v563_v62 = vsel %vm508_vm2, %v558_v25, %v562_v30  ;;  %v574_v16 = vor.u32 %v573_v24, %v572_v52  ;;  %v634_v30 = vrot.slane %v3842_v3, 2 }
  0xb6   :  { %7146 = vst [vmem:[#allocation42_spill] sm:$0xff] %v4292_v17  ;;  %v592_v17 = vor.u32 %v591_v41, %v588_v13 }
  0xb7   :  { %7147 = vst [vmem:[#allocation43_spill] sm:$0xff] %v4294_v27  ;;  %v584_v50 = vsel %vm508_vm2, %v574_v16, %v583_v20  ;;  %v575_v25 = vsel %vm508_vm2, %v570_v42, %v574_v16 }
  0xb8   :  { %v593_v49 = vsel %vm508_vm2, %v583_v20, %v592_v17  ;;  %v631_v17 = vrot.slane %v3852_v5, 2  ;;  %v638_v5 = vrot.slane %v3832_v1, 2  ;;  %v7156_v1 = vld [vmem:[#allocation9_spill] sm:$0xff] }
  0xba   :  { %622 = vrot.lane.b32.xlu2 %v571_v35, %s3764_s11  ;;  %620 = vrot.lane.b32.xlu1 %v567_v29, %s3764_s11  ;;  %v632_v35 = vrot.slane %v3837_v2, 2  ;;  %v642_v2 = vrot.slane %v3905_v28, 2  ;;  %v7157_v28 = vld [vmem:[#allocation11_spill] sm:$0xff] }
  0xbb   :  { %618 = vrot.lane.b32.xlu0 %v563_v62, %s3764_s11  ;;  %v636_v62 = vrot.slane %v3827_v0, 2  ;;  %v640_v0 = vrot.slane %v3869_v10, 2  ;;  %v646_v10 = vrot.slane %v7156_v1, 2  ;;  %v7162_v1 = vld [vmem:[#allocation12_spill] sm:$0xff] }
  0xbc   :  { %v4308_v27 = vpop.permute.xlu2 %460  ;;  %v4310_v58 = vpop.permute.xlu1 %440  ;;  %v633_v3 = vsel %vm630_vm3, %v631_v17, %v632_v35 }
  0xbd   :  { %7149 = vst [vmem:[#allocation17_spill] sm:$0xff] %v4308_v27  ;;  %v4312_v59 = vpop.permute.xlu0 %438  ;;  %v4331_v42 = vsel %vm630_vm3, %v634_v30, %v636_v62  ;;  %v4352_v52 = vsel %vm630_vm3, %v640_v0, %v642_v2  ;;  %v4355_v24 = vsel %vm630_vm3, %v638_v5, %v640_v0  ;;  %v639_v20 = vsel %vm630_vm3, %v636_v62, %v638_v5  ;;  %v7164_v27 = vld [vmem:[#allocation10_spill] sm:$0xff] }
  0xbe   :  { %7150 = vst [vmem:[#allocation44_spill] sm:$0xff] %v4310_v58 }
  0xbf   :  { %7151 = vst [vmem:[#allocation45_spill] sm:$0xff] %v4312_v59  ;;  %v7167_v59 = vld [vmem:[#allocation13_spill] sm:$0xff] }
  0xc2   :  { %628 = vrot.lane.b32.xlu2 %v593_v49, %s3764_s11  ;;  %626 = vrot.lane.b32.xlu1 %v584_v50, %s3764_s11  ;;  %v4334_v50 = vsel %vm630_vm3, %v632_v35, %v634_v30  ;;  %v648_v49 = vrot.slane %v7157_v28, 2  ;;  %v652_v28 = vrot.slane %v7162_v1, 2  ;;  %v7166_v1 = vld [vmem:[#allocation15_spill] sm:$0xff] }
  0xc3   :  { %624 = vrot.lane.b32.xlu0 %v575_v25, %s3764_s11  ;;  %v7158_v25 = vld [vmem:[#allocation8_spill] sm:$0xff] }
  0xc4   :  { %v4323_v29 = vpop.permute.xlu2 %476  ;;  %v4325_v63 = vpop.permute.xlu1 %446  ;;  %v644_v30 = vrot.slane %v7158_v25, 2  ;;  %v649_v62 = vsel %vm630_vm3, %v646_v10, %v648_v49  ;;  %v7163_v25 = vld [vmem:[#allocation14_spill] sm:$0xff] }
  0xc5   :  { %v4328_v16 = vpop.permute.xlu0 %444 }
  0xc6   :  { %7152 = vst [vmem:[#allocation46_spill] sm:$0xff] %v4328_v16  ;;  %v647_v0 = vsel %vm630_vm3, %v644_v30, %v646_v10  ;;  %v645_v5 = vsel %vm630_vm3, %v642_v2, %v644_v30  ;;  %v654_v16 = vrot.slane %v7163_v25, 2  ;;  %v660_v25 = vrot.slane %v4047_v54, 2 }
  0xc7   :  { %v664_v54 = vrot.slane %v4023_v33, 2 }
  0xc8   :  { %v655_v2 = vsel %vm630_vm3, %v652_v28, %v654_v16 }
  0xca   :  { %672 = vrot.lane.b32.xlu2 %v4331_v42, %s3765_s12  ;;  %670 = vrot.lane.b32.xlu1 %v4334_v50, %s3765_s12 }
  0xcb   :  { %668 = vrot.lane.b32.xlu0 %v633_v3, %s3765_s12 }
  0xcc   :  { %v4345_v37 = vpop.permute.xlu2 %482  ;;  %v4347_v13 = vpop.permute.xlu1 %452 }
  0xcd   :  { %7153 = vst [vmem:[#allocation47_spill] sm:$0xff] %v4345_v37  ;;  %v4349_v41 = vpop.permute.xlu0 %450  ;;  %v656_v37 = vrot.slane %v7167_v59, 2  ;;  %v666_v59 = vrot.slane %v4186_v18, 2 }
  0xce   :  { %7154 = vst [vmem:[#allocation48_spill] sm:$0xff] %v4347_v13 }
  0xcf   :  { %7155 = vst [vmem:[#allocation49_spill] sm:$0xff] %v4349_v41 }
  0xd2   :  { %678 = vrot.lane.b32.xlu2 %v4352_v52, %s3765_s12  ;;  %676 = vrot.lane.b32.xlu1 %v4355_v24, %s3765_s12 }
  0xd3   :  { %674 = vrot.lane.b32.xlu0 %v639_v20, %s3765_s12 }
  0xd4   :  { %v4366_v35 = vpop.permute.xlu2 %488  ;;  %v4368_v17 = vpop.permute.xlu1 %458 }
  0xd5   :  { %7159 = vst [vmem:[#allocation9_spill] sm:$0xff] %v4366_v35  ;;  %v4370_v3 = vpop.permute.xlu0 %456  ;;  %v650_v35 = vrot.slane %v7164_v27, 2  ;;  %v658_v27 = vrot.slane %v7166_v1, 2  ;;  %v662_v1 = vrot.slane %v4041_v47, 2 }
  0xd6   :  { %7160 = vst [vmem:[#allocation11_spill] sm:$0xff] %v4368_v17 }
  0xd7   :  { %7161 = vst [vmem:[#allocation8_spill] sm:$0xff] %v4370_v3  ;;  %v653_v10 = vsel %vm630_vm3, %v650_v35, %v652_v28  ;;  %v651_v30 = vsel %vm630_vm3, %v648_v49, %v650_v35  ;;  %v661_v49 = vsel %vm630_vm3, %v658_v27, %v660_v25  ;;  %v659_v35 = vsel %vm630_vm3, %v656_v37, %v658_v27 }
  0xd8   :  { %v657_v28 = vsel %vm630_vm3, %v654_v16, %v656_v37  ;;  %v667_v16 = vsel %vm630_vm3, %v664_v54, %v666_v59  ;;  %v665_v37 = vsel %vm630_vm3, %v662_v1, %v664_v54  ;;  %v663_v27 = vsel %vm630_vm3, %v660_v25, %v662_v1 }
  0xda   :  { %684 = vrot.lane.b32.xlu2 %v649_v62, %s3765_s12  ;;  %682 = vrot.lane.b32.xlu1 %v647_v0, %s3765_s12 }
  0xdb   :  { %680 = vrot.lane.b32.xlu0 %v645_v5, %s3765_s12 }
  0xdc   :  { %v4381_v17 = vpop.permute.xlu2 %494  ;;  %v4383_v58 = vpop.permute.xlu1 %474 }
  0xdd   :  { %7165 = vst [vmem:[#allocation12_spill] sm:$0xff] %v4381_v17  ;;  %v4385_v3 = vpop.permute.xlu0 %472 }
  0xe2   :  { %690 = vrot.lane.b32.xlu2 %v655_v2, %s3765_s12  ;;  %688 = vrot.lane.b32.xlu1 %v653_v10, %s3765_s12 }
  0xe3   :  { %686 = vrot.lane.b32.xlu0 %v651_v30, %s3765_s12 }
  0xe4   :  { %v4396_v13 = vpop.permute.xlu2 %500  ;;  %v4398_v41 = vpop.permute.xlu1 %480 }
  0xe5   :  { %7168 = vst [vmem:[#allocation14_spill] sm:$0xff] %v4396_v13  ;;  %v4400_v17 = vpop.permute.xlu0 %478 }
  0xe6   :  { %7169 = vst [vmem:[#allocation10_spill] sm:$0xff] %v4398_v41 }
  0xe7   :  { %7170 = vst [vmem:[#allocation15_spill] sm:$0xff] %v4400_v17 }
  0xea   :  { %696 = vrot.lane.b32.xlu2 %v661_v49, %s3765_s12  ;;  %694 = vrot.lane.b32.xlu1 %v659_v35, %s3765_s12 }
  0xeb   :  { %692 = vrot.lane.b32.xlu0 %v657_v28, %s3765_s12 }
  0xec   :  { %v4411_v13 = vpop.permute.xlu2 %506  ;;  %v4413_v41 = vpop.permute.xlu1 %486 }
  0xed   :  { %7171 = vst [vmem:[#allocation13_spill] sm:$0xff] %v4411_v13  ;;  %v4415_v17 = vpop.permute.xlu0 %484 }
  0xee   :  { %7172 = vst [vmem:[#allocation50_spill] sm:$0xff] %v4413_v41  ;;  %v758_v41 = vrot.slane %v3858_v7, 2 }
  0xef   :  { %7173 = vst [vmem:[#allocation51_spill] sm:$0xff] %v4415_v17 }
  0xf2   :  { %702 = vrot.lane.b32.xlu2 %v667_v16, %s3765_s12  ;;  %700 = vrot.lane.b32.xlu1 %v665_v37, %s3765_s12 }
  0xf3   :  { %698 = vrot.lane.b32.xlu0 %v663_v27, %s3765_s12 }
  0xf4   :  { %v4423_v18 = vpop.permute.xlu2 %598  ;;  %v4425_v47 = vpop.permute.xlu1 %492 }
  0xf5   :  { %v4427_v13 = vpop.permute.xlu0 %490 }
  0xf6   :  { %7174 = vst [vmem:[#allocation52_spill] sm:$0xff] %v4427_v13 }
  0xfa   :  { %718 = vrot.lane.b32.xlu2 %v639_v20, %s3766_s13  ;;  %716 = vrot.lane.b32.xlu1 %v4331_v42, %s3766_s13 }
  0xfb   :  { %714 = vrot.lane.b32.xlu0 %v4334_v50, %s3766_s13 }
  0xfc   :  { %v4434_v25 = vpop.permute.xlu2 %604  ;;  %v4436_v59 = vpop.permute.xlu1 %498 }
  0xfd   :  { %7175 = vst [vmem:[#allocation53_spill] sm:$0xff] %v4434_v25  ;;  %v4438_v1 = vpop.permute.xlu0 %496 }
  0xfe   :  { %7176 = vst [vmem:[#allocation54_spill] sm:$0xff] %v4436_v59 }
 0x102   :  { %724 = vrot.lane.b32.xlu2 %v645_v5, %s3766_s13  ;;  %722 = vrot.lane.b32.xlu1 %v4352_v52, %s3766_s13 }
 0x103   :  { %720 = vrot.lane.b32.xlu0 %v4355_v24, %s3766_s13  ;;  %v109_v24 = vld [vmem:[%s7023_s0 + $0xa0] sm:$0xf] }
 0x104   :  { %v4445_v20 = vpop.permute.xlu2 %610  ;;  %v4447_v42 = vpop.permute.xlu1 %504 }
 0x105   :  { %7177 = vst [vmem:[#allocation55_spill] sm:$0xff] %v4445_v20  ;;  %v4449_v16 = vpop.permute.xlu0 %502 }
 0x106   :  { %7178 = vst [vmem:[#allocation56_spill] sm:$0xff] %v4447_v42 }
 0x107   :  { %7179 = vst [vmem:[#allocation57_spill] sm:$0xff] %v4449_v16  ;;  %v755_v16 = vrot.slane %v3875_v12, 3 }
 0x10a   :  { %730 = vrot.lane.b32.xlu2 %v651_v30, %s3766_s13  ;;  %728 = vrot.lane.b32.xlu1 %v649_v62, %s3766_s13  ;;  %v707_v30 = vunpack.c.l.b16 %v109_v24 }
 0x10b   :  { %726 = vrot.lane.b32.xlu0 %v647_v0, %s3766_s13 }
 0x10c   :  { %v4454_v50 = vpop.permute.xlu2 %616  ;;  %v4456_v5 = vpop.permute.xlu1 %596  ;;  %v4472_v20 = vpack.c.b16 %v707_v30, %v707_v30  ;;  %v759_v30 = vrot.slane %v3855_v6, 3 }
 0x10d   :  { %v4458_v52 = vpop.permute.xlu0 %594 }
 0x10e   :  { %v760_v6 = vor.u32 %v759_v30, %v758_v41  ;;  %v771_v41 = vrot.slane %v3926_v39, 3  ;;  %v786_v30 = vrot.slane %v3977_v60, 2 }
 0x112   :  { %736 = vrot.lane.b32.xlu2 %v657_v28, %s3766_s13  ;;  %734 = vrot.lane.b32.xlu1 %v655_v2, %s3766_s13  ;;  %v710_v28 = vrot.slane %v4174_v4, 2  ;;  %v712_v2 = vrot.slane %v4472_v20, 2 }
 0x113   :  { %732 = vrot.lane.b32.xlu0 %v653_v10, %s3766_s13 }
 0x114   :  { %v4466_v62 = vpop.permute.xlu2 %622  ;;  %v4468_v0 = vpop.permute.xlu1 %602  ;;  %v713_v17 = vsel %vm630_vm3, %v710_v28, %v712_v2  ;;  %v767_v2 = vrot.slane %v3888_v22, 3  ;;  %v782_v22 = vrot.slane %v3991_v15, 2 }
 0x115   :  { %7180 = vst [vmem:[#allocation58_spill] sm:$0xff] %v4466_v62  ;;  %v4470_v13 = vpop.permute.xlu0 %600 }
 0x116   :  { %7181 = vst [vmem:[#allocation59_spill] sm:$0xff] %v4468_v0 }
 0x11a   :  { %742 = vrot.lane.b32.xlu2 %v663_v27, %s3766_s13  ;;  %740 = vrot.lane.b32.xlu1 %v661_v49, %s3766_s13  ;;  %v762_v27 = vrot.slane %v3885_v21, 2  ;;  %v763_v49 = vrot.slane %v3861_v8, 3 }
 0x11b   :  { %738 = vrot.lane.b32.xlu0 %v659_v35, %s3766_s13  ;;  %v754_v35 = vrot.slane %v3895_v26, 2 }
 0x11c   :  { %v4479_v10 = vpop.permute.xlu2 %628  ;;  %v4481_v24 = vpop.permute.xlu1 %608  ;;  %v764_v7 = vor.u32 %v763_v49, %v762_v27  ;;  %v787_v27 = vrot.slane %v3965_v53, 3  ;;  %v778_v49 = vrot.slane %v4000_v19, 2 }
 0x11d   :  { %7182 = vst [vmem:[#allocation60_spill] sm:$0xff] %v4479_v10  ;;  %v4483_v42 = vpop.permute.xlu0 %606  ;;  %v711_v10 = vsel %vm630_vm3, %v664_v54, %v710_v28  ;;  %v756_v21 = vor.u32 %v755_v16, %v754_v35  ;;  %v774_v16 = vrot.slane %v3933_v43, 2  ;;  %v766_v28 = vrot.slane %v3955_v51, 2 }
 0x11e   :  { %7183 = vst [vmem:[#allocation61_spill] sm:$0xff] %v4481_v24  ;;  %v751_v24 = vrot.slane %v3872_v11, 2  ;;  %v765_v11 = vsel %vm750_vm4, %v760_v6, %v764_v7  ;;  %v783_v51 = vrot.slane %v3972_v57, 3  ;;  %v779_v35 = vrot.slane %v3942_v46, 3 }
 0x11f   :  { %7184 = vst [vmem:[#allocation62_spill] sm:$0xff] %v4483_v42  ;;  %v752_v42 = vrot.slane %v3864_v9, 3  ;;  %v761_v9 = vsel %vm750_vm4, %v756_v21, %v760_v6  ;;  %v768_v39 = vor.u32 %v767_v2, %v766_v28  ;;  %v788_v57 = vor.u32 %v787_v27, %v786_v30 }
 0x120   :  { %v784_v15 = vor.u32 %v783_v51, %v782_v22  ;;  %v791_v28 = vrot.slane %v3980_v61, 3  ;;  %v807_v61 = vrot.slane %v4065_v14, 3  ;;  %v802_v22 = vrot.slane %v4081_v23, 2 }
 0x121   :  { %v753_v26 = vor.u32 %v752_v42, %v751_v24  ;;  %v803_v51 = vrot.slane %v4031_v40, 3  ;;  %v828_v40 = vshrl.u32 %v4472_v20, 16  ;;  %v831_v23 = vshll.u32 %v4472_v20, 16 }
 0x122   :  { %748 = vrot.lane.b32.xlu2 %v713_v17, %s3766_s13  ;;  %746 = vrot.lane.b32.xlu1 %v711_v10, %s3766_s13  ;;  %v770_v17 = vrot.slane %v3946_v48, 2  ;;  %v789_v19 = vsel %vm750_vm4, %v784_v15, %v788_v57 }
 0x123   :  { %744 = vrot.lane.b32.xlu0 %v665_v37, %s3766_s13  ;;  %v775_v37 = vrot.slane %v3923_v38, 3  ;;  %v757_v42 = vsel %vm750_vm4, %v753_v26, %v756_v21  ;;  %v769_v26 = vsel %vm750_vm4, %v764_v7, %v768_v39  ;;  %v794_v7 = vrot.slane %v4036_v45, 2 }
 0x124   :  { %v4498_v8 = vpop.permute.xlu2 %672  ;;  %v4500_v12 = vpop.permute.xlu1 %614  ;;  %v772_v48 = vor.u32 %v771_v41, %v770_v17  ;;  %v795_v17 = vrot.slane %v4017_v31, 3  ;;  %v798_v41 = vrot.slane %v4028_v36, 2 }
 0x125   :  { %v4502_v54 = vpop.permute.xlu0 %612  ;;  %v776_v10 = vor.u32 %v775_v37, %v774_v16  ;;  %v799_v16 = vrot.slane %v7144_v44, 3  ;;  %v790_v37 = vrot.slane %v4051_v56, 2  ;;  %v806_v56 = vrot.slane %v4073_v34, 2 }
 0x126   :  { %7185 = vst [vmem:[#allocation63_spill] sm:$0xff] %v4502_v54  ;;  %v773_v21 = vsel %vm750_vm4, %v768_v39, %v772_v48  ;;  %v811_v39 = vrot.slane %v7148_v55, 3  ;;  %v804_v34 = vor.u32 %v803_v51, %v802_v22  ;;  %v822_v55 = vshll.u32 %v4174_v4, 16  ;;  %v4605_v22 = vld [vmem:[%s7023_s0 + $0x20] sm:$0xff] }
 0x127   :  { %v777_v6 = vsel %vm750_vm4, %v772_v48, %v776_v10  ;;  %v800_v45 = vor.u32 %v799_v16, %v798_v41  ;;  %v792_v48 = vor.u32 %v791_v28, %v790_v37  ;;  %v7194_v16 = vshll.u32 %v4023_v33, 16  ;;  %7198 = vst [vmem:[#allocation74_spill] sm:$0xff] %v4605_v22 }
 0x128   :  { %v876_v51 = vrot.slane %v4605_v22, 3  ;;  %v7235_v22 = vld [vmem:[#allocation41_spill] sm:$0xff] }
 0x129   :  { %v815_v37 = vrot.slane %v7194_v16, 3  ;;  %v805_v28 = vsel %vm750_vm4, %v800_v45, %v804_v34 }
 0x12a   :  { %840 = vrot.lane.b32.xlu2 %v765_v11, %s3767_s16  ;;  %838 = vrot.lane.b32.xlu1 %v761_v9, %s3767_s16  ;;  %v780_v11 = vor.u32 %v779_v35, %v778_v49  ;;  %v793_v49 = vsel %vm750_vm4, %v788_v57, %v792_v48  ;;  %v808_v35 = vor.u32 %v807_v61, %v806_v56 }
 0x12b   :  { %836 = vrot.lane.b32.xlu0 %v757_v42, %s3767_s16  ;;  %v796_v42 = vor.u32 %v795_v17, %v794_v7  ;;  %v833_v7 = vrot.slane %v831_v23, 3  ;;  %v7193_v17 = vshrl.u32 %v4023_v33, 16 }
 0x12c   :  { %v4516_v24 = vpop.permute.xlu2 %678  ;;  %v4518_v43 = vpop.permute.xlu1 %620  ;;  %v785_v9 = vsel %vm750_vm4, %v780_v11, %v784_v15  ;;  %v781_v2 = vsel %vm750_vm4, %v776_v10, %v780_v11  ;;  %v810_v10 = vrot.slane %v4070_v32, 2  ;;  %v819_v32 = vshrl.u32 %v4174_v4, 16 }
 0x12d   :  { %7186 = vst [vmem:[#allocation64_spill] sm:$0xff] %v4516_v24  ;;  %v4520_v38 = vpop.permute.xlu0 %618  ;;  %v801_v30 = vsel %vm750_vm4, %v796_v42, %v800_v45  ;;  %v797_v27 = vsel %vm750_vm4, %v792_v48, %v796_v42  ;;  %v809_v57 = vsel %vm750_vm4, %v804_v34, %v808_v35  ;;  %v814_v41 = vrot.slane %v7193_v17, 2  ;;  %v4647_v17 = vld [vmem:[%s7023_s0 + $0x30] sm:$0xff] }
 0x12e   :  { %7187 = vst [vmem:[#allocation65_spill] sm:$0xff] %v4518_v43  ;;  %v812_v14 = vor.u32 %v811_v39, %v810_v10  ;;  %v821_v11 = vrot.slane %v819_v32, 2  ;;  %v4627_v32 = vld [vmem:[%s7023_s0 + $0x10] sm:$0xff] }
 0x12f   :  { %v816_v48 = vor.u32 %v815_v37, %v814_v41  ;;  %7201 = vst [vmem:[#allocation77_spill] sm:$0xff] %v4647_v17  ;;  %v880_v41 = vrot.slane %v4647_v17, 3 }
 0x130   :  { %v813_v15 = vsel %vm750_vm4, %v808_v35, %v812_v14 }
 0x131   :  { %v817_v45 = vsel %vm750_vm4, %v812_v14, %v816_v48 }
 0x132   :  { %846 = vrot.lane.b32.xlu2 %v777_v6, %s3767_s16  ;;  %844 = vrot.lane.b32.xlu1 %v773_v21, %s3767_s16 }
 0x133   :  { %842 = vrot.lane.b32.xlu0 %v769_v26, %s3767_s16 }
 0x134   :  { %v4534_v53 = vpop.permute.xlu2 %684  ;;  %v4536_v60 = vpop.permute.xlu1 %626 }
 0x135   :  { %7188 = vst [vmem:[#allocation66_spill] sm:$0xff] %v4534_v53  ;;  %v4538_v46 = vpop.permute.xlu0 %624 }
 0x136   :  { %7189 = vst [vmem:[#allocation67_spill] sm:$0xff] %v4536_v60  ;;  %v3686_v60 = vld [vmem:[%s7023_s0 + $0x90] sm:$0xff]  }
 0x137   :  { %7190 = vst [vmem:[#allocation68_spill] sm:$0xff] %v4538_v46 }
 0x13a   :  { %852 = vrot.lane.b32.xlu2 %v789_v19, %s3767_s16  ;;  %850 = vrot.lane.b32.xlu1 %v785_v9, %s3767_s16  ;;  %v824_v19 = vrot.slane %v822_v55, 3  ;;  %v830_v9 = vrot.slane %v828_v40, 2  ;;  %v873_v55 = vrot.slane %v4627_v32, 3 }
 0x13b   :  { %848 = vrot.lane.b32.xlu0 %v781_v2, %s3767_s16 }
 0x13c   :  { %v4552_v31 = vpop.permute.xlu2 %690  ;;  %v4554_v36 = vpop.permute.xlu1 %670  ;;  %v825_v2 = vor.u32 %v824_v19, %v821_v11  ;;  %v834_v42 = vor.u32 %v833_v7, %v830_v9  ;;  %v3674_v11 = vld [vmem:[%s7023_s0 + $0x38] sm:$0xff]  ;;  %v3675_v9 = vld [vmem:[%s7023_s0 + $0x40] sm:$0xff] }
 0x13d   :  { %v4556_v44 = vpop.permute.xlu0 %668  ;;  %v882_v19 = vrot.slane %v3674_v11, 3  ;;  %v884_v7 = vrot.slane %v3675_v9, 3 }
 0x13e   :  { %v835_v33 = vsel %vm750_vm4, %v825_v2, %v834_v42  ;;  %v826_v39 = vsel %vm750_vm4, %v816_v48, %v825_v2 }
 0x13f   :  { %v885_v2 = vsel %vm872_vm5, %v882_v19, %v884_v7  ;;  %v883_v42 = vsel %vm872_vm5, %v880_v41, %v882_v19  ;;  %v3769_v19 = vmov 0  }
 0x140   :  { %3662 = vset.pattern.permute.xlu2 %v3769_v19  ;;  %3661 = vset.pattern.permute.xlu1 %v3769_v19 }
 0x141   :  { %3660 = vset.pattern.permute.xlu0 %v3769_v19 }
 0x142   :  { %858 = vrot.lane.b32.xlu2 %v801_v30, %s3767_s16  ;;  %856 = vrot.lane.b32.xlu1 %v797_v27, %s3767_s16  ;;  %v4611_v30 = vld [vmem:[%s7023_s0 + $0x28] sm:$0xff] }
 0x143   :  { %854 = vrot.lane.b32.xlu0 %v793_v49, %s3767_s16  ;;  %7199 = vst [vmem:[#allocation75_spill] sm:$0xff] %v4611_v30  ;;  %v878_v27 = vrot.slane %v4611_v30, 3  ;;  %v4617_v49 = vld [vmem:[%s7023_s0 + $0x18] sm:$0xff] }
 0x144   :  { %v4574_v6 = vpop.permute.xlu2 %696  ;;  %v4576_v21 = vpop.permute.xlu1 %676  ;;  %v874_v35 = vrot.slane %v4617_v49, 3 }
 0x145   :  { %7191 = vst [vmem:[#allocation69_spill] sm:$0xff] %v4574_v6  ;;  %v4578_v26 = vpop.permute.xlu0 %674  ;;  %v879_v23 = vsel %vm872_vm5, %v876_v51, %v878_v27  ;;  %v881_v48 = vsel %vm872_vm5, %v878_v27, %v880_v41  ;;  %v3679_v27 = vld [vmem:[%s7023_s0 + $0x48] sm:$0xff] }
 0x146   :  { %7192 = vst [vmem:[#allocation70_spill] sm:$0xff] %v4576_v21  ;;  %v4692_v41 = vld [vmem:[%s7023_s0 + $0x68] sm:$0xff] }
 0x147   :  { %7207 = vst [vmem:[#allocation83_spill] sm:$0xff] %v4692_v41 }
 0x14a   :  { %864 = vrot.lane.b32.xlu2 %v813_v15, %s3767_s16  ;;  %862 = vrot.lane.b32.xlu1 %v809_v57, %s3767_s16  ;;  %v877_v15 = vsel %vm872_vm5, %v874_v35, %v876_v51  ;;  %v875_v57 = vsel %vm872_vm5, %v873_v55, %v874_v35  ;;  %v886_v35 = vrot.slane %v3679_v27, 3 }
 0x14b   :  { %860 = vrot.lane.b32.xlu0 %v805_v28, %s3767_s16 }
 0x14c   :  { %v4590_v56 = vpop.permute.xlu2 %702  ;;  %v4592_v61 = vpop.permute.xlu1 %682  ;;  %v887_v9 = vsel %vm872_vm5, %v884_v7, %v886_v35 }
 0x14d   :  { %7195 = vst [vmem:[#allocation71_spill] sm:$0xff] %v4590_v56  ;;  %v4594_v10 = vpop.permute.xlu0 %680  ;;  %v3684_v56 = vld [vmem:[%s7023_s0 + $0x88] sm:$0xff] }
 0x14e   :  { %7196 = vst [vmem:[#allocation72_spill] sm:$0xff] %v4592_v61  ;;  %v904_v61 = vrot.slane %v3686_v60, 3 }
 0x14f   :  { %7197 = vst [vmem:[#allocation73_spill] sm:$0xff] %v4594_v10 }
 0x152   :  { %870 = vrot.lane.b32.xlu2 %v835_v33, %s3767_s16  ;;  %868 = vrot.lane.b32.xlu1 %v826_v39, %s3767_s16  ;;  %v4665_v33 = vld [vmem:[%s7023_s0 + $0x50] sm:$0xff] }
 0x153   :  { %866 = vrot.lane.b32.xlu0 %v817_v45, %s3767_s16  ;;  %v888_v39 = vrot.slane %v4665_v33, 3  ;;  %v4671_v45 = vld [vmem:[%s7023_s0 + $0x58] sm:$0xff] }
 0x154   :  { %v4620_v14 = vpop.permute.xlu2 %718  ;;  %v4622_v34 = vpop.permute.xlu1 %688  ;;  %v890_v51 = vrot.slane %v4671_v45, 3 }
 0x155   :  { %v4630_v40 = vpop.permute.xlu0 %686  ;;  %v889_v11 = vsel %vm872_vm5, %v886_v35, %v888_v39 }
 0x156   :  { %7200 = vst [vmem:[#allocation76_spill] sm:$0xff] %v4630_v40  ;;  %v3683_v40 = vld [vmem:[%s7023_s0 + $0x80] sm:$0xff] }
 0x157   :  { %v900_v54 = vrot.slane %v3683_v40, 3 }
 0x15a   :  { %914 = vrot.lane.b32.xlu2 %v879_v23, %s3768_s25  ;;  %912 = vrot.lane.b32.xlu1 %v877_v15, %s3768_s25 }
 0x15b   :  { %910 = vrot.lane.b32.xlu0 %v875_v57, %s3768_s25  ;;  %v891_v57 = vsel %vm872_vm5, %v888_v39, %v890_v51 }
 0x15c   :  { %v4650_v16 = vpop.permute.xlu2 %724  ;;  %v4652_v37 = vpop.permute.xlu1 %694 }
 0x15d   :  { %7202 = vst [vmem:[#allocation78_spill] sm:$0xff] %v4650_v16  ;;  %v4654_v28 = vpop.permute.xlu0 %692 }
 0x15e   :  { %7203 = vst [vmem:[#allocation79_spill] sm:$0xff] %v4652_v37 }
 0x162   :  { %920 = vrot.lane.b32.xlu2 %v885_v2, %s3768_s25  ;;  %918 = vrot.lane.b32.xlu1 %v883_v42, %s3768_s25  ;;  %v894_v2 = vrot.slane %v4692_v41, 3  ;;  %v4698_v42 = vld [vmem:[%s7023_s0 + $0x70] sm:$0xff] }
 0x163   :  { %916 = vrot.lane.b32.xlu0 %v881_v48, %s3768_s25  ;;  %7208 = vst [vmem:[#allocation84_spill] sm:$0xff] %v4698_v42  ;;  %v896_v7 = vrot.slane %v4698_v42, 3  ;;  %v4704_v48 = vld [vmem:[%s7023_s0 + $0x60] sm:$0xff] }
 0x164   :  { %v4677_v55 = vpop.permute.xlu2 %730  ;;  %v4679_v23 = vpop.permute.xlu1 %700  ;;  %v892_v39 = vrot.slane %v4704_v48, 3 }
 0x165   :  { %7204 = vst [vmem:[#allocation80_spill] sm:$0xff] %v4677_v55  ;;  %v4681_v15 = vpop.permute.xlu0 %698  ;;  %v902_v55 = vrot.slane %v3684_v56, 3  ;;  %v906_v56 = vrot.slane %v4174_v4, 3 }
 0x166   :  { %7205 = vst [vmem:[#allocation81_spill] sm:$0xff] %v4679_v23  ;;  %v895_v19 = vsel %vm872_vm5, %v892_v39, %v894_v2  ;;  %v908_v23 = vrot.slane %v4472_v20, 3 }
 0x167   :  { %7206 = vst [vmem:[#allocation82_spill] sm:$0xff] %v4681_v15  ;;  %v903_v40 = vsel %vm872_vm5, %v900_v54, %v902_v55 }
 0x16a   :  { %926 = vrot.lane.b32.xlu2 %v891_v57, %s3768_s25  ;;  %924 = vrot.lane.b32.xlu1 %v889_v11, %s3768_s25  ;;  %v897_v11 = vsel %vm872_vm5, %v894_v2, %v896_v7 }
 0x16b   :  { %922 = vrot.lane.b32.xlu0 %v887_v9, %s3768_s25  ;;  %v893_v9 = vsel %vm872_vm5, %v890_v51, %v892_v39  ;;  %v4728_v51 = vld [vmem:[%s7023_s0 + $0x78] sm:$0xff] }
 0x16c   :  { %v4707_v27 = vpop.permute.xlu2 %736  ;;  %v4709_v35 = vpop.permute.xlu1 %716  ;;  %7209 = vst [vmem:[#allocation85_spill] sm:$0xff] %v4728_v51  ;;  %v898_v2 = vrot.slane %v4728_v51, 3 }
 0x16d   :  { %v4711_v57 = vpop.permute.xlu0 %714 }
 0x16e   :  { %v899_v53 = vsel %vm872_vm5, %v896_v7, %v898_v2 }
 0x172   :  { %932 = vrot.lane.b32.xlu2 %v897_v11, %s3768_s25  ;;  %930 = vrot.lane.b32.xlu1 %v895_v19, %s3768_s25 }
 0x173   :  { %928 = vrot.lane.b32.xlu0 %v893_v9, %s3768_s25  ;;  %v901_v9 = vsel %vm872_vm5, %v898_v2, %v900_v54  ;;  %v909_v2 = vsel %vm872_vm5, %v906_v56, %v908_v23  ;;  %v35_v23 = vld [vmem:[%s7025_s2 + $0x10] sm:$0xff] }
 0x174   :  { %v4731_v39 = vpop.permute.xlu2 %742  ;;  %v4733_v11 = vpop.permute.xlu1 %722 }
 0x175   :  { %7210 = vst [vmem:[#allocation86_spill] sm:$0xff] %v4731_v39  ;;  %v4735_v19 = vpop.permute.xlu0 %720 }
 0x176   :  { %7211 = vst [vmem:[#allocation87_spill] sm:$0xff] %v4733_v11 }
 0x17a   :  { %938 = vrot.lane.b32.xlu2 %v903_v40, %s3768_s25  ;;  %936 = vrot.lane.b32.xlu1 %v901_v9, %s3768_s25  ;;  %v907_v40 = vsel %vm872_vm5, %v904_v61, %v906_v56 }
 0x17b   :  { %934 = vrot.lane.b32.xlu0 %v899_v53, %s3768_s25  ;;  %v905_v53 = vsel %vm872_vm5, %v902_v55, %v904_v61  ;;  %v34_v61 = vld [vmem:[%s7025_s2 + $0x8] sm:$0xff]  ;;  %v33_v55 = vld [vmem:[%s7025_s2] sm:$0xff] }
 0x17c   :  { %v4748_v15 = vpop.permute.xlu2 %748  ;;  %v4750_v54 = vpop.permute.xlu1 %728 }
 0x17d   :  { %7212 = vst [vmem:[#allocation88_spill] sm:$0xff] %v4748_v15  ;;  %v4752_v7 = vpop.permute.xlu0 %726  ;;  %v40_v15 = vld [vmem:[%s7025_s2 + $0x38] sm:$0xff] }
 0x17e   :  { %7213 = vst [vmem:[#allocation89_spill] sm:$0xff] %v4750_v54  ;;  %v39_v54 = vld [vmem:[%s7025_s2 + $0x30] sm:$0xff] }
 0x17f   :  { %7214 = vst [vmem:[#allocation90_spill] sm:$0xff] %v4752_v7  ;;  %v3770_v7 = vmov 65535  }
 0x180   :  { %v1321_v51 = vsel %vm7057_vm6, 4294967295, %v3770_v7  ;;  %vm1242_vm6 = vcmask 293888  }
 0x181   :  { %v1322_v10 = vsel %vm1320_vm7, %v1321_v51, 0  ;;  %v3594_v51 = vld [vmem:[%s7024_s1 + $0x8] sm:$0xff]  ;;  %vm1282_vm7 = vcmask 302080  }
 0x182   :  { %944 = vrot.lane.b32.xlu2 %v909_v2, %s3768_s25  ;;  %942 = vrot.lane.b32.xlu1 %v907_v40, %s3768_s25  ;;  %v37_v40 = vld [vmem:[%s7025_s2 + $0x20] sm:$0xff] }
 0x183   :  { %940 = vrot.lane.b32.xlu0 %v905_v53, %s3768_s25  ;;  %v36_v53 = vld [vmem:[%s7025_s2 + $0x18] sm:$0xff] }
 0x184   :  { %v4760_v4 = vpop.permute.xlu2 %840  ;;  %v4762_v20 = vpop.permute.xlu1 %734 }
 0x185   :  { %v4764_v60 = vpop.permute.xlu0 %732 }
 0x186   :  { %7215 = vst [vmem:[#allocation91_spill] sm:$0xff] %v4764_v60 }
 0x18a   :  { %1473 = vperm.xlu2 %3662, %v35_v23   ;;  %1468 = vperm.xlu1 %3661, %v34_v61   ;;  %v38_v23 = vld [vmem:[%s7025_s2 + $0x28] sm:$0xff] }
 0x18b   :  { %1463 = vperm.xlu0 %3660, %v33_v55  }
 0x18c   :  { %v4775_v9 = vpop.permute.xlu2 %846  ;;  %v4777_v56 = vpop.permute.xlu1 %740 }
 0x18d   :  { %7216 = vst [vmem:[#allocation92_spill] sm:$0xff] %v4775_v9  ;;  %v4779_v2 = vpop.permute.xlu0 %738 }
 0x18e   :  { %7217 = vst [vmem:[#allocation93_spill] sm:$0xff] %v4777_v56 }
 0x192   :  { %1483 = vperm.xlu2 %3662, %v37_v40   ;;  %1478 = vperm.xlu1 %3661, %v36_v53   ;;  %v41_v40 = vld [vmem:[%s7025_s2 + $0x40] sm:$0xff] }
 0x193   :  { %1488 = vperm.xlu0 %3660, %v38_v23  }
 0x194   :  { %v4790_v61 = vpop.permute.xlu2 %852  ;;  %v4792_v55 = vpop.permute.xlu1 %746 }
 0x195   :  { %7218 = vst [vmem:[#allocation94_spill] sm:$0xff] %v4790_v61  ;;  %v4794_v60 = vpop.permute.xlu0 %744 }
 0x196   :  { %7219 = vst [vmem:[#allocation95_spill] sm:$0xff] %v4792_v55  ;;  %v1266_v55 = vld [vmem:[%s7024_s1 + $0x10] sm:$0x7] }
 0x197   :  { %7220 = vst [vmem:[#allocation96_spill] sm:$0xff] %v4794_v60  ;;  %v43_v60 = vld [vmem:[%s7025_s2 + $0x50] sm:$0xff] }
 0x19a   :  { %1498 = vperm.xlu2 %3662, %v40_v15   ;;  %1493 = vperm.xlu1 %3661, %v39_v54   ;;  %v42_v15 = vld [vmem:[%s7025_s2 + $0x48] sm:$0xff]  ;;  %v1276_v54 = vunpack.c.l.b16 %v1266_v55 }
 0x19b   :  { %1503 = vperm.xlu0 %3660, %v41_v40   ;;  %v44_v40 = vld [vmem:[%s7025_s2 + $0x58] sm:$0xff] }
 0x19c   :  { %v4805_v53 = vpop.permute.xlu2 %858  ;;  %v4807_v23 = vpop.permute.xlu1 %838  ;;  %v1279_v46 = vpack.c.b16 %v1276_v54, %v1276_v54  ;;  %v46_v54 = vld [vmem:[%s7025_s2 + $0x68] sm:$0xff] }
 0x19d   :  { %v4809_v61 = vpop.permute.xlu0 %836 }
 0x19e   :  { %v1324_v6 = vand.u32 %v1322_v10, %v1279_v46  ;;  %v47_v46 = vld [vmem:[%s7025_s2 + $0x70] sm:$0xff]  ;;  %v3593_v10 = vld [vmem:[%s7024_s1] sm:$0xff] }
 0x1a0   :  { %1331 = vmatpush.bf16.msra.mxu0 %v1324_v6  ;;  %3641 = vmatpush.bf16.msra.mxu3 %v1324_v6 }
 0x1a1   :  { %2937 = vmatpush.bf16.msra.mxu1 %v1324_v6  ;;  %3644 = vmatpush.bf16.msra.mxu2 %v1324_v6  ;;  %v49_v6 = vld [vmem:[%s7025_s2 + $0x80] sm:$0xff] }
 0x1a2   :  { %1513 = vperm.xlu2 %3662, %v43_v60   ;;  %1508 = vperm.xlu1 %3661, %v42_v15   ;;  %v45_v60 = vld [vmem:[%s7025_s2 + $0x60] sm:$0xff] }
 0x1a3   :  { %1518 = vperm.xlu0 %3660, %v44_v40  }
 0x1a4   :  { %v4824_v17 = vpop.permute.xlu2 %864  ;;  %v4826_v39 = vpop.permute.xlu1 %844  ;;  %1332 = vmatpush.bf16.msra.mxu0 %v3594_v51  ;;  %3642 = vmatpush.bf16.msra.mxu3 %v3594_v51 }
 0x1a5   :  { %7221 = vst [vmem:[#allocation97_spill] sm:$0xff] %v4824_v17  ;;  %v4828_v55 = vpop.permute.xlu0 %842  ;;  %2938 = vmatpush.bf16.msra.mxu1 %v3594_v51  ;;  %3645 = vmatpush.bf16.msra.mxu2 %v3594_v51  ;;  %v4868_v51 = vld [vmem:[%s7023_s0 + $0xac] sm:$0xff] }
 0x1a6   :  { %7222 = vst [vmem:[#allocation98_spill] sm:$0xff] %v4826_v39  ;;  %v1861_v9 = vshll.u32 %v4868_v51, 16  ;;  %v7054_v42 = vshrl.u32 %v4868_v51, 16 }
 0x1a8   :  { %1333 = vmatpush.bf16.msra.mxu0 %v3593_v10  ;;  %3643 = vmatpush.bf16.msra.mxu3 %v3593_v10  ;;  %v4900_v56 = vrot.slane %v1861_v9, 1  ;;  %v2156_v43 = vrot.slane %v7054_v42, 1  ;;  %v2157_v59 = vrot.slane %v1861_v9, 2 }
 0x1a9   :  { %2939 = vmatpush.bf16.msra.mxu1 %v3593_v10  ;;  %3646 = vmatpush.bf16.msra.mxu2 %v3593_v10  ;;  %v4880_v10 = vld [vmem:[%s7023_s0 + $0xb4] sm:$0xff] }
 0x1aa   :  { %1528 = vperm.xlu2 %3662, %v46_v54   ;;  %1523 = vperm.xlu1 %3661, %v45_v60   ;;  %v48_v54 = vld [vmem:[%s7025_s2 + $0x78] sm:$0xff]  ;;  %v4860_v60 = vld [vmem:[%s7023_s0 + $0xa4] sm:$0xff]  ;;  %v4895_v16 = vshll.u32 %v4880_v10, 16  ;;  %v4898_v24 = vshrl.u32 %v4880_v10, 16  ;;  %v2158_v9 = vor.u32 %v2157_v59, %v2156_v43  ;;  %v2278_v59 = vrot.slane %v4880_v10, 2 }
 0x1ab   :  { %1533 = vperm.xlu0 %3660, %v47_v46   ;;  %7226 = vst [vmem:[#allocation102_spill] sm:$0xff] %v4860_v60  ;;  %v50_v46 = vld [vmem:[%s7025_s2 + $0x88] sm:$0xff]  ;;  %v2037_v37 = vrot.slane %v4860_v60, 1 }
 0x1ac   :  { %v4845_v7 = vpop.permute.xlu2 %870  ;;  %v4847_v15 = vpop.permute.xlu1 %850  ;;  %v2159_v39 = vrot.slane %v4898_v24, 1 }
 0x1ad   :  { %7223 = vst [vmem:[#allocation99_spill] sm:$0xff] %v4845_v7  ;;  %v4849_v40 = vpop.permute.xlu0 %848  ;;  %v1856_v7 = vshll.u32 %v4860_v60, 16 }
 0x1ae   :  { %7224 = vst [vmem:[#allocation100_spill] sm:$0xff] %v4847_v15 }
 0x1af   :  { %7225 = vst [vmem:[#allocation101_spill] sm:$0xff] %v4849_v40  ;;  %v1858_v62 = vrot.slane %v1856_v7, 1 }
 0x1b2   :  { %1543 = vperm.xlu2 %3662, %v49_v6   ;;  %1538 = vperm.xlu1 %3661, %v48_v54   ;;  %v52_v6 = vld [vmem:[%s7025_s2 + $0x98] sm:$0xff]  ;;  %v51_v54 = vld [vmem:[%s7025_s2 + $0x90] sm:$0xff] }
 0x1b3   :  { %1548 = vperm.xlu0 %3660, %v50_v46   ;;  %v1854_v46 = vshrl.u32 %v4860_v60, 16  ;;  %v4922_v60 = vld [vmem:[%s7023_s0 + $0xbc] sm:$0xff] }
 0x1b4   :  { %v4871_v15 = vpop.permute.xlu2 %914  ;;  %v4873_v40 = vpop.permute.xlu1 %856  ;;  %v4934_v41 = vshrl.u32 %v4922_v60, 16 }
 0x1b5   :  { %v4875_v17 = vpop.permute.xlu0 %854  ;;  %v1859_v25 = vor.u32 %v1858_v62, %v1854_v46  ;;  %v2160_v62 = vrot.slane %v4895_v16, 2  ;;  %v54_v46 = vld [vmem:[%s7025_s2 + $0xa8] sm:$0xff] }
 0x1b6   :  { %7227 = vst [vmem:[#allocation103_spill] sm:$0xff] %v4875_v17  ;;  %v53_v17 = vld [vmem:[%s7025_s2 + $0xa0] sm:$0xff] }
 0x1b7   :  { %v4926_v42 = vor.u32 %v2160_v62, %v2159_v39  ;;  %v3687_v39 = vld [vmem:[%s7023_s0] sm:$0xff] }
 0x1ba   :  { %1558 = vperm.xlu2 %3662, %v52_v6   ;;  %1553 = vperm.xlu1 %3661, %v51_v54   ;;  %v2038_v6 = vrot.slane %v4868_v51, 1 }
 0x1bb   :  { %1563 = vperm.xlu0 %3660, %v53_v17   ;;  %v1864_v17 = vsel %vm203_vm0, %v1859_v25, %v4900_v56  ;;  %v4931_v25 = vshll.u32 %v4922_v60, 16 }
 0x1bc   :  { %v4902_v7 = vpop.permute.xlu2 %920  ;;  %v4904_v30 = vpop.permute.xlu1 %862 }
 0x1bd   :  { %7228 = vst [vmem:[#allocation104_spill] sm:$0xff] %v4902_v7  ;;  %v4908_v54 = vpop.permute.xlu0 %860  ;;  %v2039_v7 = vsel %vm388_vm1, %v2037_v37, %v2038_v6  ;;  %v2277_v37 = vrot.slane %v4868_v51, 2  ;;  %v2400_v0 = vrot.slane %v4931_v25, 3 }
 0x1be   :  { %7229 = vst [vmem:[#allocation105_spill] sm:$0xff] %v4904_v30  ;;  %v2040_v30 = vrot.slane %v4880_v10, 1 }
 0x1bf   :  { %7230 = vst [vmem:[#allocation106_spill] sm:$0xff] %v4908_v54 }
 0x1c2   :  { %2001 = vrot.lane.b32.xlu2 %v1864_v17, %s3761_s27  ;;  %1568 = vperm.xlu1 %3661, %v54_v46   ;;  %v2162_v17 = vsel %vm508_vm2, %v2158_v9, %v4926_v42  ;;  %v2041_v46 = vsel %vm388_vm1, %v2038_v6, %v2040_v30 }
 0x1c3   :  { %2074 = vrot.lane.b32.xlu0 %v2039_v7, %s3762_s28  ;;  %v7234_v7 = vld [vmem:[#allocation23_spill] sm:$0xff] }
 0x1c4   :  { %v4936_v11 = vpop.permute.xlu2 %926  ;;  %v4938_v21 = vpop.permute.xlu1 %868  ;;  %v948_v62 = vsel %vm946_vm8, %v3687_v39, %v7234_v7  ;;  %v2279_v39 = vsel %vm630_vm3, %v2277_v37, %v2278_v59 }
 0x1c5   :  { %7231 = vst [vmem:[#allocation107_spill] sm:$0xff] %v4936_v11  ;;  %v4942_v43 = vpop.permute.xlu0 %866  ;;  %v2396_v11 = vrot.slane %v4898_v24, 2  ;;  %v985_v54 = vsel %vm983_vm9, %v948_v62, %v7235_v22 }
 0x1c6   :  { %7232 = vst [vmem:[#allocation108_spill] sm:$0xff] %v4938_v21  ;;  %v2397_v21 = vrot.slane %v4895_v16, 3  ;;  %v1022_v9 = vsel %vm1020_vm10, %v985_v54, %v4385_v3  ;;  %v2280_v3 = vrot.slane %v4922_v60, 2 }
 0x1c7   :  { %7233 = vst [vmem:[#allocation109_spill] sm:$0xff] %v4942_v43  ;;  %v2399_v43 = vrot.slane %v4934_v41, 2  ;;  %v1059_v6 = vsel %vm1057_vm11, %v1022_v9, %v4458_v52  ;;  %v7058_v9 = vrot.slane %v4922_v60, 3 }
 0x1c8   :  { %v1096_v7 = vsel %vm1094_vm12, %v1059_v6, %v4556_v44  ;;  %v2398_v22 = vor.u32 %v2397_v21, %v2396_v11 }
 0x1c9   :  { %v4970_v37 = vor.u32 %v2400_v0, %v2399_v43  ;;  %v1133_v54 = vsel %vm1131_vm13, %v1096_v7, %v4711_v57  ;;  %v2281_v43 = vsel %vm630_vm3, %v2278_v59, %v2280_v3  ;;  %v1871_v7 = vrot.slane %v4895_v16, 1 }
 0x1ca   :  { %2241 = vrot.lane.b32.xlu2 %v2162_v17, %s3764_s11  ;;  %2120 = vrot.lane.b32.xlu1 %v2041_v46, %s3763_s29  ;;  %v2517_v17 = vrot.slane %v4880_v10, 3  ;;  %v1170_v44 = vsel %vm1168_vm14, %v1133_v54, %v4809_v61  ;;  %v7236_v61 = vshrl.u32 %v4868_v51, 16  ;;  %v2042_v54 = vrot.slane %v4922_v60, 1 }
 0x1cb   :  { %2314 = vrot.lane.b32.xlu0 %v2279_v39, %s3765_s12  ;;  %v2402_v57 = vsel %vm750_vm4, %v2398_v22, %v4970_v37 }
 0x1cc   :  { %v4975_v52 = vpop.permute.xlu2 %932  ;;  %v913_v62 = vpop.permute.xlu1 %912  ;;  %v2519_v39 = vsel %vm872_vm5, %v2517_v17, %v7058_v9  ;;  %v1867_v6 = vor.u32 %v7236_v61, %v4900_v56  ;;  %v3688_v17 = vld [vmem:[%s7023_s0 + $0x8] sm:$0xff]  ;;  %v2164_v61 = vrot.slane %v4931_v25, 2 }
 0x1cd   :  { %v911_v21 = vpop.permute.xlu0 %910 }
 0x1ce   :  { %v1207_v0 = vsel %vm1205_vm15, %v1170_v44, %v911_v21  ;;  %v7237_v44 = vld [vmem:[#allocation26_spill] sm:$0xff] }
 0x1cf   :  { %v1244_v11 = vsel %vm1242_vm6, %v1207_v0, 1065369472  ;;  %v950_v21 = vsel %vm946_vm8, %v3688_v17, %v7237_v44  ;;  %v5023_v17 = vsel %vm388_vm1, %v2040_v30, %v2042_v54 }
 0x1d0   :  { %3394 = vmatmul.msk.bf16.vlgmr.msra.gmra.mxu0 %vm1282_vm7, %v1244_v11  ;;  %v7238_v11 = vld [vmem:[#allocation40_spill] sm:$0xff] }
 0x1d1   :  { %v987_v56 = vsel %vm983_vm9, %v950_v21, %v7238_v11 }
 0x1d2   :  { %2481 = vrot.lane.b32.xlu2 %v2402_v57, %s3767_s16  ;;  %2360 = vrot.lane.b32.xlu1 %v2281_v43, %s3766_s13  ;;  %v1024_v16 = vsel %vm1020_vm10, %v987_v56, %v4383_v58  ;;  %v1872_v57 = vsel %vm203_vm0, %v1867_v6, %v1871_v7  ;;  %v5028_v58 = vld [vmem:[%s7023_s0 + $0xc4] sm:$0xff] }
 0x1d3   :  { %2554 = vrot.lane.b32.xlu0 %v2519_v39, %s3768_s25  ;;  %v2163_v39 = vrot.slane %v4934_v41, 1  ;;  %v1061_v9 = vsel %vm1057_vm11, %v1024_v16, %v4456_v5  ;;  %v5043_v10 = vshll.u32 %v5028_v58, 16  ;;  %v2282_v21 = vrot.slane %v5028_v58, 2 }
 0x1d4   :  { %v4997_v22 = vpop.permute.xlu2 %938  ;;  %v4999_v59 = vpop.permute.xlu1 %918  ;;  %v1098_v6 = vsel %vm1094_vm12, %v1061_v9, %v4554_v36  ;;  %v5046_v36 = vshrl.u32 %v5028_v58, 16 }
 0x1d5   :  { %v5007_v0 = vpop.permute.xlu0 %916  ;;  %v1135_v44 = vsel %vm1131_vm13, %v1098_v6, %v4709_v35  ;;  %v5040_v30 = vor.u32 %v2164_v61, %v2163_v39  ;;  %v2404_v61 = vrot.slane %v5043_v10, 3 }
 0x1d6   :  { %v1172_v5 = vsel %vm1168_vm14, %v1135_v44, %v4807_v23  ;;  %v7239_v23 = vld [vmem:[#allocation31_spill] sm:$0xff]  ;;  %v2403_v39 = vrot.slane %v5046_v36, 2  ;;  %v2520_v44 = vrot.slane %v5028_v58, 3 }
 0x1d7   :  { %v1209_v35 = vsel %vm1205_vm15, %v1172_v5, %v913_v62  ;;  %v968_v11 = vsel %vm946_vm8, %v4665_v33, %v7239_v23  ;;  %v2166_v62 = vsel %vm508_vm2, %v4926_v42, %v5040_v30  ;;  %v5073_v33 = vsel %vm630_vm3, %v2280_v3, %v2282_v21  ;;  %v7240_v23 = vld [vmem:[#allocation22_spill] sm:$0xff] }
 0x1d8   :  { %v1005_v16 = vsel %vm983_vm9, %v968_v11, %v4325_v63  ;;  %v5086_v3 = vor.u32 %v2404_v61, %v2403_v39 }
 0x1d9   :  { %v1042_v6 = vsel %vm1020_vm10, %v1005_v16, %v4425_v47 }
 0x1da   :  { %2076 = vrot.lane.b32.xlu2 %v2041_v46, %s3762_s28  ;;  %2003 = vrot.lane.b32.xlu1 %v1872_v57, %s3761_s27  ;;  %v1245_v57 = vsel %vm1242_vm6, %v1209_v35, 1065369472  ;;  %v1079_v63 = vsel %vm1057_vm11, %v1042_v6, %v4500_v12 }
 0x1db   :  { %2122 = vrot.lane.b32.xlu0 %v5023_v17, %s3763_s29  ;;  %v1116_v42 = vsel %vm1094_vm12, %v1079_v63, %v4622_v34  ;;  %v1875_v34 = vor.u32 %v4898_v24, %v1871_v7  ;;  %v7242_v24 = vrot.slane %v4922_v60, 3  ;;  %v2406_v7 = vsel %vm750_vm4, %v4970_v37, %v5086_v3 }
 0x1dc   :  { %v5049_v9 = vpop.permute.xlu2 %944  ;;  %v5051_v46 = vpop.permute.xlu1 %924  ;;  %v1153_v47 = vsel %vm1131_vm13, %v1116_v42, %v4762_v20  ;;  %v952_v20 = vsel %vm946_vm8, %v4627_v32, %v7240_v23  ;;  %v2168_v63 = vrot.slane %v5043_v10, 2  ;;  %v5124_v42 = vld [vmem:[%s7023_s0 + $0xcc] sm:$0xff] }
 0x1dd   :  { %v5057_v56 = vpop.permute.xlu0 %922  ;;  %v1190_v12 = vsel %vm1168_vm14, %v1153_v47, %v4873_v40  ;;  %v2521_v32 = vsel %vm872_vm5, %v7242_v24, %v2520_v44 }
 0x1e0   :  { %3395 = vmatmul.msk.bf16.gmra.mxu0 %vm1282_vm7, %v1245_v57  ;;  %v7241_v57 = vld [vmem:[#allocation30_spill] sm:$0xff] }
 0x1e2   :  { %2316 = vrot.lane.b32.xlu2 %v2281_v43, %s3765_s12  ;;  %2243 = vrot.lane.b32.xlu1 %v2166_v62, %s3764_s11  ;;  %v1879_v43 = vrot.slane %v4931_v25, 1  ;;  %v989_v62 = vsel %vm983_vm9, %v952_v20, %v7241_v57 }
 0x1e3   :  { %2362 = vrot.lane.b32.xlu0 %v5073_v33, %s3766_s13  ;;  %v1026_v39 = vsel %vm1020_vm10, %v989_v62, %v4323_v29  ;;  %v2167_v29 = vrot.slane %v5046_v36, 1 }
 0x1e4   :  { %v931_v5 = vpop.permute.xlu1 %930  ;;  %v5090_v35 = vpop.permute.xlu2 %1473  ;;  %v1063_v61 = vsel %vm1057_vm11, %v1026_v39, %v4423_v18  ;;  %v1880_v6 = vsel %vm203_vm0, %v1875_v34, %v1879_v43  ;;  %v7243_v18 = vld [vmem:[#allocation21_spill] sm:$0xff]  ;;  %v2044_v34 = vrot.slane %v5028_v58, 1 }
 0x1e5   :  { %v1227_v11 = vsel %vm1205_vm15, %v1190_v12, %v931_v5  ;;  %v5098_v16 = vpop.permute.xlu0 %928  ;;  %v1100_v47 = vsel %vm1094_vm12, %v1063_v61, %v4498_v8  ;;  %v970_v12 = vsel %vm946_vm8, %v4671_v45, %v7243_v18  ;;  %v5145_v20 = vor.u32 %v2168_v63, %v2167_v29 }
 0x1e6   :  { %v1254_v40 = vsel %vm1242_vm6, %v1227_v11, 1065369472  ;;  %v1137_v37 = vsel %vm1131_vm13, %v1100_v47, %v4620_v14  ;;  %v5148_v11 = vshll.u32 %v5124_v42, 16  ;;  %v5151_v45 = vshrl.u32 %v5124_v42, 16 }
 0x1e7   :  { %3404 = vmatmul.msk.bf16.vlgmr.msra.gmra.mxu3 %vm1282_vm7, %v1254_v40  ;;  %v1174_v5 = vsel %vm1168_vm14, %v1137_v37, %v4760_v4  ;;  %v7244_v4 = vld [vmem:[#allocation39_spill] sm:$0xff]  ;;  %v7245_v40 = vld [vmem:[#allocation12_spill] sm:$0xff]  ;;  %v2170_v61 = vsel %vm508_vm2, %v5040_v30, %v5145_v20  ;;  %v7246_v30 = vld [vmem:[#allocation25_spill] sm:$0xff] }
 0x1e8   :  { %v1211_v8 = vsel %vm1205_vm15, %v1174_v5, %v4871_v15  ;;  %v1007_v57 = vsel %vm983_vm9, %v970_v12, %v7244_v4  ;;  %v954_v63 = vsel %vm946_vm8, %v4617_v49, %v7246_v30  ;;  %v7247_v37 = vld [vmem:[#allocation43_spill] sm:$0xff] }
 0x1e9   :  { %v1044_v39 = vsel %vm1020_vm10, %v1007_v57, %v7245_v40  ;;  %v1246_v24 = vsel %vm1242_vm6, %v1211_v8, 1065369472 }
 0x1ea   :  { %2556 = vrot.lane.b32.xlu2 %v2521_v32, %s3768_s25  ;;  %2483 = vrot.lane.b32.xlu1 %v2406_v7, %s3767_s16  ;;  %v1081_v15 = vsel %vm1057_vm11, %v1044_v39, %v4454_v50  ;;  %v2045_v32 = vsel %vm388_vm1, %v2042_v54, %v2044_v34  ;;  %v2408_v50 = vrot.slane %v5148_v11, 3  ;;  %v2284_v54 = vrot.slane %v5124_v42, 2  ;;  %v7249_v39 = vld [vmem:[#allocation35_spill] sm:$0xff] }
 0x1eb   :  { %2005 = vrot.lane.b32.xlu0 %v1880_v6, %s3761_s27  ;;  %v1118_v7 = vsel %vm1094_vm12, %v1081_v15, %v4552_v31  ;;  %v2407_v6 = vrot.slane %v5151_v45, 2 }
 0x1ec   :  { %v5141_v23 = vpop.permute.xlu1 %936  ;;  %v5143_v14 = vpop.permute.xlu2 %1483  ;;  %v1155_v29 = vsel %vm1131_vm13, %v1118_v7, %v4707_v27  ;;  %v2285_v49 = vsel %vm630_vm3, %v2282_v21, %v2284_v54  ;;  %v7066_v21 = vrot.slane %v5043_v10, 1 }
 0x1ed   :  { %v935_v62 = vpop.permute.xlu0 %934  ;;  %v1192_v60 = vsel %vm1168_vm14, %v1155_v29, %v4805_v53  ;;  %v5191_v53 = vor.u32 %v2408_v50, %v2407_v6  ;;  %v2171_v6 = vrot.slane %v5151_v45, 1 }
 0x1ee   :  { %v1229_v31 = vsel %vm1205_vm15, %v1192_v60, %v4975_v52  ;;  %v7248_v52 = vld [vmem:[#allocation15_spill] sm:$0xff]  ;;  %v7252_v60 = vld [vmem:[#allocation106_spill] sm:$0xff] }
 0x1ef   :  { %v1255_v5 = vsel %vm1242_vm6, %v1229_v31, 1065369472  ;;  %v2410_v57 = vsel %vm750_vm4, %v5086_v3, %v5191_v53  ;;  %v7250_v3 = vld [vmem:[#allocation49_spill] sm:$0xff] }
 0x1f0   :  { %3396 = vmatmul.msk.bf16.gmra.mxu0 %vm1282_vm7, %v1246_v24 }
 0x1f2   :  { %2124 = vrot.lane.b32.xlu2 %v2045_v32, %s3763_s29  ;;  %2078 = vrot.lane.b32.xlu1 %v5023_v17, %s3762_s28  ;;  %v991_v17 = vsel %vm983_vm9, %v954_v63, %v7247_v37  ;;  %v7253_v37 = vld [vmem:[#allocation18_spill] sm:$0xff] }
 0x1f3   :  { %2245 = vrot.lane.b32.xlu0 %v2170_v61, %s3764_s11  ;;  %v1028_v12 = vsel %vm1020_vm10, %v991_v17, %v7248_v52  ;;  %v7254_v17 = vld [vmem:[#allocation74_spill] sm:$0xff] }
 0x1f4   :  { %v5187_v27 = vpop.permute.xlu1 %942  ;;  %v5189_v47 = vpop.permute.xlu2 %1498  ;;  %v1065_v8 = vsel %vm1057_vm11, %v1028_v12, %v4470_v13  ;;  %v972_v13 = vsel %vm946_vm8, %v4704_v48, %v7249_v39  ;;  %v2522_v48 = vrot.slane %v5124_v42, 3  ;;  %v956_v52 = vsel %vm946_vm8, %v7254_v17, %v7253_v37  ;;  %v7265_v17 = vld [vmem:[#allocation54_spill] sm:$0xff] }
 0x1f5   :  { %v5195_v18 = vpop.permute.xlu0 %940  ;;  %v1102_v4 = vsel %vm1094_vm12, %v1065_v8, %v4578_v26  ;;  %v7256_v8 = vld [vmem:[#allocation42_spill] sm:$0xff] }
 0x1f6   :  { %v1139_v40 = vsel %vm1131_vm13, %v1102_v4, %v4735_v19  ;;  %v1883_v19 = vor.u32 %v4934_v41, %v1879_v43  ;;  %v5247_v43 = vld [vmem:[%s7023_s0 + $0xd4] sm:$0xff]  ;;  %v993_v4 = vsel %vm983_vm9, %v956_v52, %v7256_v8 }
 0x1f7   :  { %3405 = vmatmul.msk.bf16.gmra.mxu3 %vm1282_vm7, %v1255_v5  ;;  %v1176_v15 = vsel %vm1168_vm14, %v1139_v40, %v4828_v55  ;;  %v1009_v55 = vsel %vm983_vm9, %v972_v13, %v7250_v3  ;;  %v5272_v30 = vshrl.u32 %v5247_v43, 16 }
 0x1f8   :  { %v1213_v26 = vsel %vm1205_vm15, %v1176_v15, %v5007_v0  ;;  %v1046_v0 = vsel %vm1020_vm10, %v1009_v55, %v4438_v1  ;;  %v1888_v61 = vsel %vm203_vm0, %v1883_v19, %v7066_v21  ;;  %v2523_v1 = vsel %vm872_vm5, %v2520_v44, %v2522_v48  ;;  %v7258_v15 = vld [vmem:[#allocation59_spill] sm:$0xff]  ;;  %v5311_v55 = vld [vmem:[%s7023_s0 + $0xf4] sm:$0xff] }
 0x1f9   :  { %v1083_v25 = vsel %vm1057_vm11, %v1046_v0, %v4520_v38  ;;  %v1247_v41 = vsel %vm1242_vm6, %v1213_v26, 1065369472  ;;  %v2172_v38 = vrot.slane %v5148_v11, 2  ;;  %v5269_v44 = vshll.u32 %v5247_v43, 16  ;;  %v7259_v0 = vld [vmem:[#allocation70_spill] sm:$0xff] }
 0x1fa   :  { %2364 = vrot.lane.b32.xlu2 %v2285_v49, %s3766_s13  ;;  %2318 = vrot.lane.b32.xlu1 %v5073_v33, %s3765_s12  ;;  %v1120_v50 = vsel %vm1094_vm12, %v1083_v25, %v4654_v28  ;;  %v2411_v39 = vrot.slane %v5272_v30, 2  ;;  %v5339_v37 = vshll.u32 %v5311_v55, 16 }
 0x1fb   :  { %2485 = vrot.lane.b32.xlu0 %v2410_v57, %s3767_s16  ;;  %v1157_v29 = vsel %vm1131_vm13, %v1120_v50, %v4779_v2  ;;  %v5276_v63 = vor.u32 %v2172_v38, %v2171_v6  ;;  %v7063_v2 = vrot.slane %v5124_v42, 1  ;;  %v2412_v13 = vrot.slane %v5269_v44, 3  ;;  %v7263_v38 = vld [vmem:[#allocation98_spill] sm:$0xff]  ;;  %v7264_v50 = vld [vmem:[#allocation48_spill] sm:$0xff] }
 0x1fc   :  { %v5233_v24 = vpop.permute.xlu2 %1513  ;;  %v5235_v7 = vpop.permute.xlu1 %1468  ;;  %v1194_v31 = vsel %vm1168_vm14, %v1157_v29, %v7252_v60 }
 0x1fd   :  { %7251 = vst [vmem:[#allocation23_spill] sm:$0xff] %v5233_v24  ;;  %v5239_v33 = vpop.permute.xlu0 %1463  ;;  %v1231_v28 = vsel %vm1205_vm15, %v1194_v31, %v935_v62  ;;  %v7257_v62 = vld [vmem:[#allocation10_spill] sm:$0xff]  ;;  %v2174_v19 = vsel %vm508_vm2, %v5145_v20, %v5276_v63  ;;  %v5306_v3 = vsel %vm388_vm1, %v2044_v34, %v7063_v2  ;;  %v7262_v20 = vld [vmem:[#allocation83_spill] sm:$0xff]  ;;  %v5325_v34 = vor.u32 %v2412_v13, %v2411_v39  ;;  %v7285_v2 = vld [vmem:[#allocation92_spill] sm:$0xff] }
 0x1fe   :  { %v1256_v40 = vsel %vm1242_vm6, %v1231_v28, 1065369472  ;;  %v7061_v31 = vrot.slane %v5247_v43, 2  ;;  %v5336_v28 = vld [vmem:[%s7023_s0 + $0xfc] sm:$0xff] }
 0x200   :  { %3397 = vmatmul.msk.bf16.gmra.mxu0 %vm1282_vm7, %v1247_v41  ;;  %v7260_v41 = vld [vmem:[#allocation87_spill] sm:$0xff] }
 0x202   :  { %2007 = vrot.lane.b32.xlu2 %v1888_v61, %s3761_s27  ;;  %2558 = vrot.lane.b32.xlu1 %v2523_v1, %s3768_s25  ;;  %v7261_v1 = vld [vmem:[#allocation34_spill] sm:$0xff] }
 0x203   :  { %2080 = vrot.lane.b32.xlu0 %v2045_v32, %s3762_s28  ;;  %v1030_v32 = vsel %vm1020_vm10, %v993_v4, %v7257_v62  ;;  %v974_v6 = vsel %vm946_vm8, %v7262_v20, %v7261_v1 }
 0x204   :  { %v5282_v12 = vpop.permute.xlu2 %1528  ;;  %v5284_v5 = vpop.permute.xlu1 %1478  ;;  %v1067_v26 = vsel %vm1057_vm11, %v1030_v32, %v7258_v15  ;;  %v1011_v29 = vsel %vm983_vm9, %v974_v6, %v7264_v50  ;;  %v2414_v15 = vsel %vm750_vm4, %v5191_v53, %v5325_v34  ;;  %v7273_v53 = vld [vmem:[#allocation93_spill] sm:$0xff]  ;;  %v5386_v6 = vld [vmem:[%s7023_s0 + $0x104] sm:$0xff] }
 0x205   :  { %7255 = vst [vmem:[#allocation41_spill] sm:$0xff] %v5282_v12  ;;  %v5288_v57 = vpop.permute.xlu0 %1488  ;;  %v1104_v25 = vsel %vm1094_vm12, %v1067_v26, %v7259_v0  ;;  %v1048_v52 = vsel %vm1020_vm10, %v1011_v29, %v7265_v17  ;;  %v5363_v26 = vsel %vm630_vm3, %v2284_v54, %v7061_v31  ;;  %v5367_v0 = vshrl.u32 %v5311_v55, 16  ;;  %v7275_v50 = vld [vmem:[#allocation105_spill] sm:$0xff] }
 0x206   :  { %v1141_v61 = vsel %vm1131_vm13, %v1104_v25, %v7260_v41  ;;  %v5370_v25 = vshll.u32 %v5336_v28, 16  ;;  %v7271_v41 = vld [vmem:[#allocation19_spill] sm:$0xff]  ;;  %v5401_v17 = vshll.u32 %v5386_v6, 16 }
 0x207   :  { %3406 = vmatmul.msk.bf16.gmra.mxu3 %vm1282_vm7, %v1256_v40  ;;  %v1178_v58 = vsel %vm1168_vm14, %v1141_v61, %v7263_v38  ;;  %v7269_v40 = vld [vmem:[#allocation79_spill] sm:$0xff]  ;;  %v7274_v38 = vld [vmem:[#allocation33_spill] sm:$0xff] }
 0x208   :  { %v1215_v60 = vsel %vm1205_vm15, %v1178_v58, %v4999_v59  ;;  %v7060_v59 = vrot.slane %v5247_v43, 3  ;;  %7270 = vst [vmem:[#allocation31_spill] sm:$0xff] %v5370_v25  ;;  %v7272_v61 = vld [vmem:[#allocation75_spill] sm:$0xff] }
 0x209   :  { %v1248_v13 = vsel %vm1242_vm6, %v1215_v60, 1065369472  ;;  %v958_v1 = vsel %vm946_vm8, %v7272_v61, %v7271_v41  ;;  %v7064_v61 = vrot.slane %v5386_v6, 1 }
 0x20a   :  { %2247 = vrot.lane.b32.xlu2 %v2174_v19, %s3764_s11  ;;  %2126 = vrot.lane.b32.xlu1 %v5306_v3, %s3763_s29  ;;  %v7059_v19 = vrot.slane %v5339_v37, 1  ;;  %v2525_v54 = vsel %vm872_vm5, %v2522_v48, %v7060_v59  ;;  %v995_v58 = vsel %vm983_vm9, %v958_v1, %v7274_v38  ;;  %v5398_v48 = vshrl.u32 %v5336_v28, 16  ;;  %v7278_v1 = vld [vmem:[#allocation53_spill] sm:$0xff] }
 0x20b   :  { %2320 = vrot.lane.b32.xlu0 %v2285_v49, %s3765_s12  ;;  %v7267_v49 = vld [vmem:[#allocation65_spill] sm:$0xff] }
 0x20c   :  { %v5343_v8 = vpop.permute.xlu2 %1543  ;;  %v5345_v4 = vpop.permute.xlu1 %1493  ;;  %v1085_v62 = vsel %vm1057_vm11, %v1048_v52, %v7267_v49  ;;  %v5404_v52 = vshrl.u32 %v5386_v6, 16  ;;  %v7062_v49 = vrot.slane %v5311_v55, 1  ;;  %v2195_v38 = vrot.slane %v5398_v48, 1 }
 0x20d   :  { %7266 = vst [vmem:[#allocation26_spill] sm:$0xff] %v5343_v8  ;;  %v5350_v32 = vpop.permute.xlu0 %1503  ;;  %v1122_v39 = vsel %vm1094_vm12, %v1085_v62, %v7269_v40  ;;  %v1939_v62 = vor.u32 %v5367_v0, %v7059_v19  ;;  %v7065_v40 = vrot.slane %v5370_v25, 1 }
 0x20e   :  { %7268 = vst [vmem:[#allocation40_spill] sm:$0xff] %v5350_v32  ;;  %v1159_v20 = vsel %vm1131_vm13, %v1122_v39, %v7273_v53  ;;  %v7276_v39 = vld [vmem:[#allocation47_spill] sm:$0xff] }
 0x20f   :  { %v1196_v29 = vsel %vm1168_vm14, %v1159_v20, %v7275_v50  ;;  %v2196_v50 = vrot.slane %v5370_v25, 2 }
 0x210   :  { %3398 = vmatmul.msk.bf16.gmra.mxu0 %vm1282_vm7, %v1248_v13  ;;  %v1233_v60 = vsel %vm1205_vm15, %v1196_v29, %v5141_v23  ;;  %v2058_v23 = vrot.slane %v5336_v28, 1  ;;  %v1032_v13 = vsel %vm1020_vm10, %v995_v58, %v7276_v39  ;;  %v2199_v29 = vrot.slane %v5404_v52, 1  ;;  %v7280_v39 = vld [vmem:[#allocation64_spill] sm:$0xff] }
 0x211   :  { %v1069_v53 = vsel %vm1057_vm11, %v1032_v13, %v7278_v1  ;;  %v2200_v58 = vrot.slane %v5401_v17, 2  ;;  %v7282_v1 = vld [vmem:[#allocation78_spill] sm:$0xff] }
 0x212   :  { %2487 = vrot.lane.b32.xlu2 %v2414_v15, %s3767_s16  ;;  %2366 = vrot.lane.b32.xlu1 %v5363_v26, %s3766_s13  ;;  %v1106_v19 = vsel %vm1094_vm12, %v1069_v53, %v7280_v39  ;;  %v5435_v13 = vsel %vm388_vm1, %v7062_v49, %v2058_v23  ;;  %v5445_v31 = vsel %vm388_vm1, %v2058_v23, %v7064_v61  ;;  %v5450_v53 = vld [vmem:[%s7023_s0 + $0x10c] sm:$0xff]  ;;  %v7284_v39 = vld [vmem:[#allocation84_spill] sm:$0xff]  ;;  %v2298_v23 = vrot.slane %v5386_v6, 2 }
 0x213   :  { %2560 = vrot.lane.b32.xlu0 %v2525_v54, %s3768_s25  ;;  %v1257_v54 = vsel %vm1242_vm6, %v1233_v60, 1065369472  ;;  %7281 = vst [vmem:[#allocation21_spill] sm:$0xff] %v5435_v13  ;;  %v1944_v60 = vsel %vm203_vm0, %v1939_v62, %v7065_v40  ;;  %v1143_v59 = vsel %vm1131_vm13, %v1106_v19, %v7282_v1  ;;  %v5462_v1 = vor.u32 %v2196_v50, %v2195_v38  ;;  %v7287_v40 = vld [vmem:[#allocation16_spill] sm:$0xff] }
 0x214   :  { %v5415_v15 = vpop.permute.xlu2 %1558  ;;  %v5417_v41 = vpop.permute.xlu1 %1508  ;;  %v1180_v62 = vsel %vm1168_vm14, %v1143_v59, %v7285_v2  ;;  %v5464_v61 = vor.u32 %v2200_v58, %v2199_v29  ;;  %v5473_v2 = vshll.u32 %v5450_v53, 16  ;;  %v5476_v59 = vshrl.u32 %v5450_v53, 16 }
 0x215   :  { %7277 = vst [vmem:[#allocation22_spill] sm:$0xff] %v5415_v15  ;;  %v5422_v20 = vpop.permute.xlu0 %1518  ;;  %v7294_v15 = vrot.slane %v5336_v28, 2 }
 0x216   :  { %7279 = vst [vmem:[#allocation30_spill] sm:$0xff] %v5422_v20  ;;  %v2440_v8 = vrot.slane %v5473_v2, 3 }
 0x217   :  { %3407 = vmatmul.msk.bf16.gmra.mxu3 %vm1282_vm7, %v1257_v54  ;;  %v7283_v54 = vld [vmem:[#allocation24_spill] sm:$0xff]  ;;  %7286 = vst [vmem:[#allocation39_spill] sm:$0xff] %v5462_v1 }
 0x218   :  { %v976_v49 = vsel %vm946_vm8, %v7284_v39, %v7283_v54  ;;  %v7288_v54 = vld [vmem:[#allocation104_spill] sm:$0xff] }
 0x219   :  { %v1013_v21 = vsel %vm983_vm9, %v976_v49, %v7287_v40  ;;  %v1217_v39 = vsel %vm1205_vm15, %v1180_v62, %v7288_v54  ;;  %v7291_v40 = vld [vmem:[#allocation58_spill] sm:$0xff]  ;;  %v7293_v54 = vld [vmem:[#allocation69_spill] sm:$0xff]  ;;  %v2435_v49 = vrot.slane %v5404_v52, 2 }
 0x21a   :  { %2094 = vrot.lane.b32.xlu2 %v5435_v13, %s3762_s28  ;;  %2021 = vrot.lane.b32.xlu1 %v1944_v60, %s3761_s27  ;;  %v7289_v60 = vld [vmem:[#allocation14_spill] sm:$0xff]  ;;  %v1249_v13 = vsel %vm1242_vm6, %v1217_v39, 1065369472 }
 0x21b   :  { %2140 = vrot.lane.b32.xlu0 %v5445_v31, %s3763_s29  ;;  %v1050_v38 = vsel %vm1020_vm10, %v1013_v21, %v7289_v60  ;;  %v5495_v21 = vsel %vm630_vm3, %v7294_v15, %v2298_v23  ;;  %v2202_v60 = vsel %vm508_vm2, %v5462_v1, %v5464_v61  ;;  %v7297_v15 = vrot.slane %v5450_v53, 2 }
 0x21c   :  { %v5480_v50 = vpop.permute.xlu2 %2001  ;;  %v5482_v29 = vpop.permute.xlu1 %1523  ;;  %v1087_v58 = vsel %vm1057_vm11, %v1050_v38, %v7291_v40  ;;  %7295 = vst [vmem:[#allocation43_spill] sm:$0xff] %v5495_v21  ;;  %v2436_v38 = vrot.slane %v5401_v17, 3  ;;  %v2439_v40 = vrot.slane %v5476_v59, 2 }
 0x21d   :  { %7290 = vst [vmem:[#allocation12_spill] sm:$0xff] %v5482_v29  ;;  %v5487_v62 = vpop.permute.xlu0 %1533  ;;  %v1124_v19 = vsel %vm1094_vm12, %v1087_v58, %v7293_v54  ;;  %v7296_v58 = vld [vmem:[#allocation86_spill] sm:$0xff]  ;;  %v5510_v54 = vsel %vm630_vm3, %v2298_v23, %v7297_v15  ;;  %v7300_v23 = vrot.slane %v5043_v10, 1  ;;  %v7303_v15 = vld [vmem:[#allocation77_spill] sm:$0xff]  ;;  %v7306_v10 = vld [vmem:[#allocation51_spill] sm:$0xff]  ;;  %v7319_v29 = vrot.slane %v5450_v53, 3 }
 0x21e   :  { %7292 = vst [vmem:[#allocation25_spill] sm:$0xff] %v5487_v62  ;;  %v1161_v39 = vsel %vm1131_vm13, %v1124_v19, %v7296_v58  ;;  %v7298_v62 = vld [vmem:[#allocation97_spill] sm:$0xff]  ;;  %v5523_v19 = vor.u32 %v2440_v8, %v2439_v40 }
 0x21f   :  { %v1198_v1 = vsel %vm1168_vm14, %v1161_v39, %v7298_v62  ;;  %v1891_v58 = vor.u32 %v5046_v36, %v7300_v23  ;;  %v7076_v62 = vrot.slane %v5148_v11, 1 }
 0x220   :  { %3399 = vmatmul.msk.bf16.gmra.mxu0 %vm1282_vm7, %v1249_v13  ;;  %v1235_v12 = vsel %vm1205_vm15, %v1198_v1, %v4997_v22  ;;  %v5521_v13 = vor.u32 %v2436_v38, %v2435_v49  ;;  %v7302_v1 = vld [vmem:[#allocation29_spill] sm:$0xff] }
 0x221   :  { %v7305_v49 = vld [vmem:[#allocation45_spill] sm:$0xff]  ;;  %v1258_v38 = vsel %vm1242_vm6, %v1235_v12, 1065369472  ;;  %v1896_v23 = vsel %vm203_vm0, %v1891_v58, %v7076_v62  ;;  %v2176_v12 = vrot.slane %v5269_v44, 2  ;;  %v7311_v58 = vld [vmem:[#allocation90_spill] sm:$0xff] }
 0x222   :  { %2334 = vrot.lane.b32.xlu2 %v5495_v21, %s3765_s12  ;;  %2261 = vrot.lane.b32.xlu1 %v2202_v60, %s3764_s11  ;;  %7299 = vst [vmem:[#allocation15_spill] sm:$0xff] %v5521_v13  ;;  %v960_v60 = vsel %vm946_vm8, %v7303_v15, %v7302_v1  ;;  %v2442_v40 = vsel %vm750_vm4, %v5521_v13, %v5523_v19  ;;  %v7307_v1 = vld [vmem:[#allocation62_spill] sm:$0xff]  ;;  %v7310_v13 = vld [vmem:[#allocation85_spill] sm:$0xff] }
 0x223   :  { %2380 = vrot.lane.b32.xlu0 %v5510_v54, %s3766_s13  ;;  %v997_v8 = vsel %vm983_vm9, %v960_v60, %v7305_v49  ;;  %v2175_v60 = vrot.slane %v5272_v30, 1  ;;  %v5557_v49 = vld [vmem:[%s7023_s0 + $0xdc] sm:$0xff] }
 0x224   :  { %v5529_v39 = vpop.permute.xlu2 %2241  ;;  %v5531_v22 = vpop.permute.xlu1 %1538  ;;  %v1034_v36 = vsel %vm1020_vm10, %v997_v8, %v7306_v10  ;;  %v7308_v8 = vld [vmem:[#allocation73_spill] sm:$0xff]  ;;  %v7309_v10 = vld [vmem:[#allocation38_spill] sm:$0xff] }
 0x225   :  { %7301 = vst [vmem:[#allocation35_spill] sm:$0xff] %v5531_v22  ;;  %v5536_v21 = vpop.permute.xlu0 %1548  ;;  %v1071_v15 = vsel %vm1057_vm11, %v1034_v36, %v7307_v1  ;;  %v7312_v36 = vld [vmem:[#allocation101_spill] sm:$0xff]  ;;  %v7081_v22 = vrot.slane %v5247_v43, 1 }
 0x226   :  { %7304 = vst [vmem:[#allocation49_spill] sm:$0xff] %v5536_v21  ;;  %v978_v21 = vsel %vm946_vm8, %v7310_v13, %v7309_v10  ;;  %v7314_v10 = vld [vmem:[#allocation8_spill] sm:$0xff] }
 0x227   :  { %3408 = vmatmul.msk.bf16.gmra.mxu3 %vm1282_vm7, %v1258_v38  ;;  %v1108_v38 = vsel %vm1094_vm12, %v1071_v15, %v7308_v8  ;;  %v7316_v15 = vld [vmem:[#allocation57_spill] sm:$0xff] }
 0x228   :  { %v1145_v62 = vsel %vm1131_vm13, %v1108_v38, %v7311_v58  ;;  %v1015_v58 = vsel %vm983_vm9, %v978_v21, %v7314_v10  ;;  %v7320_v21 = vrot.slane %v5386_v6, 3 }
 0x229   :  { %v1182_v1 = vsel %vm1168_vm14, %v1145_v62, %v7312_v36  ;;  %v5584_v62 = vshll.u32 %v5557_v49, 16 }
 0x22a   :  { %2501 = vrot.lane.b32.xlu2 %v2442_v40, %s3767_s16  ;;  %2009 = vrot.lane.b32.xlu1 %v1896_v23, %s3761_s27  ;;  %v1219_v13 = vsel %vm1205_vm15, %v1182_v1, %v5057_v56  ;;  %v5581_v23 = vor.u32 %v2176_v12, %v2175_v60  ;;  %v1052_v56 = vsel %vm1020_vm10, %v1015_v58, %v7316_v15  ;;  %v7317_v1 = vld [vmem:[#allocation68_spill] sm:$0xff]  ;;  %v7318_v12 = vrot.slane %v5124_v42, 1 }
 0x22b   :  { %2082 = vrot.lane.b32.xlu0 %v5306_v3, %s3762_s28  ;;  %v5587_v3 = vshrl.u32 %v5557_v49, 16  ;;  %v1089_v8 = vsel %vm1057_vm11, %v1052_v56, %v7317_v1  ;;  %v1250_v60 = vsel %vm1242_vm6, %v1219_v13, 1065369472  ;;  %v2539_v10 = vsel %vm872_vm5, %v7320_v21, %v7319_v29  ;;  %v7322_v56 = vld [vmem:[#allocation96_spill] sm:$0xff]  ;;  %v3689_v29 = vld [vmem:[%s7023_s0 + $0x38] sm:$0xff] }
 0x22c   :  { %v5577_v38 = vpop.permute.xlu2 %2481  ;;  %v5579_v40 = vpop.permute.xlu1 %1553  ;;  %v2178_v13 = vsel %vm508_vm2, %v5276_v63, %v5581_v23  ;;  %v2416_v58 = vrot.slane %v5584_v62, 3  ;;  %v7324_v63 = vld [vmem:[#allocation28_spill] sm:$0xff] }
 0x22d   :  { %7313 = vst [vmem:[#allocation106_spill] sm:$0xff] %v5579_v40  ;;  %v5591_v36 = vpop.permute.xlu0 %1563  ;;  %v5603_v40 = vsel %vm388_vm1, %v7318_v12, %v7081_v22  ;;  %v2415_v42 = vrot.slane %v5587_v3, 2  ;;  %v7323_v12 = vld [vmem:[#allocation109_spill] sm:$0xff]  ;;  %v7325_v21 = vld [vmem:[#allocation44_spill] sm:$0xff] }
 0x22e   :  { %7315 = vst [vmem:[#allocation18_spill] sm:$0xff] %v5591_v36  ;;  %v7321_v36 = vld [vmem:[#allocation82_spill] sm:$0xff] }
 0x22f   :  { %v1126_v15 = vsel %vm1094_vm12, %v1089_v8, %v7321_v36  ;;  %v962_v8 = vsel %vm946_vm8, %v3689_v29, %v7324_v63  ;;  %v7328_v63 = vld [vmem:[#allocation61_spill] sm:$0xff] }
 0x230   :  { %3400 = vmatmul.msk.bf16.gmra.mxu0 %vm1282_vm7, %v1250_v60  ;;  %v1163_v1 = vsel %vm1131_vm13, %v1126_v15, %v7322_v56  ;;  %v999_v15 = vsel %vm983_vm9, %v962_v8, %v7325_v21  ;;  %v7330_v8 = vrot.slane %v5557_v49, 2  ;;  %v7331_v21 = vrot.slane %v5247_v43, 2 }
 0x231   :  { %v1200_v22 = vsel %vm1168_vm14, %v1163_v1, %v7323_v12  ;;  %v5640_v1 = vor.u32 %v2416_v58, %v2415_v42  ;;  %v7327_v12 = vld [vmem:[#allocation50_spill] sm:$0xff]  ;;  %v7332_v58 = vld [vmem:[#allocation89_spill] sm:$0xff] }
 0x232   :  { %2128 = vrot.lane.b32.xlu2 %v5603_v40, %s3763_s29  ;;  %2574 = vrot.lane.b32.xlu1 %v2539_v10, %s3768_s25  ;;  %v1237_v36 = vsel %vm1205_vm15, %v1200_v22, %v5195_v18  ;;  %v1036_v20 = vsel %vm1020_vm10, %v999_v15, %v7327_v12  ;;  %v5655_v42 = vsel %vm630_vm3, %v7331_v21, %v7330_v8  ;;  %v7333_v12 = vld [vmem:[#allocation102_spill] sm:$0xff] }
 0x233   :  { %2249 = vrot.lane.b32.xlu0 %v2178_v13, %s3764_s11  ;;  %v1073_v18 = vsel %vm1057_vm11, %v1036_v20, %v7328_v63  ;;  %v1259_v22 = vsel %vm1242_vm6, %v1237_v36, 1065369472  ;;  %v7329_v13 = vld [vmem:[#allocation72_spill] sm:$0xff]  ;;  %v2591_v20 = vsel %vm946_vm8, %v7333_v12, %v5480_v50  ;;  %v2418_v36 = vsel %vm750_vm4, %v5325_v34, %v5640_v1  ;;  %v7337_v12 = vld [vmem:[#allocation11_spill] sm:$0xff] }
 0x234   :  { %v5636_v56 = vpop.permute.xlu2 %2076  ;;  %v5638_v10 = vpop.permute.xlu1 %1568  ;;  %v1110_v60 = vsel %vm1094_vm12, %v1073_v18, %v7329_v13  ;;  %v7334_v63 = vld [vmem:[#allocation100_spill] sm:$0xff]  ;;  %v7335_v13 = vld [vmem:[#allocation37_spill] sm:$0xff]  ;;  %v7336_v50 = vrot.slane %v5370_v25, 1 }
 0x235   :  { %7326 = vst [vmem:[#allocation74_spill] sm:$0xff] %v5638_v10  ;;  %v2075_v29 = vpop.permute.xlu0 %2074  ;;  %v1147_v15 = vsel %vm1131_vm13, %v1110_v60, %v7332_v58  ;;  %v7085_v58 = vrot.slane %v5401_v17, 1  ;;  %v7342_v25 = vld [vmem:[#allocation81_spill] sm:$0xff] }
 0x236   :  { %v1184_v18 = vsel %vm1168_vm14, %v1147_v15, %v7334_v63  ;;  %v2627_v34 = vsel %vm983_vm9, %v2591_v20, %v2075_v29  ;;  %v1947_v21 = vor.u32 %v5398_v48, %v7336_v50  ;;  %v7339_v20 = vld [vmem:[#allocation67_spill] sm:$0xff] }
 0x237   :  { %3409 = vmatmul.msk.bf16.gmra.mxu3 %vm1282_vm7, %v1259_v22  ;;  %v3690_v22 = vld [vmem:[%s7023_s0 + $0x80] sm:$0xff]  ;;  %v1221_v60 = vsel %vm1205_vm15, %v1184_v18, %v5051_v46 }
 0x238   :  { %v980_v8 = vsel %vm946_vm8, %v3690_v22, %v7335_v13  ;;  %v7338_v22 = vld [vmem:[#allocation56_spill] sm:$0xff]  ;;  %v1251_v50 = vsel %vm1242_vm6, %v1221_v60, 1065369472  ;;  %v1952_v15 = vsel %vm203_vm0, %v1947_v21, %v7085_v58  ;;  %v5711_v60 = vld [vmem:[%s7023_s0 + $0x114] sm:$0xff] }
 0x239   :  { %v1017_v46 = vsel %vm983_vm9, %v980_v8, %v7337_v12  ;;  %v7340_v8 = vrot.slane %v5557_v49, 3  ;;  %v7341_v12 = vrot.slane %v5247_v43, 3 }
 0x23a   :  { %2368 = vrot.lane.b32.xlu2 %v5655_v42, %s3766_s13  ;;  %2322 = vrot.lane.b32.xlu1 %v5363_v26, %s3765_s12  ;;  %v1054_v26 = vsel %vm1020_vm10, %v1017_v46, %v7338_v22  ;;  %v2203_v46 = vrot.slane %v5476_v59, 1  ;;  %v2204_v22 = vrot.slane %v5473_v2, 2 }
 0x23b   :  { %2489 = vrot.lane.b32.xlu0 %v2418_v36, %s3767_s16  ;;  %v1091_v36 = vsel %vm1057_vm11, %v1054_v26, %v7339_v20  ;;  %v2527_v10 = vsel %vm872_vm5, %v7341_v12, %v7340_v8  ;;  %v7344_v20 = vld [vmem:[#allocation108_spill] sm:$0xff] }
 0x23c   :  { %v5687_v63 = vpop.permute.xlu2 %2316  ;;  %v2121_v18 = vpop.permute.xlu1 %2120  ;;  %v1128_v26 = vsel %vm1094_vm12, %v1091_v36, %v7342_v25  ;;  %v5725_v36 = vor.u32 %v2204_v22, %v2203_v46 }
 0x23d   :  { %v2315_v29 = vpop.permute.xlu0 %2314  ;;  %v2663_v13 = vsel %vm1020_vm10, %v2627_v34, %v2121_v18  ;;  %v7343_v34 = vld [vmem:[#allocation95_spill] sm:$0xff] }
 0x23e   :  { %v1165_v21 = vsel %vm1131_vm13, %v1128_v26, %v7343_v34  ;;  %v2699_v18 = vsel %vm1057_vm11, %v2663_v13, %v5529_v39  ;;  %v5732_v26 = vshll.u32 %v5711_v60, 16 }
 0x23f   :  { %v1202_v8 = vsel %vm1168_vm14, %v1165_v21, %v7344_v20  ;;  %v2735_v12 = vsel %vm1094_vm12, %v2699_v18, %v2315_v29  ;;  %v7346_v29 = vld [vmem:[#allocation36_spill] sm:$0xff]  ;;  %v7347_v20 = vld [vmem:[#allocation9_spill] sm:$0xff] }
 0x240   :  { %3401 = vmatmul.msk.bf16.gmra.mxu0 %vm1282_vm7, %v1251_v50  ;;  %v1239_v25 = vsel %vm1205_vm15, %v1202_v8, %v5187_v27  ;;  %v7086_v50 = vrot.slane %v5450_v53, 1  ;;  %v3691_v27 = vld [vmem:[%s7023_s0 + $0x40] sm:$0xff] }
 0x241   :  { %v1260_v18 = vsel %vm1242_vm6, %v1239_v25, 1065369472 }
 0x242   :  { %2023 = vrot.lane.b32.xlu2 %v1952_v15, %s3761_s27  ;;  %2562 = vrot.lane.b32.xlu1 %v2527_v10, %s3768_s25  ;;  %v5735_v10 = vshrl.u32 %v5711_v60, 16 }
 0x243   :  { %2096 = vrot.lane.b32.xlu0 %v5445_v31, %s3762_s28  ;;  %v7345_v31 = vld [vmem:[#allocation20_spill] sm:$0xff] }
 0x244   :  { %v5729_v39 = vpop.permute.xlu2 %2556  ;;  %v2361_v13 = vpop.permute.xlu1 %2360  ;;  %v964_v15 = vsel %vm946_vm8, %v3691_v27, %v7345_v31 }
 0x245   :  { %v2771_v46 = vsel %vm1131_vm13, %v2735_v12, %v2361_v13  ;;  %v2555_v22 = vpop.permute.xlu0 %2554  ;;  %v1001_v34 = vsel %vm983_vm9, %v964_v15, %v7346_v29  ;;  %v2206_v12 = vsel %vm508_vm2, %v5464_v61, %v5725_v36  ;;  %v7348_v13 = vrot.slane %v5386_v6, 1  ;;  %v3692_v61 = vld [vmem:[%s7023_s0 + $0x88] sm:$0xff] }
 0x246   :  { %v2807_v21 = vsel %vm1168_vm14, %v2771_v46, %v5577_v38  ;;  %v1038_v8 = vsel %vm1020_vm10, %v1001_v34, %v7347_v20  ;;  %v7349_v38 = vld [vmem:[#allocation55_spill] sm:$0xff]  ;;  %v2443_v15 = vrot.slane %v5735_v10, 2  ;;  %v2444_v46 = vrot.slane %v5732_v26, 3 }
 0x247   :  { %v2843_v58 = vsel %vm1205_vm15, %v2807_v21, %v2555_v22  ;;  %3410 = vmatmul.msk.bf16.gmra.mxu3 %vm1282_vm7, %v1260_v18  ;;  %v5760_v27 = vsel %vm388_vm1, %v7348_v13, %v7086_v50  ;;  %v1075_v25 = vsel %vm1057_vm11, %v1038_v8, %v7349_v38  ;;  %v7350_v22 = vld [vmem:[#allocation66_spill] sm:$0xff]  ;;  %v7351_v34 = vld [vmem:[#allocation27_spill] sm:$0xff]  ;;  %v7352_v18 = vld [vmem:[#allocation80_spill] sm:$0xff]  ;;  %v7354_v13 = vrot.slane %v5148_v11, 1 }
 0x248   :  { %v2878_v31 = vsel %vm1242_vm6, %v2843_v58, 1065369472  ;;  %v1112_v29 = vsel %vm1094_vm12, %v1075_v25, %v7350_v22  ;;  %v982_v21 = vsel %vm946_vm8, %v3692_v61, %v7351_v34  ;;  %v7353_v58 = vld [vmem:[#allocation94_spill] sm:$0xff]  ;;  %v7087_v25 = vrot.slane %v5269_v44, 1  ;;  %v7355_v22 = vld [vmem:[#allocation17_spill] sm:$0xff] }
 0x249   :  { %3525 = vmatmul.msk.bf16.vlgmr.msra.gmra.mxu1 %vm1282_vm7, %v2878_v31  ;;  %v1149_v20 = vsel %vm1131_vm13, %v1112_v29, %v7352_v18  ;;  %v1899_v38 = vor.u32 %v5151_v45, %v7354_v13  ;;  %v7356_v29 = vld [vmem:[#allocation107_spill] sm:$0xff]  ;;  %v7358_v13 = vld [vmem:[#allocation60_spill] sm:$0xff] }
 0x24a   :  { %2263 = vrot.lane.b32.xlu2 %v2206_v12, %s3764_s11  ;;  %2142 = vrot.lane.b32.xlu1 %v5760_v27, %s3763_s29  ;;  %v1186_v8 = vsel %vm1168_vm14, %v1149_v20, %v7353_v58  ;;  %v1019_v12 = vsel %vm983_vm9, %v982_v21, %v7355_v22  ;;  %v5795_v20 = vor.u32 %v2444_v46, %v2443_v15  ;;  %v7359_v15 = vrot.slane %v5711_v60, 2 }
 0x24b   :  { %2336 = vrot.lane.b32.xlu0 %v5510_v54, %s3765_s12  ;;  %v1223_v61 = vsel %vm1205_vm15, %v1186_v8, %v7356_v29  ;;  %v7357_v54 = vld [vmem:[#allocation13_spill] sm:$0xff]  ;;  %v1904_v8 = vsel %vm203_vm0, %v1899_v38, %v7087_v25  ;;  %v7360_v46 = vrot.slane %v5450_v53, 2  ;;  %v7363_v38 = vld [vmem:[#allocation99_spill] sm:$0xff] }
 0x24c   :  { %v5793_v34 = vpop.permute.xlu2 %2124  ;;  %v2004_v18 = vpop.permute.xlu1 %2003  ;;  %v1056_v11 = vsel %vm1020_vm10, %v1019_v12, %v7357_v54  ;;  %v1252_v21 = vsel %vm1242_vm6, %v1223_v61, 1065369472  ;;  %v7361_v12 = vld [vmem:[#allocation71_spill] sm:$0xff]  ;;  %v7362_v61 = vld [vmem:[#allocation88_spill] sm:$0xff] }
 0x24d   :  { %v1335_v58 = vpop.f32.mrf.mxu0  ;;  %v2123_v45 = vpop.permute.xlu0 %2122  ;;  %v1093_v50 = vsel %vm1057_vm11, %v1056_v11, %v7358_v13  ;;  %v2593_v31 = vsel %vm946_vm8, %v4868_v51, %v2004_v18  ;;  %v5812_v22 = vsel %vm630_vm3, %v7360_v46, %v7359_v15  ;;  %v2446_v51 = vsel %vm750_vm4, %v5523_v19, %v5795_v20  ;;  %v3693_v13 = vld [vmem:[%s7023_s0 + $0x48] sm:$0xff] }
 0x24e   :  { %v1130_v29 = vsel %vm1094_vm12, %v1093_v50, %v7361_v12  ;;  %v2629_v11 = vsel %vm983_vm9, %v2593_v31, %v5636_v56  ;;  %v2540_v19 = vrot.slane %v5711_v60, 3  ;;  %v1425_v56 = vmax.f32 %v1335_v58, 0.0  ;;  %v7365_v12 = vld [vmem:[#allocation46_spill] sm:$0xff] }
 0x24f   :  { %v1167_v18 = vsel %vm1131_vm13, %v1130_v29, %v7362_v61  ;;  %v2050_v46 = vrot.slane %v5557_v49, 1  ;;  %v2665_v29 = vsel %vm1020_vm10, %v2629_v11, %v2123_v45  ;;  %v2179_v11 = vrot.slane %v5587_v3, 1 }
 0x250   :  { %3402 = vmatmul.msk.bf16.gmra.mxu0 %vm1282_vm7, %v1252_v21  ;;  %v1204_v54 = vsel %vm1168_vm14, %v1167_v18, %v7363_v38  ;;  %v7364_v21 = vld [vmem:[#allocation32_spill] sm:$0xff] }
 0x251   :  { %v1241_v50 = vsel %vm1205_vm15, %v1204_v54, %v5049_v9  ;;  %v966_v15 = vsel %vm946_vm8, %v3693_v13, %v7364_v21  ;;  %v7366_v18 = vld [vmem:[#allocation52_spill] sm:$0xff]  ;;  %v7367_v13 = vld [vmem:[#allocation63_spill] sm:$0xff] }
 0x252   :  { %2011 = vrot.lane.b32.xlu2 %v1904_v8, %s3761_s27  ;;  %2382 = vrot.lane.b32.xlu1 %v5812_v22, %s3766_s13  ;;  %v1003_v9 = vsel %vm983_vm9, %v966_v15, %v7365_v12  ;;  %v1261_v58 = vsel %vm1242_vm6, %v1241_v50, 1065369472  ;;  %v7368_v15 = vrot.slane %v5450_v53, 3  ;;  %v2180_v12 = vrot.slane %v5584_v62, 2 }
 0x253   :  { %2503 = vrot.lane.b32.xlu0 %v2446_v51, %s3767_s16  ;;  %v1040_v38 = vsel %vm1020_vm10, %v1003_v9, %v7366_v18  ;;  %v7369_v9 = vld [vmem:[#allocation76_spill] sm:$0xff]  ;;  %v1641_v50 = vmul.f32 %v5239_v33, %v1425_v56 }
 0x254   :  { %v5838_v31 = vpop.permute.xlu2 %2364  ;;  %v2244_v8 = vpop.permute.xlu1 %2243  ;;  %v1077_v21 = vsel %vm1057_vm11, %v1040_v38, %v7367_v13  ;;  %v2541_v45 = vsel %vm872_vm5, %v7368_v15, %v2540_v19  ;;  %v5872_v38 = vld [vmem:[%s7023_s0 + $0xe4] sm:$0xff] }
 0x255   :  { %v1337_v51 = vpop.f32.mrf.mxu0  ;;  %v2363_v61 = vpop.permute.xlu0 %2362  ;;  %v2701_v25 = vsel %vm1057_vm11, %v2665_v29, %v2244_v8  ;;  %v1114_v8 = vsel %vm1094_vm12, %v1077_v21, %v7369_v9  ;;  %v7372_v21 = vld [vmem:[#allocation103_spill] sm:$0xff]  ;;  %v5887_v9 = vor.u32 %v2180_v12, %v2179_v11 }
 0x256   :  { %v1426_v54 = vmax.f32 %v1337_v51, 0.0  ;;  %v7370_v51 = vrot.slane %v5247_v43, 1  ;;  %v2737_v56 = vsel %vm1094_vm12, %v2701_v25, %v5687_v63  ;;  %v5893_v63 = vshrl.u32 %v5872_v38, 16 }
 0x257   :  { %3411 = vmatmul.msk.bf16.gmra.mxu3 %vm1282_vm7, %v1261_v58  ;;  %v7371_v58 = vld [vmem:[#allocation91_spill] sm:$0xff]  ;;  %v2773_v25 = vsel %vm1131_vm13, %v2737_v56, %v2363_v61  ;;  %v2182_v61 = vsel %vm508_vm2, %v5581_v23, %v5887_v9  ;;  %v2528_v23 = vrot.slane %v5872_v38, 3 }
 0x258   :  { %v1642_v29 = vmul.f32 %v5235_v7, %v1426_v54  ;;  %v5867_v18 = vsel %vm388_vm1, %v7370_v51, %v2050_v46  ;;  %v1151_v13 = vsel %vm1131_vm13, %v1114_v8, %v7371_v58  ;;  %v5890_v8 = vshll.u32 %v5872_v38, 16 }
 0x259   :  { %v1188_v54 = vsel %vm1168_vm14, %v1151_v13, %v7372_v21  ;;  %v2419_v56 = vrot.slane %v5893_v63, 2 }
 0x25a   :  { %v1677_v15 = vadd.f32 %v1642_v29, %v1641_v50  ;;  %2576 = vrot.lane.b32.xlu2 %v2541_v45, %s3768_s25  ;;  %2084 = vrot.lane.b32.xlu1 %v5603_v40, %s3762_s28  ;;  %v1225_v43 = vsel %vm1205_vm15, %v1188_v54, %v5098_v16  ;;  %v2290_v40 = vrot.slane %v5872_v38, 2  ;;  %v2420_v21 = vrot.slane %v5890_v8, 3 }
 0x25b   :  { %2130 = vrot.lane.b32.xlu0 %v5867_v18, %s3763_s29  ;;  %v1253_v11 = vsel %vm1242_vm6, %v1225_v43, 1065369472 }
 0x25c   :  { %v5896_v45 = vpop.permute.xlu2 %2007  ;;  %v2484_v50 = vpop.permute.xlu1 %2483 }
 0x25d   :  { %v1340_v29 = vpop.f32.mrf.mxu0  ;;  %v2809_v16 = vsel %vm1168_vm14, %v2773_v25, %v2484_v50  ;;  %v2006_v51 = vpop.permute.xlu0 %2005  ;;  %v5925_v50 = vor.u32 %v2420_v21, %v2419_v56  ;;  %v7375_v21 = vrot.slane %v5557_v49, 3 }
 0x25e   :  { %v1427_v58 = vmax.f32 %v1340_v29, 0.0  ;;  %v2845_v12 = vsel %vm1205_vm15, %v2809_v16, %v5729_v39  ;;  %v7373_v39 = vrot.slane %v5557_v49, 2  ;;  %v3694_v29 = vld [vmem:[%s7023_s0 + $0xb4] sm:$0xff] }
 0x25f   :  { %v2879_v13 = vsel %vm1242_vm6, %v2845_v12, 1065369472  ;;  %v2595_v16 = vsel %vm946_vm8, %v3694_v29, %v2006_v51  ;;  %v7088_v12 = vrot.slane %v5473_v2, 1  ;;  %v2529_v51 = vsel %vm872_vm5, %v7375_v21, %v2528_v23 }
 0x260   :  { %v1643_v54 = vmul.f32 %v5090_v35, %v1427_v58  ;;  %3403 = vmatmul.msk.bf16.gmra.mxu0 %vm1282_vm7, %v1253_v11  ;;  %3526 = vmatmul.msk.bf16.gmra.mxu1 %vm1282_vm7, %v2879_v13  ;;  %v5917_v43 = vsel %vm630_vm3, %v7373_v39, %v2290_v40  ;;  %v2422_v39 = vsel %vm750_vm4, %v5640_v1, %v5925_v50  ;;  %v2207_v29 = vrot.slane %v5735_v10, 1 }
 0x261   :  { %v2064_v1 = vrot.slane %v5711_v60, 1 }
 0x262   :  { %v1678_v25 = vadd.f32 %v1677_v15, %v1643_v54  ;;  %2324 = vrot.lane.b32.xlu2 %v5655_v42, %s3765_s12  ;;  %2251 = vrot.lane.b32.xlu1 %v2182_v61, %s3764_s11  ;;  %v7374_v42 = vrot.slane %v5401_v17, 1 }
 0x263   :  { %2370 = vrot.lane.b32.xlu0 %v5917_v43, %s3766_s13 }
 0x264   :  { %v5931_v58 = vpop.permute.xlu2 %2247  ;;  %v2079_v15 = vpop.permute.xlu1 %2078  ;;  %v1955_v11 = vor.u32 %v5404_v52, %v7374_v42 }
 0x265   :  { %v1342_v13 = vpop.f32.mrf.mxu0  ;;  %v2246_v61 = vpop.permute.xlu0 %2245  ;;  %v2631_v56 = vsel %vm983_vm9, %v2595_v16, %v2079_v15  ;;  %v2208_v16 = vrot.slane %v5732_v26, 2 }
 0x266   :  { %v1428_v54 = vmax.f32 %v1342_v13, 0.0  ;;  %v1960_v52 = vsel %vm203_vm0, %v1955_v11, %v7088_v12  ;;  %v2667_v42 = vsel %vm1020_vm10, %v2631_v56, %v5793_v34  ;;  %v7376_v56 = vrot.slane %v5450_v53, 1 }
 0x267   :  { %v5960_v11 = vor.u32 %v2208_v16, %v2207_v29  ;;  %v2703_v21 = vsel %vm1057_vm11, %v2667_v42, %v2246_v61 }
 0x268   :  { %v1644_v17 = vmul.f32 %v5284_v5, %v1428_v54 }
 0x26a   :  { %v1679_v15 = vadd.f32 %v1678_v25, %v1644_v17  ;;  %2564 = vrot.lane.b32.xlu2 %v2529_v51, %s3768_s25  ;;  %2491 = vrot.lane.b32.xlu1 %v2422_v39, %s3767_s16  ;;  %v5969_v51 = vsel %vm388_vm1, %v7376_v56, %v2064_v1  ;;  %v5974_v39 = vld [vmem:[%s7023_s0 + $0x11c] sm:$0xff] }
 0x26b   :  { %2025 = vrot.lane.b32.xlu0 %v1960_v52, %s3761_s27  ;;  %v7089_v53 = vrot.slane %v5974_v39, 2  ;;  %v5989_v16 = vshll.u32 %v5974_v39, 16  ;;  %v5992_v42 = vshrl.u32 %v5974_v39, 16 }
 0x26c   :  { %v5958_v13 = vpop.permute.xlu2 %2487  ;;  %v2319_v54 = vpop.permute.xlu1 %2318 }
 0x26d   :  { %v1345_v12 = vpop.f32.mrf.mxu0  ;;  %v2486_v25 = vpop.permute.xlu0 %2485  ;;  %v2739_v34 = vsel %vm1094_vm12, %v2703_v21, %v2319_v54  ;;  %v7377_v54 = vrot.slane %v5269_v44, 1  ;;  %v2447_v44 = vrot.slane %v5992_v42, 2 }
 0x26e   :  { %v1429_v17 = vmax.f32 %v1345_v12, 0.0  ;;  %v2210_v12 = vsel %vm508_vm2, %v5725_v36, %v5960_v11  ;;  %v2775_v61 = vsel %vm1131_vm13, %v2739_v34, %v5838_v31 }
 0x26f   :  { %v2811_v36 = vsel %vm1168_vm14, %v2775_v61, %v2486_v25  ;;  %v1907_v21 = vor.u32 %v5272_v30, %v7377_v54  ;;  %v7378_v25 = vrot.slane %v5711_v60, 2  ;;  %v2448_v30 = vrot.slane %v5989_v16, 3 }
 0x270   :  { %v1645_v52 = vmul.f32 %v5143_v14, %v1429_v17 }
 0x271   :  { %v6009_v61 = vsel %vm630_vm3, %v7378_v25, %v7089_v53  ;;  %v6028_v25 = vor.u32 %v2448_v30, %v2447_v44  ;;  %v6042_v44 = vld [vmem:[%s7023_s0 + $0xec] sm:$0xff] }
 0x272   :  { %v1680_v29 = vadd.f32 %v1679_v15, %v1645_v52  ;;  %2144 = vrot.lane.b32.xlu2 %v5969_v51, %s3763_s29  ;;  %2098 = vrot.lane.b32.xlu1 %v5760_v27, %s3762_s28  ;;  %v7090_v27 = vrot.slane %v5584_v62, 1 }
 0x273   :  { %2265 = vrot.lane.b32.xlu0 %v2210_v12, %s3764_s11 }
 0x274   :  { %v5995_v31 = vpop.permute.xlu2 %2094  ;;  %v2559_v15 = vpop.permute.xlu1 %2558 }
 0x275   :  { %v1347_v17 = vpop.f32.mrf.mxu0  ;;  %v2847_v34 = vsel %vm1205_vm15, %v2811_v36, %v2559_v15  ;;  %v2081_v56 = vpop.permute.xlu0 %2080  ;;  %v3695_v36 = vld [vmem:[%s7023_s0 + $0xbc] sm:$0xff] }
 0x276   :  { %v1430_v52 = vmax.f32 %v1347_v17, 0.0  ;;  %v2880_v12 = vsel %vm1242_vm6, %v2847_v34, 1065369472  ;;  %v2597_v15 = vsel %vm946_vm8, %v3695_v36, %v5896_v45  ;;  %v1912_v17 = vsel %vm203_vm0, %v1907_v21, %v7090_v27 }
 0x277   :  { %3527 = vmatmul.msk.bf16.gmra.mxu1 %vm1282_vm7, %v2880_v12  ;;  %v2633_v12 = vsel %vm983_vm9, %v2597_v15, %v2081_v56  ;;  %v7095_v36 = vrot.slane %v5974_v39, 3  ;;  %v2183_v27 = vrot.slane %v5893_v63, 1  ;;  %v2450_v56 = vsel %vm750_vm4, %v5795_v20, %v6028_v25 }
 0x278   :  { %v1646_v54 = vmul.f32 %v5288_v57, %v1430_v52 }
 0x27a   :  { %v1681_v34 = vadd.f32 %v1680_v29, %v1646_v54  ;;  %2384 = vrot.lane.b32.xlu2 %v6009_v61, %s3766_s13  ;;  %2338 = vrot.lane.b32.xlu1 %v5812_v22, %s3765_s12  ;;  %v2184_v22 = vrot.slane %v5890_v8, 2 }
 0x27b   :  { %2013 = vrot.lane.b32.xlu0 %v1912_v17, %s3761_s27 }
 0x27c   :  { %v6030_v45 = vpop.permute.xlu2 %2334  ;;  %v2127_v52 = vpop.permute.xlu1 %2126  ;;  %v6055_v20 = vor.u32 %v2184_v22, %v2183_v27 }
 0x27d   :  { %v1350_v53 = vpop.f32.mrf.mxu0  ;;  %v2321_v21 = vpop.permute.xlu0 %2320  ;;  %v2669_v54 = vsel %vm1020_vm10, %v2633_v12, %v2127_v52  ;;  %v2052_v12 = vrot.slane %v5872_v38, 1  ;;  %v6060_v52 = vshll.u32 %v6042_v44, 16 }
 0x27e   :  { %v1431_v29 = vmax.f32 %v1350_v53, 0.0  ;;  %v2543_v53 = vsel %vm872_vm5, %v2540_v19, %v7095_v36  ;;  %v2705_v15 = vsel %vm1057_vm11, %v2669_v54, %v5931_v58  ;;  %v6063_v19 = vshrl.u32 %v6042_v44, 16 }
 0x27f   :  { %v2741_v58 = vsel %vm1094_vm12, %v2705_v15, %v2321_v21  ;;  %v6080_v21 = vsel %vm388_vm1, %v2050_v46, %v2052_v12  ;;  %v7094_v46 = vrot.slane %v6042_v44, 2  ;;  %v7102_v36 = vrot.slane %v5890_v8, 1 }
 0x280   :  { %v1647_v30 = vmul.f32 %v5345_v4, %v1431_v29  ;;  %v2423_v15 = vrot.slane %v6063_v19, 2 }
 0x282   :  { %v1682_v17 = vadd.f32 %v1681_v34, %v1647_v30  ;;  %2086 = vrot.lane.b32.xlu2 %v5867_v18, %s3762_s28  ;;  %2505 = vrot.lane.b32.xlu1 %v2450_v56, %s3767_s16  ;;  %v2186_v30 = vsel %vm508_vm2, %v5887_v9, %v6055_v20 }
 0x283   :  { %2578 = vrot.lane.b32.xlu0 %v2543_v53, %s3768_s25 }
 0x284   :  { %v6066_v34 = vpop.permute.xlu2 %2501  ;;  %v2367_v29 = vpop.permute.xlu1 %2366 }
 0x285   :  { %v1352_v18 = vpop.f32.mrf.mxu0  ;;  %v2777_v54 = vsel %vm1131_vm13, %v2741_v58, %v2367_v29  ;;  %v2561_v27 = vpop.permute.xlu0 %2560  ;;  %v2424_v58 = vrot.slane %v6060_v52, 3 }
 0x286   :  { %v1432_v22 = vmax.f32 %v1352_v18, 0.0  ;;  %v2813_v56 = vsel %vm1168_vm14, %v2777_v54, %v5958_v13 }
 0x287   :  { %v2849_v53 = vsel %vm1205_vm15, %v2813_v56, %v2561_v27  ;;  %v6092_v49 = vor.u32 %v2424_v58, %v2423_v15  ;;  %v7092_v27 = vrot.slane %v6042_v44, 3 }
 0x288   :  { %v1648_v29 = vmul.f32 %v5189_v47, %v1432_v22  ;;  %v2881_v13 = vsel %vm1242_vm6, %v2849_v53, 1065369472 }
 0x289   :  { %3528 = vmatmul.msk.bf16.gmra.mxu1 %vm1282_vm7, %v2881_v13  ;;  %v2531_v15 = vsel %vm872_vm5, %v2528_v23, %v7092_v27  ;;  %v7380_v27 = vrot.slane %v5974_v39, 2 }
 0x28a   :  { %v1683_v9 = vadd.f32 %v1682_v17, %v1648_v29  ;;  %2253 = vrot.lane.b32.xlu2 %v2186_v30, %s3764_s11  ;;  %2132 = vrot.lane.b32.xlu1 %v6080_v21, %s3763_s29  ;;  %v2426_v30 = vsel %vm750_vm4, %v5925_v50, %v6092_v49  ;;  %v7093_v29 = vrot.slane %v5732_v26, 1 }
 0x28b   :  { %2326 = vrot.lane.b32.xlu0 %v5917_v43, %s3765_s12  ;;  %v6106_v43 = vsel %vm630_vm3, %v2290_v40, %v7094_v46  ;;  %v7379_v40 = vrot.slane %v5473_v2, 1 }
 0x28c   :  { %v6095_v18 = vpop.permute.xlu2 %2128  ;;  %v2022_v54 = vpop.permute.xlu1 %2021 }
 0x28d   :  { %v1355_v22 = vpop.f32.mrf.mxu0  ;;  %v2141_v56 = vpop.permute.xlu0 %2140  ;;  %v1963_v50 = vor.u32 %v5476_v59, %v7379_v40  ;;  %v2611_v13 = vsel %vm946_vm8, %v5311_v55, %v2022_v54  ;;  %v2211_v59 = vrot.slane %v5992_v42, 1  ;;  %v6148_v40 = vld [vmem:[%s7023_s0 + $0x124] sm:$0xff] }
 0x28e   :  { %v1433_v17 = vmax.f32 %v1355_v22, 0.0 }
 0x28f   :  { %v1968_v2 = vsel %vm203_vm0, %v1963_v50, %v7093_v29 }
 0x290   :  { %v1649_v53 = vmul.f32 %v5350_v32, %v1433_v17 }
 0x292   :  { %v6114_v58 = vadd.f32 %v1683_v9, %v1649_v53  ;;  %2493 = vrot.lane.b32.xlu2 %v2426_v30, %s3767_s16  ;;  %2372 = vrot.lane.b32.xlu1 %v6106_v43, %s3766_s13  ;;  %v7091_v9 = vrot.slane %v5974_v39, 1  ;;  %v2647_v53 = vsel %vm983_vm9, %v2611_v13, %v5995_v31  ;;  %v6163_v13 = vshrl.u32 %v6148_v40, 16 }
 0x293   :  { %2566 = vrot.lane.b32.xlu0 %v2531_v15, %s3768_s25  ;;  %v2212_v15 = vrot.slane %v5989_v16, 2  ;;  %v2683_v31 = vsel %vm1020_vm10, %v2647_v53, %v2141_v56 }
 0x294   :  { %v6126_v22 = vpop.permute.xlu2 %2368  ;;  %v2262_v23 = vpop.permute.xlu1 %2261  ;;  %v6143_v54 = vsel %vm388_vm1, %v2064_v1, %v7091_v9  ;;  %v6160_v1 = vshll.u32 %v6148_v40, 16 }
 0x295   :  { %v6129_v17 = vpop.f32.mrf.mxu0  ;;  %v2381_v30 = vpop.permute.xlu0 %2380  ;;  %v2719_v50 = vsel %vm1057_vm11, %v2683_v31, %v2262_v23  ;;  %v6157_v60 = vor.u32 %v2212_v15, %v2211_v59  ;;  %v2451_v15 = vrot.slane %v6163_v13, 2 }
 0x296   :  { %v2755_v23 = vsel %vm1094_vm12, %v2719_v50, %v6030_v45  ;;  %v2452_v31 = vrot.slane %v6160_v1, 3  ;;  %v7381_v45 = vrot.slane %v5584_v62, 1 }
 0x297   :  { %v2214_v59 = vsel %vm508_vm2, %v5960_v11, %v6157_v60  ;;  %v2791_v46 = vsel %vm1131_vm13, %v2755_v23, %v2381_v30 }
 0x298   :  { %v6190_v11 = vor.u32 %v2452_v31, %v2451_v15  ;;  %v1915_v50 = vor.u32 %v5587_v3, %v7381_v45  ;;  %v2827_v30 = vsel %vm1168_vm14, %v2791_v46, %v6066_v34  ;;  %v3696_v15 = vld [vmem:[%s7023_s0 + $0xc4] sm:$0xff]  ;;  %v2187_v46 = vrot.slane %v6063_v19, 1 }
 0x29a   :  { %2100 = vrot.lane.b32.xlu2 %v5969_v51, %s3762_s28  ;;  %2027 = vrot.lane.b32.xlu1 %v1968_v2, %s3761_s27  ;;  %v7096_v51 = vrot.slane %v6148_v40, 2  ;;  %v2454_v31 = vsel %vm750_vm4, %v6028_v25, %v6190_v11  ;;  %v1920_v34 = vsel %vm203_vm0, %v1915_v50, %v7102_v36  ;;  %v7101_v25 = vrot.slane %v6148_v40, 3 }
 0x29b   :  { %2146 = vrot.lane.b32.xlu0 %v6143_v54, %s3763_s29 }
 0x29c   :  { %v6165_v9 = vpop.permute.xlu2 %2023  ;;  %v2010_v56 = vpop.permute.xlu1 %2009  ;;  %v6182_v29 = vsel %vm630_vm3, %v7380_v27, %v7096_v51 }
 0x29d   :  { %v6168_v53 = vpop.f32.mrf.mxu0  ;;  %v2083_v2 = vpop.permute.xlu0 %2082  ;;  %v2599_v62 = vsel %vm946_vm8, %v3696_v15, %v2010_v56  ;;  %v7100_v56 = vrot.slane %v6042_v44, 1 }
 0x29e   :  { %v2635_v45 = vsel %vm983_vm9, %v2599_v62, %v2083_v2 }
 0x29f   :  { %v2671_v50 = vsel %vm1020_vm10, %v2635_v45, %v6095_v18  ;;  %v7382_v18 = vrot.slane %v5974_v39, 3 }
 0x2a2   :  { %2340 = vrot.lane.b32.xlu2 %v6009_v61, %s3765_s12  ;;  %2267 = vrot.lane.b32.xlu1 %v2214_v59, %s3764_s11 }
 0x2a3   :  { %2386 = vrot.lane.b32.xlu0 %v6182_v29, %s3766_s13 }
 0x2a4   :  { %v6196_v27 = vpop.permute.xlu2 %2263  ;;  %v2575_v51 = vpop.permute.xlu1 %2574 }
 0x2a5   :  { %v6200_v61 = vpop.f32.mrf.mxu0  ;;  %v2863_v23 = vsel %vm1205_vm15, %v2827_v30, %v2575_v51  ;;  %v2250_v59 = vpop.permute.xlu0 %2249  ;;  %v2188_v51 = vrot.slane %v6060_v52, 2 }
 0x2a6   :  { %v2888_v3 = vsel %vm1242_vm6, %v2863_v23, 1065369472  ;;  %v2707_v2 = vsel %vm1057_vm11, %v2671_v50, %v2250_v59 }
 0x2a7   :  { %3535 = vmatmul.msk.bf16.vlgmr.msra.gmra.mxu2 %vm1282_vm7, %v2888_v3  ;;  %v6228_v15 = vor.u32 %v2188_v51, %v2187_v46  ;;  %v2427_v46 = vrot.slane %v5367_v0, 2  ;;  %v2428_v51 = vrot.slane %v5339_v37, 3 }
 0x2a9   :  { %v2190_v59 = vsel %vm508_vm2, %v6055_v20, %v6228_v15 }
 0x2aa   :  { %2507 = vrot.lane.b32.xlu2 %v2454_v31, %s3767_s16  ;;  %2015 = vrot.lane.b32.xlu1 %v1920_v34, %s3761_s27  ;;  %v2545_v34 = vsel %vm872_vm5, %v7382_v18, %v7101_v25 }
 0x2ab   :  { %2088 = vrot.lane.b32.xlu0 %v6080_v21, %s3762_s28  ;;  %v6239_v21 = vsel %vm388_vm1, %v2052_v12, %v7100_v56  ;;  %v7097_v12 = vrot.slane %v5311_v55, 2 }
 0x2ac   :  { %v6226_v30 = vpop.permute.xlu2 %2011  ;;  %v2323_v23 = vpop.permute.xlu1 %2322 }
 0x2ad   :  { %v6231_v62 = vpop.f32.mrf.mxu0  ;;  %v2490_v3 = vpop.permute.xlu0 %2489  ;;  %v2743_v31 = vsel %vm1094_vm12, %v2707_v2, %v2323_v23  ;;  %v6259_v23 = vor.u32 %v2428_v51, %v2427_v46 }
 0x2ae   :  { %v2779_v38 = vsel %vm1131_vm13, %v2743_v31, %v6126_v22 }
 0x2af   :  { %v2815_v45 = vsel %vm1168_vm14, %v2779_v38, %v2490_v3  ;;  %v2613_v3 = vsel %vm946_vm8, %v5336_v28, %v6165_v9  ;;  %v2430_v46 = vsel %vm750_vm4, %v6092_v49, %v6259_v23  ;;  %v7384_v38 = vrot.slane %v5732_v26, 1  ;;  %v6292_v49 = vld [vmem:[%s7023_s0 + $0xf4] sm:$0xff] }
 0x2b0   :  { %v7099_v9 = vrot.slane %v5989_v16, 1 }
 0x2b2   :  { %2134 = vrot.lane.b32.xlu2 %v6239_v21, %s3763_s29  ;;  %2580 = vrot.lane.b32.xlu1 %v2545_v34, %s3768_s25  ;;  %v7383_v34 = vrot.slane %v6042_v44, 2 }
 0x2b3   :  { %2255 = vrot.lane.b32.xlu0 %v2190_v59, %s3764_s11 }
 0x2b4   :  { %v2577_v50 = vpop.permute.xlu2 %2576  ;;  %v2563_v20 = vpop.permute.xlu1 %2562  ;;  %v6271_v59 = vsel %vm630_vm3, %v7383_v34, %v7097_v12  ;;  %v6313_v12 = vld [vmem:[%s7023_s0 + $0x12c] sm:$0xff] }
 0x2b5   :  { %v6261_v2 = vpop.f32.mrf.mxu0  ;;  %v2851_v18 = vsel %vm1205_vm15, %v2815_v45, %v2563_v20  ;;  %v2097_v22 = vpop.permute.xlu0 %2096  ;;  %v1971_v45 = vor.u32 %v5735_v10, %v7384_v38  ;;  %v7098_v20 = vrot.slane %v6292_v49, 3  ;;  %v7385_v10 = vrot.slane %v6042_v44, 3 }
 0x2b6   :  { %v2882_v31 = vsel %vm1242_vm6, %v2851_v18, 1065369472  ;;  %v2649_v51 = vsel %vm983_vm9, %v2613_v3, %v2097_v22  ;;  %v2216_v38 = vrot.slane %v6160_v1, 2  ;;  %v6328_v56 = vshll.u32 %v6313_v12, 16 }
 0x2b7   :  { %3529 = vmatmul.msk.bf16.gmra.mxu1 %vm1282_vm7, %v2882_v31  ;;  %v1976_v26 = vsel %vm203_vm0, %v1971_v45, %v7099_v9  ;;  %v2533_v3 = vsel %vm872_vm5, %v7385_v10, %v7098_v20 }
 0x2ba   :  { %2374 = vrot.lane.b32.xlu2 %v6271_v59, %s3766_s13  ;;  %2328 = vrot.lane.b32.xlu1 %v6106_v43, %s3765_s12 }
 0x2bb   :  { %2495 = vrot.lane.b32.xlu0 %v2430_v46, %s3767_s16  ;;  %v2215_v46 = vrot.slane %v6163_v13, 1 }
 0x2bc   :  { %v6295_v18 = vpop.permute.xlu2 %2324  ;;  %v2143_v43 = vpop.permute.xlu1 %2142 }
 0x2bd   :  { %v6297_v31 = vpop.f32.mrf.mxu0  ;;  %v2337_v22 = vpop.permute.xlu0 %2336  ;;  %v2685_v34 = vsel %vm1020_vm10, %v2649_v51, %v2143_v43  ;;  %v6321_v45 = vor.u32 %v2216_v38, %v2215_v46  ;;  %v7103_v43 = vrot.slane %v6148_v40, 1 }
 0x2be   :  { %v2721_v51 = vsel %vm1057_vm11, %v2685_v34, %v6196_v27  ;;  %v6331_v27 = vshrl.u32 %v6313_v12, 16 }
 0x2bf   :  { %v2757_v10 = vsel %vm1094_vm12, %v2721_v51, %v2337_v22  ;;  %v2218_v22 = vsel %vm508_vm2, %v6157_v60, %v6321_v45  ;;  %v7386_v51 = vrot.slane %v5974_v39, 1  ;;  %v7387_v39 = vrot.slane %v5890_v8, 1 }
 0x2c1   :  { %v6346_v25 = vsel %vm388_vm1, %v7386_v51, %v7103_v43  ;;  %v1923_v60 = vor.u32 %v5893_v63, %v7387_v39  ;;  %v3698_v63 = vld [vmem:[%s7023_s0 + $0xcc] sm:$0xff] }
 0x2c2   :  { %2029 = vrot.lane.b32.xlu2 %v1976_v26, %s3761_s27  ;;  %2568 = vrot.lane.b32.xlu1 %v2533_v3, %s3768_s25  ;;  %v2601_v39 = vsel %vm946_vm8, %v3698_v63, %v6226_v30  ;;  %v1436_v30 = vmax.f32 %v6200_v61, 0.0 }
 0x2c3   :  { %2102 = vrot.lane.b32.xlu0 %v6143_v54, %s3762_s28 }
 0x2c4   :  { %v6325_v20 = vpop.permute.xlu2 %2564  ;;  %v2383_v9 = vpop.permute.xlu1 %2382 }
 0x2c5   :  { %v6333_v34 = vpop.f32.mrf.mxu0  ;;  %v2793_v26 = vsel %vm1131_vm13, %v2757_v10, %v2383_v9  ;;  %v2504_v54 = vpop.permute.xlu0 %2503  ;;  %v2455_v9 = vrot.slane %v6331_v27, 2  ;;  %v2456_v10 = vrot.slane %v6328_v56, 3 }
 0x2c6   :  { %v2829_v3 = vsel %vm1168_vm14, %v2793_v26, %v2504_v54  ;;  %v2941_v46 = vpop.f32.mrf.mxu1 }
 0x2c7   :  { %v2865_v38 = vsel %vm1205_vm15, %v2829_v3, %v2577_v50  ;;  %v7105_v50 = vrot.slane %v6060_v52, 1 }
 0x2c8   :  { %v2889_v36 = vsel %vm1242_vm6, %v2865_v38, 1065369472  ;;  %v1434_v38 = vmax.f32 %v6129_v17, 0.0  ;;  %v7388_v17 = vrot.slane %v6313_v12, 2 }
 0x2c9   :  { %3536 = vmatmul.msk.bf16.gmra.mxu2 %vm1282_vm7, %v2889_v36  ;;  %v6364_v36 = vor.u32 %v2456_v10, %v2455_v9  ;;  %v1928_v9 = vsel %vm203_vm0, %v1923_v60, %v7105_v50  ;;  %v7391_v50 = vld [vmem:[#allocation12_spill] sm:$0xff] }
 0x2ca   :  { %2269 = vrot.lane.b32.xlu2 %v2218_v22, %s3764_s11  ;;  %2148 = vrot.lane.b32.xlu1 %v6346_v25, %s3763_s29  ;;  %v3031_v22 = vmax.f32 %v2941_v46, 0.0  ;;  %v7389_v46 = vrot.slane %v6148_v40, 2  ;;  %v1650_v32 = vmul.f32 %v5417_v41, %v1434_v38 }
 0x2cb   :  { %2342 = vrot.lane.b32.xlu0 %v6182_v29, %s3765_s12  ;;  %v1435_v29 = vmax.f32 %v6168_v53, 0.0  ;;  %v2458_v53 = vsel %vm750_vm4, %v6190_v11, %v6364_v36 }
 0x2cc   :  { %v6362_v54 = vpop.permute.xlu2 %2144  ;;  %v2085_v3 = vpop.permute.xlu1 %2084  ;;  %v6383_v10 = vsel %vm630_vm3, %v7389_v46, %v7388_v17  ;;  %v1437_v46 = vmax.f32 %v6231_v62, 0.0 }
 0x2cd   :  { %v6367_v51 = vpop.f32.mrf.mxu0  ;;  %v2131_v43 = vpop.permute.xlu0 %2130  ;;  %v2637_v60 = vsel %vm983_vm9, %v2601_v39, %v2085_v3  ;;  %v1651_v17 = vmul.f32 %v5233_v24, %v1435_v29  ;;  %v7392_v24 = vrot.slane %v6313_v12, 3 }
 0x2ce   :  { %v2943_v8 = vpop.f32.mrf.mxu1  ;;  %v2673_v39 = vsel %vm1020_vm10, %v2637_v60, %v2131_v43  ;;  %v1653_v61 = vmul.f32 %v7391_v50, %v1437_v46  ;;  %v7394_v43 = vrot.slane %v5311_v55, 1 }
 0x2cf   :  { %v3032_v26 = vmax.f32 %v2943_v8, 0.0  ;;  %v3067_v8 = vmul.f32 %v3031_v22, %v5239_v33  ;;  %v1438_v22 = vmax.f32 %v6261_v2, 0.0  ;;  %v1439_v2 = vmax.f32 %v6297_v31, 0.0  ;;  %v7397_v31 = vld [vmem:[#allocation25_spill] sm:$0xff] }
 0x2d1   :  { %v3068_v63 = vmul.f32 %v3032_v26, %v5235_v7  ;;  %v1685_v7 = vadd.f32 %v6114_v58, %v1650_v32  ;;  %v7390_v26 = vld [vmem:[#allocation30_spill] sm:$0xff]  ;;  %v7393_v32 = vrot.slane %v6148_v40, 3 }
 0x2d2   :  { %2017 = vrot.lane.b32.xlu2 %v1928_v9, %s3761_s27  ;;  %2388 = vrot.lane.b32.xlu1 %v6383_v10, %s3766_s13  ;;  %v1652_v3 = vmul.f32 %v7390_v26, %v1436_v30  ;;  %v7395_v30 = vrot.slane %v6042_v44, 1 }
 0x2d3   :  { %v3103_v11 = vadd.f32 %v3068_v63, %v3067_v8  ;;  %2509 = vrot.lane.b32.xlu0 %v2458_v53, %s3767_s16  ;;  %v2191_v8 = vrot.slane %v5367_v0, 1  ;;  %v2192_v53 = vrot.slane %v5339_v37, 2  ;;  %v1686_v63 = vadd.f32 %v1685_v7, %v1651_v17  ;;  %v6423_v0 = vpop.f32.mrf.mxu3 }
 0x2d4   :  { %v6400_v38 = vpop.permute.xlu2 %2384  ;;  %v2252_v33 = vpop.permute.xlu1 %2251  ;;  %v2547_v58 = vsel %vm872_vm5, %v7393_v32, %v7392_v24  ;;  %v6421_v60 = vsel %vm388_vm1, %v7395_v30, %v7394_v43 }
 0x2d5   :  { %v1377_v9 = vpop.f32.mrf.mxu0  ;;  %v2371_v29 = vpop.permute.xlu0 %2370  ;;  %v2709_v62 = vsel %vm1057_vm11, %v2673_v39, %v2252_v33  ;;  %v1687_v17 = vadd.f32 %v1686_v63, %v1652_v3  ;;  %v7396_v33 = vld [vmem:[#allocation41_spill] sm:$0xff]  ;;  %v1440_v39 = vmax.f32 %v6333_v34, 0.0  ;;  %v6432_v24 = vor.u32 %v2192_v53, %v2191_v8  ;;  %v7398_v8 = vld [vmem:[#allocation35_spill] sm:$0xff] }
 0x2d6   :  { %v1654_v46 = vmul.f32 %v7396_v33, %v1438_v22  ;;  %v2745_v7 = vsel %vm1094_vm12, %v2709_v62, %v6295_v18  ;;  %v1655_v3 = vmul.f32 %v7397_v31, %v1439_v2  ;;  %v1441_v22 = vmax.f32 %v6367_v51, 0.0 }
 0x2d7   :  { %v1688_v44 = vadd.f32 %v1687_v17, %v1653_v61  ;;  %v2781_v63 = vsel %vm1131_vm13, %v2745_v7, %v2371_v29  ;;  %v1656_v53 = vmul.f32 %v7398_v8, %v1440_v39  ;;  %v1442_v61 = vmax.f32 %v1377_v9, 0.0 }
 0x2d8   :  { %v2194_v51 = vsel %vm508_vm2, %v6228_v15, %v6432_v24  ;;  %v2431_v17 = vrot.slane %v5398_v48, 2  ;;  %v7401_v9 = vrot.slane %v5336_v28, 2 }
 0x2d9   :  { %v1689_v62 = vadd.f32 %v1688_v44, %v1654_v46  ;;  %v7399_v46 = vld [vmem:[#allocation31_spill] sm:$0xff] }
 0x2da   :  { %2582 = vrot.lane.b32.xlu2 %v2547_v58, %s3768_s25  ;;  %2090 = vrot.lane.b32.xlu1 %v6239_v21, %s3762_s28  ;;  %v2432_v7 = vrot.slane %v7399_v46, 3  ;;  %v1445_v46 = vmax.f32 %v6423_v0, 0.0 }
 0x2db   :  { %2136 = vrot.lane.b32.xlu0 %v6421_v60, %s3763_s29  ;;  %v1690_v44 = vadd.f32 %v1689_v62, %v1655_v3  ;;  %v6468_v3 = vld [vmem:[%s7023_s0 + $0xfc] sm:$0xff]  ;;  %v1387_v28 = vpop.f32.mrf.mxu3  ;;  %v7404_v62 = vrot.slane %v5989_v16, 1  ;;  %v7406_v16 = vrot.slane %v6292_v49, 3 }
 0x2dc   :  { %v6439_v18 = vpop.permute.xlu2 %2086  ;;  %v2492_v34 = vpop.permute.xlu1 %2491 }
 0x2dd   :  { %v1380_v32 = vpop.f32.mrf.mxu0  ;;  %v2817_v58 = vsel %vm1168_vm14, %v2781_v63, %v2492_v34  ;;  %v2026_v21 = vpop.permute.xlu0 %2025  ;;  %v7400_v63 = vld [vmem:[#allocation26_spill] sm:$0xff] }
 0x2de   :  { %v2946_v43 = vpop.f32.mrf.mxu1  ;;  %v2853_v30 = vsel %vm1205_vm15, %v2817_v58, %v6325_v20  ;;  %v1657_v34 = vmul.f32 %v7400_v63, %v1441_v22  ;;  %v1443_v39 = vmax.f32 %v1380_v32, 0.0  ;;  %v7402_v20 = vrot.slane %v5311_v55, 2 }
 0x2df   :  { %v3033_v29 = vmax.f32 %v2946_v43, 0.0  ;;  %v2883_v2 = vsel %vm1242_vm6, %v2853_v30, 1065369472  ;;  %v1691_v43 = vadd.f32 %v1690_v44, %v1656_v53  ;;  %v7403_v30 = vld [vmem:[#allocation49_spill] sm:$0xff]  ;;  %v2534_v55 = vrot.slane %v6468_v3, 3 }
 0x2e0   :  { %3530 = vmatmul.msk.bf16.gmra.mxu1 %vm1282_vm7, %v2883_v2  ;;  %v6458_v58 = vsel %vm630_vm3, %v7402_v20, %v7401_v9  ;;  %v1658_v48 = vmul.f32 %v7403_v30, %v1442_v61  ;;  %v7107_v32 = vrot.slane %v6160_v1, 1  ;;  %v7405_v61 = vld [vmem:[#allocation106_spill] sm:$0xff]  ;;  %v1446_v9 = vmax.f32 %v1387_v28, 0.0 }
 0x2e1   :  { %v3069_v15 = vmul.f32 %v3033_v29, %v5090_v35  ;;  %v6473_v35 = vor.u32 %v2432_v7, %v2431_v17  ;;  %v1692_v53 = vadd.f32 %v1691_v43, %v1657_v34  ;;  %v3700_v34 = vld [vmem:[%s7023_s0 + $0x104] sm:$0xff]  ;;  %v7407_v28 = vld [vmem:[#allocation22_spill] sm:$0xff] }
 0x2e2   :  { %2330 = vrot.lane.b32.xlu2 %v6271_v59, %s3765_s12  ;;  %2257 = vrot.lane.b32.xlu1 %v2194_v51, %s3764_s11  ;;  %v1979_v59 = vor.u32 %v5992_v42, %v7404_v62  ;;  %v1659_v51 = vmul.f32 %v7405_v61, %v1443_v39  ;;  %v2535_v42 = vsel %vm872_vm5, %v7406_v16, %v2534_v55  ;;  %v2219_v62 = vrot.slane %v6331_v27, 1 }
 0x2e3   :  { %v3104_v22 = vadd.f32 %v3103_v11, %v3069_v15  ;;  %2376 = vrot.lane.b32.xlu0 %v6458_v58, %s3766_s13  ;;  %v1693_v20 = vadd.f32 %v1692_v53, %v1658_v48  ;;  %v2615_v39 = vsel %vm946_vm8, %v3700_v34, %v2026_v21  ;;  %v2434_v0 = vsel %vm750_vm4, %v6259_v23, %v6473_v35  ;;  %v3448_v21 = vld [vmem:[%s7023_s0 + $0x134] sm:$0xf] }
 0x2e4   :  { %v6480_v29 = vpop.permute.xlu2 %2253  ;;  %v2099_v2 = vpop.permute.xlu1 %2098  ;;  %v1984_v43 = vsel %vm203_vm0, %v1979_v59, %v7107_v32  ;;  %v2220_v53 = vrot.slane %v6328_v56, 2  ;;  %v6516_v16 = vrot.slane %v6313_v12, 1  ;;  %v6519_v32 = vunpack.c.l.b16 %v3448_v21 }
 0x2e5   :  { %v1382_v11 = vpop.f32.mrf.mxu0  ;;  %v2266_v44 = vpop.permute.xlu0 %2265  ;;  %v1694_v48 = vadd.f32 %v1693_v20, %v1659_v51  ;;  %v2651_v20 = vsel %vm983_vm9, %v2615_v39, %v2099_v2 }
 0x2e6   :  { %v1444_v17 = vmax.f32 %v1382_v11, 0.0  ;;  %v2948_v7 = vpop.f32.mrf.mxu1  ;;  %v6507_v11 = vld [vmem:[%s7023_s0 + $0x138] sm:$0xff]   ;;  %v6522_v2 = vor.u32 %v2220_v53, %v2219_v62 }
 0x2e7   :  { %v3034_v15 = vmax.f32 %v2948_v7, 0.0  ;;  %v7408_v7 = vld [vmem:[#allocation18_spill] sm:$0xff]  ;;  %v3631_v34 = vunpack.c.l.b16 %v6507_v11 }
 0x2e8   :  { %v1660_v49 = vmul.f32 %v7407_v28, %v1444_v17  ;;  %v1661_v59 = vmul.f32 %v7408_v7, %v1445_v46  ;;  %v2222_v62 = vsel %vm508_vm2, %v6321_v45, %v6522_v2 }
 0x2e9   :  { %v3070_v23 = vmul.f32 %v3034_v15, %v5284_v5  ;;  %v7409_v5 = vld [vmem:[#allocation74_spill] sm:$0xff]  ;;  %v6535_v21 = vpack.c.b16 %v3631_v34, %v6519_v32 }
 0x2ea   :  { %v1695_v51 = vadd.f32 %v1694_v48, %v1660_v49  ;;  %2570 = vrot.lane.b32.xlu2 %v2535_v42, %s3768_s25  ;;  %2497 = vrot.lane.b32.xlu1 %v2434_v0, %s3767_s16  ;;  %v1662_v15 = vmul.f32 %v7409_v5, %v1446_v9  ;;  %v2687_v42 = vsel %vm1020_vm10, %v2651_v20, %v6362_v54  ;;  %v7410_v0 = vrot.slane %v6148_v40, 1 }
 0x2eb   :  { %v3105_v17 = vadd.f32 %v3104_v22, %v3070_v23  ;;  %2031 = vrot.lane.b32.xlu0 %v1984_v43, %s3761_s27  ;;  %v2723_v9 = vsel %vm1057_vm11, %v2687_v42, %v2266_v44  ;;  %v6548_v40 = vrot.slane %v6535_v21, 2  ;;  %v2224_v53 = vshrl.u32 %v6535_v21, 16 }
 0x2ec   :  { %v1696_v46 = vadd.f32 %v1695_v51, %v1661_v59  ;;  %v2494_v48 = vpop.permute.xlu2 %2493  ;;  %v2339_v49 = vpop.permute.xlu1 %2338  ;;  %v6532_v43 = vsel %vm388_vm1, %v7410_v0, %v6516_v16  ;;  %v2227_v44 = vshll.u32 %v6535_v21, 16  ;;  %v7411_v51 = vrot.slane %v6060_v52, 1 }
 0x2ed   :  { %v2014_v22 = vpop.permute.xlu0 %2013  ;;  %v2759_v54 = vsel %vm1094_vm12, %v2723_v9, %v2339_v49  ;;  %v7412_v0 = vrot.slane %v6313_v12, 2  ;;  %v2459_v52 = vrot.slane %v2224_v53, 2 }
 0x2ee   :  { %v6526_v39 = vadd.f32 %v1696_v46, %v1662_v15  ;;  %v2795_v59 = vsel %vm1131_vm13, %v2759_v54, %v6400_v38  ;;  %v1931_v20 = vor.u32 %v6063_v19, %v7411_v51  ;;  %v2460_v19 = vrot.slane %v2227_v44, 3 }
 0x2ef   :  { %v6566_v9 = vsel %vm630_vm3, %v7412_v0, %v6548_v40 }
 0x2f2   :  { %2150 = vrot.lane.b32.xlu2 %v6532_v43, %s3763_s29  ;;  %2104 = vrot.lane.b32.xlu1 %v6346_v25, %s3762_s28 }
 0x2f3   :  { %2271 = vrot.lane.b32.xlu0 %v2222_v62, %s3764_s11  ;;  %v7413_v62 = vrot.slane %v5339_v37, 1 }
 0x2f4   :  { %v6552_v23 = vpop.permute.xlu2 %2100  ;;  %v2506_v45 = vpop.permute.xlu1 %2505 }
 0x2f5   :  { %v2831_v25 = vsel %vm1168_vm14, %v2795_v59, %v2506_v45  ;;  %v2951_v34 = vpop.f32.mrf.mxu1  ;;  %v2579_v15 = vpop.permute.xlu0 %2578  ;;  %v1936_v54 = vsel %vm203_vm0, %v1931_v20, %v7413_v62  ;;  %v3701_v45 = vld [vmem:[%s7023_s0 + $0xd4] sm:$0xff] }
 0x2f6   :  { %v3035_v46 = vmax.f32 %v2951_v34, 0.0  ;;  %v2867_v49 = vsel %vm1205_vm15, %v2831_v25, %v2579_v15  ;;  %v2603_v59 = vsel %vm946_vm8, %v3701_v45, %v2014_v22  ;;  %v2548_v25 = vrot.slane %v6535_v21, 3 }
 0x2f7   :  { %v2890_v42 = vsel %vm1242_vm6, %v2867_v49, 1065369472  ;;  %v2639_v34 = vsel %vm983_vm9, %v2603_v59, %v6439_v18 }
 0x2f8   :  { %v3071_v38 = vmul.f32 %v3035_v46, %v5143_v14  ;;  %3537 = vmatmul.msk.bf16.gmra.mxu2 %vm1282_vm7, %v2890_v42  ;;  %v6586_v14 = vor.u32 %v2460_v19, %v2459_v52  ;;  %v7414_v42 = vrot.slane %v6313_v12, 3 }
 0x2fa   :  { %v3106_v51 = vadd.f32 %v3105_v17, %v3071_v38  ;;  %2390 = vrot.lane.b32.xlu2 %v6566_v9, %s3766_s13  ;;  %2344 = vrot.lane.b32.xlu1 %v6383_v10, %s3765_s12  ;;  %v2462_v10 = vsel %vm750_vm4, %v6364_v36, %v6586_v14  ;;  %v2549_v0 = vsel %vm872_vm5, %v7414_v42, %v2548_v25  ;;  %v7418_v42 = vrot.slane %v5386_v6, 3 }
 0x2fb   :  { %2019 = vrot.lane.b32.xlu0 %v1936_v54, %s3761_s27  ;;  %v7420_v6 = vrot.slane %v6160_v1, 1 }
 0x2fc   :  { %v6588_v37 = vpop.permute.xlu2 %2340  ;;  %v2133_v20 = vpop.permute.xlu1 %2132 }
 0x2fd   :  { %v2953_v22 = vpop.f32.mrf.mxu1  ;;  %v2327_v17 = vpop.permute.xlu0 %2326  ;;  %v2675_v15 = vsel %vm1020_vm10, %v2639_v34, %v2133_v20  ;;  %v1987_v3 = vor.u32 %v6163_v13, %v7420_v6  ;;  %v2226_v13 = vrot.slane %v2224_v53, 1 }
 0x2fe   :  { %v3036_v46 = vmax.f32 %v2953_v22, 0.0  ;;  %v2711_v18 = vsel %vm1057_vm11, %v2675_v15, %v6480_v29  ;;  %v7416_v22 = vld [vmem:[#allocation21_spill] sm:$0xff] }
 0x2ff   :  { %v2747_v36 = vsel %vm1094_vm12, %v2711_v18, %v2327_v17 }
 0x300   :  { %v3072_v49 = vmul.f32 %v3036_v46, %v5288_v57 }
 0x302   :  { %v3107_v52 = vadd.f32 %v3106_v51, %v3072_v49  ;;  %2092 = vrot.lane.b32.xlu2 %v6421_v60, %s3762_s28  ;;  %2511 = vrot.lane.b32.xlu1 %v2462_v10, %s3767_s16  ;;  %v7415_v51 = vld [vmem:[#allocation39_spill] sm:$0xff] }
 0x303   :  { %2584 = vrot.lane.b32.xlu0 %v2549_v0, %s3768_s25  ;;  %v2198_v60 = vsel %vm508_vm2, %v6432_v24, %v7415_v51  ;;  %v7417_v49 = vld [vmem:[#allocation15_spill] sm:$0xff]  ;;  %v2537_v0 = vsel %vm872_vm5, %v2534_v55, %v7418_v42  ;;  %v3702_v55 = vld [vmem:[%s7023_s0 + $0x10c] sm:$0xff] }
 0x304   :  { %v6610_v57 = vpop.permute.xlu2 %2507  ;;  %v2373_v19 = vpop.permute.xlu1 %2372 }
 0x305   :  { %v2783_v38 = vsel %vm1131_vm13, %v2747_v36, %v2373_v19  ;;  %v2567_v62 = vpop.permute.xlu0 %2566 }
 0x306   :  { %v2819_v54 = vsel %vm1168_vm14, %v2783_v38, %v2494_v48  ;;  %v2956_v45 = vpop.f32.mrf.mxu1 }
 0x307   :  { %v2855_v29 = vsel %vm1205_vm15, %v2819_v54, %v2567_v62  ;;  %v3037_v59 = vmax.f32 %v2956_v45, 0.0  ;;  %v2116_v62 = vrot.slane %v6535_v21, 1  ;;  %v3632_v54 = vunpack.c.h.b16 %v6507_v11 }
 0x308   :  { %v2884_v20 = vsel %vm1242_vm6, %v2855_v29, 1065369472 }
 0x309   :  { %v3073_v34 = vmul.f32 %v3037_v59, %v5345_v4  ;;  %3531 = vmatmul.msk.bf16.gmra.mxu1 %vm1282_vm7, %v2884_v20  ;;  %v2438_v4 = vsel %vm750_vm4, %v6473_v35, %v7417_v49  ;;  %v2117_v51 = vsel %vm388_vm1, %v6516_v16, %v2116_v62  ;;  %v6695_v42 = vpack.c.b16 %v3632_v54, %v3632_v54 }
 0x30a   :  { %2259 = vrot.lane.b32.xlu2 %v2198_v60, %s3764_s11  ;;  %2138 = vrot.lane.b32.xlu1 %v7416_v22, %s3763_s29 }
 0x30b   :  { %v3108_v48 = vadd.f32 %v3107_v52, %v3073_v34  ;;  %2332 = vrot.lane.b32.xlu0 %v6458_v58, %s3765_s12  ;;  %v6640_v58 = vld [vmem:[%s7023_s0 + $0x140] sm:$0xff]   ;;  %v1852_v34 = vpack.c.b16 %v6519_v32, %v6519_v32  ;;  %v2312_v21 = vrot.slane %v6695_v42, 2 }
 0x30c   :  { %v6626_v17 = vpop.permute.xlu2 %2134  ;;  %v2028_v15 = vpop.permute.xlu1 %2027  ;;  %v7419_v52 = vld [vmem:[#allocation43_spill] sm:$0xff]  ;;  %v3635_v45 = vunpack.c.l.b16 %v6640_v58 }
 0x30d   :  { %v2147_v46 = vpop.permute.xlu0 %2146  ;;  %v2617_v35 = vsel %vm946_vm8, %v3702_v55, %v2028_v15 }
 0x30e   :  { %v2958_v24 = vpop.f32.mrf.mxu1  ;;  %v2653_v29 = vsel %vm983_vm9, %v2617_v35, %v6552_v23  ;;  %v6672_v11 = vpack.c.b16 %v3635_v45, %v3632_v54  ;;  %v2233_v35 = vshrl.u32 %v6695_v42, 16 }
 0x30f   :  { %v3038_v10 = vmax.f32 %v2958_v24, 0.0  ;;  %v2689_v60 = vsel %vm1020_vm10, %v2653_v29, %v2147_v46 }
 0x310   :  { %v2464_v23 = vshrl.u32 %v6672_v11, 16  ;;  %v2467_v20 = vshll.u32 %v6672_v11, 16  ;;  %v2356_v15 = vrot.slane %v6672_v11, 2 }
 0x311   :  { %v3074_v18 = vmul.f32 %v3038_v10, %v5189_v47  ;;  %v1991_v47 = vrot.slane %v6328_v56, 1  ;;  %v2229_v56 = vrot.slane %v2227_v44, 2 }
 0x312   :  { %2499 = vrot.lane.b32.xlu2 %v2438_v4, %s3767_s16  ;;  %2378 = vrot.lane.b32.xlu1 %v7419_v52, %s3766_s13  ;;  %v2466_v10 = vrot.slane %v2464_v23, 2  ;;  %v2469_v49 = vrot.slane %v2467_v20, 3  ;;  %v1997_v4 = vshll.u32 %v1852_v34, 16  ;;  %v2357_v32 = vsel %vm630_vm3, %v6548_v40, %v2356_v15 }
 0x313   :  { %v6645_v36 = vadd.f32 %v3108_v48, %v3074_v18  ;;  %2572 = vrot.lane.b32.xlu0 %v2537_v0, %s3768_s25  ;;  %v1992_v59 = vsel %vm203_vm0, %v1987_v3, %v1991_v47  ;;  %v2230_v53 = vor.u32 %v2229_v56, %v2226_v13  ;;  %v1995_v18 = vor.u32 %v6331_v27, %v1991_v47  ;;  %v3703_v27 = vld [vmem:[%s7023_s0 + $0xdc] sm:$0xff] }
 0x314   :  { %v6656_v19 = vpop.permute.xlu2 %2374  ;;  %v2268_v38 = vpop.permute.xlu1 %2267  ;;  %v1999_v52 = vrot.slane %v1997_v4, 1  ;;  %v2235_v56 = vrot.slane %v2233_v35, 1 }
 0x315   :  { %v2387_v1 = vpop.permute.xlu0 %2386  ;;  %v2725_v44 = vsel %vm1057_vm11, %v2689_v60, %v2268_v38  ;;  %v2231_v24 = vsel %vm508_vm2, %v6522_v2, %v2230_v53  ;;  %v2550_v2 = vrot.slane %v6672_v11, 3  ;;  %v3636_v38 = vunpack.c.h.b16 %v6640_v58 }
 0x316   :  { %v2761_v46 = vsel %vm1094_vm12, %v2725_v44, %v6588_v37  ;;  %v6703_v37 = vor.u32 %v2469_v49, %v2466_v10  ;;  %v2000_v13 = vsel %vm203_vm0, %v1995_v18, %v1999_v52  ;;  %v2118_v60 = vrot.slane %v6695_v42, 1 }
 0x317   :  { %v2797_v0 = vsel %vm1131_vm13, %v2761_v46, %v2387_v1  ;;  %vm3144_vm0 = vcmask 1040384  }
 0x318   :  { %v2833_v55 = vsel %vm1168_vm14, %v2797_v0, %v6610_v57  ;;  %v2551_v57 = vsel %vm872_vm5, %v2548_v25, %v2550_v2  ;;  %v2471_v58 = vsel %vm750_vm4, %v6586_v14, %v6703_v37  ;;  %v2072_v25 = vrot.slane %v1852_v34, 1 }
 0x319   :  { %v2119_v49 = vsel %vm388_vm1, %v2116_v62, %v2118_v60 }
 0x31a   :  { %2106 = vrot.lane.b32.xlu2 %v6532_v43, %s3762_s28  ;;  %2033 = vrot.lane.b32.xlu1 %v1992_v59, %s3761_s27  ;;  %v2355_v59 = vpack.c.b16 %v3636_v38, %v3636_v38  ;;  %v2073_v34 = vsel %vm388_vm1, %v6516_v16, %v2072_v25  ;;  %vm7423_vm1 = vcmask 1041408  }
 0x31b   :  { %2152 = vrot.lane.b32.xlu0 %v2117_v51, %s3763_s29 }
 0x31c   :  { %v6684_v22 = vpop.permute.xlu2 %2029  ;;  %v2016_v48 = vpop.permute.xlu1 %2015  ;;  %v2476_v46 = vshll.u32 %v2355_v59, 16  ;;  %v2358_v18 = vrot.slane %v2355_v59, 2 }
 0x31d   :  { %v2089_v43 = vpop.permute.xlu0 %2088  ;;  %v2605_v47 = vsel %vm946_vm8, %v3703_v27, %v2016_v48  ;;  %v2473_v48 = vshrl.u32 %v2355_v59, 16  ;;  %v7421_v27 = vld [vmem:[#allocation40_spill] sm:$0xff] }
 0x31e   :  { %v2641_v51 = vsel %vm983_vm9, %v2605_v47, %v2089_v43  ;;  %v2359_v38 = vsel %vm630_vm3, %v2356_v15, %v2358_v18  ;;  %v2552_v15 = vrot.slane %v2355_v59, 3 }
 0x31f   :  { %v2677_v44 = vsel %vm1020_vm10, %v2641_v51, %v6626_v17  ;;  %v2475_v4 = vrot.slane %v2473_v48, 2 }
 0x322   :  { %2346 = vrot.lane.b32.xlu2 %v6566_v9, %s3765_s12  ;;  %2273 = vrot.lane.b32.xlu1 %v2231_v24, %s3764_s11  ;;  %v2236_v9 = vshll.u32 %v6695_v42, 16  ;;  %v2313_v42 = vsel %vm630_vm3, %v6548_v40, %v2312_v21  ;;  %vm7424_vm3 = vmmov %vm7423_vm1 }
 0x323   :  { %2392 = vrot.lane.b32.xlu0 %v2357_v32, %s3766_s13  ;;  %v2478_v32 = vrot.slane %v2476_v46, 3  ;;  %v59_v46 = vld [vmem:[%s7025_s2 + $0xd0] sm:$0xff] }
 0x324   :  { %v6706_v6 = vpop.permute.xlu2 %2269  ;;  %v2581_v3 = vpop.permute.xlu1 %2580  ;;  %v2238_v29 = vrot.slane %v2236_v9, 2 }
 0x325   :  { %v2869_v54 = vsel %vm1205_vm15, %v2833_v55, %v2581_v3  ;;  %v2256_v45 = vpop.permute.xlu0 %2255  ;;  %v2479_v3 = vor.u32 %v2478_v32, %v2475_v4  ;;  %v60_v4 = vld [vmem:[%s7025_s2 + $0xd8] sm:$0xff]  ;;  %v62_v32 = vld [vmem:[%s7025_s2 + $0xe8] sm:$0xff] }
 0x326   :  { %v2891_v1 = vsel %vm1242_vm6, %v2869_v54, 1065369472  ;;  %v2239_v20 = vor.u32 %v2238_v29, %v2235_v56  ;;  %v2713_v43 = vsel %vm1057_vm11, %v2677_v44, %v2256_v45  ;;  %v3704_v54 = vld [vmem:[%s7023_s0 + $0x114] sm:$0xff] }
 0x327   :  { %3538 = vmatmul.msk.bf16.gmra.mxu2 %vm1282_vm7, %v2891_v1  ;;  %v2619_v45 = vsel %vm946_vm8, %v3704_v54, %v6684_v22  ;;  %v2480_v1 = vsel %vm750_vm4, %v6703_v37, %v2479_v3  ;;  %v55_v37 = vld [vmem:[%s7025_s2 + $0xb0] sm:$0xff]  ;;  %v56_v29 = vld [vmem:[%s7025_s2 + $0xb8] sm:$0xff] }
 0x328   :  { %v2240_v17 = vsel %vm508_vm2, %v2230_v53, %v2239_v20  ;;  %v58_v20 = vld [vmem:[%s7025_s2 + $0xc8] sm:$0xff]  ;;  %v63_v3 = vld [vmem:[%s7025_s2 + $0xf0] sm:$0xff] }
 0x32a   :  { %2586 = vrot.lane.b32.xlu2 %v2551_v57, %s3768_s25  ;;  %2513 = vrot.lane.b32.xlu1 %v2471_v58, %s3767_s16 }
 0x32b   :  { %2035 = vrot.lane.b32.xlu0 %v2000_v13, %s3761_s27 }
 0x32c   :  { %v6736_v14 = vpop.permute.xlu2 %2017  ;;  %v2329_v23 = vpop.permute.xlu1 %2328 }
 0x32d   :  { %v2496_v24 = vpop.permute.xlu0 %2495  ;;  %v2749_v10 = vsel %vm1094_vm12, %v2713_v43, %v2329_v23 }
 0x32e   :  { %v2785_v0 = vsel %vm1131_vm13, %v2749_v10, %v6656_v19 }
 0x32f   :  { %v2821_v62 = vsel %vm1168_vm14, %v2785_v0, %v2496_v24 }
 0x332   :  { %2154 = vrot.lane.b32.xlu2 %v2119_v49, %s3763_s29  ;;  %2108 = vrot.lane.b32.xlu1 %v2073_v34, %s3762_s28  ;;  %v3705_v49 = vld [vmem:[%s7023_s0 + $0xe4] sm:$0xff] }
 0x333   :  { %2275 = vrot.lane.b32.xlu0 %v2240_v17, %s3764_s11  ;;  %v2607_v34 = vsel %vm946_vm8, %v3705_v49, %v6736_v14  ;;  %v61_v17 = vld [vmem:[%s7025_s2 + $0xe0] sm:$0xff] }
 0x334   :  { %v2583_v52 = vpop.permute.xlu2 %2582  ;;  %v2569_v16 = vpop.permute.xlu1 %2568 }
 0x335   :  { %v2857_v53 = vsel %vm1205_vm15, %v2821_v62, %v2569_v16  ;;  %v2961_v55 = vpop.f32.mrf.mxu1  ;;  %v2103_v35 = vpop.permute.xlu0 %2102  ;;  %v64_v16 = vld [vmem:[%s7025_s2 + $0xf8] sm:$0xff] }
 0x336   :  { %v3039_v9 = vmax.f32 %v2961_v55, 0.0  ;;  %v2885_v19 = vsel %vm1242_vm6, %v2857_v53, 1065369472  ;;  %v2655_v40 = vsel %vm983_vm9, %v2619_v45, %v2103_v35  ;;  %v65_v53 = vld [vmem:[%s7025_s2 + $0x100] sm:$0xff] }
 0x337   :  { %3532 = vmatmul.msk.bf16.gmra.mxu1 %vm1282_vm7, %v2885_v19 }
 0x338   :  { %v3075_v47 = vmul.f32 %v3039_v9, %v7421_v27  ;;  %v67_v27 = vld [vmem:[%s7025_s2 + $0x110] sm:$0xff] }
 0x33a   :  { %v6770_v57 = vadd.f32 %v6645_v36, %v3075_v47  ;;  %2394 = vrot.lane.b32.xlu2 %v2359_v38, %s3766_s13  ;;  %2348 = vrot.lane.b32.xlu1 %v2313_v42, %s3765_s12  ;;  %v2553_v36 = vsel %vm872_vm5, %v2550_v2, %v2552_v15  ;;  %v66_v47 = vld [vmem:[%s7025_s2 + $0x108] sm:$0xff] }
 0x33b   :  { %2515 = vrot.lane.b32.xlu0 %v2480_v1, %s3767_s16  ;;  %v68_v1 = vld [vmem:[%s7025_s2 + $0x118] sm:$0xff] }
 0x33c   :  { %v2331_v58 = vpop.permute.xlu2 %2330  ;;  %v2149_v13 = vpop.permute.xlu1 %2148 }
 0x33d   :  { %v2343_v22 = vpop.permute.xlu0 %2342  ;;  %v2691_v56 = vsel %vm1020_vm10, %v2655_v40, %v2149_v13  ;;  %v3706_v13 = vld [vmem:[%s7023_s0 + $0x11c] sm:$0xff] }
 0x33e   :  { %v2727_v59 = vsel %vm1057_vm11, %v2691_v56, %v6706_v6  ;;  %v57_v6 = vld [vmem:[%s7025_s2 + $0xc0] sm:$0xff] }
 0x33f   :  { %v2763_v51 = vsel %vm1094_vm12, %v2727_v59, %v2343_v22 }
 0x342   :  { %1573 = vperm.xlu2 %3662, %v55_v37   ;;  %2588 = vrot.lane.b32.xlu1 %v2553_v36, %s3768_s25 }
 0x343   :  { %1578 = vperm.xlu0 %3660, %v56_v29  }
 0x344   :  { %v2571_v60 = vpop.permute.xlu2 %2570  ;;  %v2389_v25 = vpop.permute.xlu1 %2388 }
 0x345   :  { %v2799_v44 = vsel %vm1131_vm13, %v2763_v51, %v2389_v25  ;;  %v2510_v11 = vpop.permute.xlu0 %2509 }
 0x346   :  { %v2835_v2 = vsel %vm1168_vm14, %v2799_v44, %v2510_v11 }
 0x347   :  { %v2871_v23 = vsel %vm1205_vm15, %v2835_v2, %v2583_v52 }
 0x348   :  { %v2892_v48 = vsel %vm1242_vm6, %v2871_v23, 1065369472 }
 0x349   :  { %3539 = vmatmul.msk.bf16.gmra.mxu2 %vm1282_vm7, %v2892_v48  ;;  %v3707_v48 = vld [vmem:[%s7023_s0 + $0xec] sm:$0xff] }
 0x34a   :  { %1588 = vperm.xlu2 %3662, %v58_v20   ;;  %1583 = vperm.xlu1 %3661, %v57_v6  }
 0x34b   :  { %1593 = vperm.xlu0 %3660, %v59_v46  }
 0x34c   :  { %v2151_v43 = vpop.permute.xlu2 %2150  ;;  %v2091_v24 = vpop.permute.xlu1 %2090 }
 0x34d   :  { %v2137_v10 = vpop.permute.xlu0 %2136  ;;  %v2643_v0 = vsel %vm983_vm9, %v2607_v34, %v2091_v24 }
 0x34e   :  { %v2679_v14 = vsel %vm1020_vm10, %v2643_v0, %v2137_v10 }
 0x352   :  { %1603 = vperm.xlu2 %3662, %v61_v17   ;;  %1598 = vperm.xlu1 %3661, %v60_v4  }
 0x353   :  { %1608 = vperm.xlu0 %3660, %v62_v32  }
 0x354   :  { %v2391_v18 = vpop.permute.xlu2 %2390  ;;  %v2258_v21 = vpop.permute.xlu1 %2257 }
 0x355   :  { %v2377_v62 = vpop.permute.xlu0 %2376  ;;  %v2715_v52 = vsel %vm1057_vm11, %v2679_v14, %v2258_v21 }
 0x356   :  { %v2751_v55 = vsel %vm1094_vm12, %v2715_v52, %v2331_v58 }
 0x357   :  { %v2787_v35 = vsel %vm1131_vm13, %v2751_v55, %v2377_v62  ;;  %v3708_v55 = vld [vmem:[%s7023_s0 + $0x124] sm:$0xff]  ;;  %s3296_s0 = sshll.u32 %s3773_s20, 4  ;;  %s3297_s0 = int_to_ptr.vmem [resolvable:$true] %s3296_s0 }
 0x35a   :  { %1618 = vperm.xlu2 %3662, %v64_v16   ;;  %1613 = vperm.xlu1 %3661, %v63_v3  }
 0x35b   :  { %1623 = vperm.xlu0 %3660, %v65_v53  }
 0x35c   :  { %v2093_v9 = vpop.permute.xlu2 %2092  ;;  %v2498_v19 = vpop.permute.xlu1 %2497 }
 0x35d   :  { %v2823_v38 = vsel %vm1168_vm14, %v2787_v35, %v2498_v19  ;;  %v2032_v42 = vpop.permute.xlu0 %2031 }
 0x35e   :  { %v2859_v54 = vsel %vm1205_vm15, %v2823_v38, %v2571_v60  ;;  %v2621_v22 = vsel %vm946_vm8, %v3706_v13, %v2032_v42 }
 0x35f   :  { %v2886_v45 = vsel %vm1242_vm6, %v2859_v54, 1065369472 }
 0x360   :  { %3533 = vmatmul.msk.bf16.gmra.mxu1 %vm1282_vm7, %v2886_v45 }
 0x362   :  { %1633 = vperm.xlu2 %3662, %v67_v27   ;;  %1628 = vperm.xlu1 %3661, %v66_v47   ;;  %v1390_v27 = vpop.f32.mrf.mxu3 }
 0x363   :  { %1638 = vperm.xlu0 %3660, %v68_v1   ;;  %v1447_v1 = vmax.f32 %v1390_v27, 0.0 }
 0x364   :  { %v2260_v40 = vpop.permute.xlu2 %2259  ;;  %v2105_v15 = vpop.permute.xlu1 %2104 }
 0x365   :  { %v2272_v58 = vpop.permute.xlu0 %2271  ;;  %v2657_v56 = vsel %vm983_vm9, %v2621_v22, %v2105_v15 }
 0x366   :  { %v2693_v29 = vsel %vm1020_vm10, %v2657_v56, %v2151_v43 }
 0x367   :  { %v2729_v51 = vsel %vm1057_vm11, %v2693_v29, %v2272_v58 }
 0x36c   :  { %v2500_v37 = vpop.permute.xlu2 %2499  ;;  %v2345_v36 = vpop.permute.xlu1 %2344 }
 0x36d   :  { %v2020_v59 = vpop.permute.xlu0 %2019  ;;  %v2765_v60 = vsel %vm1094_vm12, %v2729_v51, %v2345_v36 }
 0x36e   :  { %v2801_v11 = vsel %vm1131_vm13, %v2765_v60, %v2391_v18  ;;  %v2609_v46 = vsel %vm946_vm8, %v3707_v48, %v2020_v59 }
 0x36f   :  { %v2645_v10 = vsel %vm983_vm9, %v2609_v46, %v2093_v9 }
 0x374   :  { %v2107_v25 = vpop.permute.xlu2 %2106  ;;  %v2512_v44 = vpop.permute.xlu1 %2511 }
 0x375   :  { %v2837_v2 = vsel %vm1168_vm14, %v2801_v11, %v2512_v44  ;;  %v2585_v23 = vpop.permute.xlu0 %2584 }
 0x376   :  { %v2873_v20 = vsel %vm1205_vm15, %v2837_v2, %v2585_v23 }
 0x377   :  { %v2893_v6 = vsel %vm1242_vm6, %v2873_v20, 1065369472  ;;  %v1392_v20 = vpop.f32.mrf.mxu3 }
 0x378   :  { %3540 = vmatmul.msk.bf16.gmra.mxu2 %vm1282_vm7, %v2893_v6  ;;  %v1448_v48 = vmax.f32 %v1392_v20, 0.0 }
 0x37c   :  { %v2347_v43 = vpop.permute.xlu2 %2346  ;;  %v2139_v24 = vpop.permute.xlu1 %2138 }
 0x37d   :  { %v2333_v49 = vpop.permute.xlu0 %2332  ;;  %v2681_v34 = vsel %vm1020_vm10, %v2645_v10, %v2139_v24  ;;  %v2963_v10 = vpop.f32.mrf.mxu1 }
 0x37e   :  { %v2717_v17 = vsel %vm1057_vm11, %v2681_v34, %v2260_v40 }
 0x37f   :  { %v2753_v4 = vsel %vm1094_vm12, %v2717_v17, %v2333_v49  ;;  %v1395_v17 = vpop.f32.mrf.mxu3 }
 0x384   :  { %v2587_v32 = vpop.permute.xlu2 %2586  ;;  %v2379_v0 = vpop.permute.xlu1 %2378 }
 0x385   :  { %v2789_v18 = vsel %vm1131_vm13, %v2753_v4, %v2379_v0  ;;  %v2573_v21 = vpop.permute.xlu0 %2572  ;;  %v6902_v0 = vpop.f32.mrf.mxu2 }
 0x386   :  { %v2825_v14 = vsel %vm1168_vm14, %v2789_v18, %v2500_v37 }
 0x387   :  { %v2861_v62 = vsel %vm1205_vm15, %v2825_v14, %v2573_v21  ;;  %v2966_v14 = vpop.f32.mrf.mxu1 }
 0x388   :  { %v2887_v52 = vsel %vm1242_vm6, %v2861_v62, 1065369472 }
 0x389   :  { %3534 = vmatmul.msk.bf16.gmra.mxu1 %vm1282_vm7, %v2887_v52 }
 0x38c   :  { %v2155_v16 = vpop.permute.xlu2 %2154  ;;  %v2034_v3 = vpop.permute.xlu1 %2033 }
 0x38d   :  { %v2153_v53 = vpop.permute.xlu0 %2152  ;;  %v2623_v35 = vsel %vm946_vm8, %v3708_v55, %v2034_v3  ;;  %v6909_v52 = vpop.f32.mrf.mxu2  ;;  %v3618_v55 = vld [vmem:[%s7026_s3 + $0x28] sm:$0xff] }
 0x38e   :  { %v2659_v9 = vsel %vm983_vm9, %v2623_v35, %v2107_v25 }
 0x38f   :  { %v2695_v42 = vsel %vm1020_vm10, %v2659_v9, %v2153_v53  ;;  %v2968_v3 = vpop.f32.mrf.mxu1  ;;  %v3619_v53 = vld [vmem:[%s7026_s3 + $0x30] sm:$0xff]  ;;  %v6922_v9 = vpop.f32.mrf.mxu3 }
 0x394   :  { %v2395_v19 = vpop.permute.xlu2 %2394  ;;  %v2274_v38 = vpop.permute.xlu1 %2273 }
 0x395   :  { %v2393_v54 = vpop.permute.xlu0 %2392  ;;  %v2731_v45 = vsel %vm1057_vm11, %v2695_v42, %v2274_v38  ;;  %v6920_v35 = vpop.f32.mrf.mxu2 }
 0x396   :  { %v2767_v47 = vsel %vm1094_vm12, %v2731_v45, %v2347_v43 }
 0x397   :  { %v2803_v40 = vsel %vm1131_vm13, %v2767_v47, %v2393_v54  ;;  %v6926_v42 = vpop.f32.mrf.mxu3 }
 0x39c   :  { %v6880_v15 = vpop.permute.xlu2 %1573  ;;  %v2514_v58 = vpop.permute.xlu1 %2513 }
 0x39d   :  { %v1663_v13 = vmul.f32 %v6880_v15, %v1447_v1  ;;  %v2839_v22 = vsel %vm1168_vm14, %v2803_v40, %v2514_v58  ;;  %v2036_v56 = vpop.permute.xlu0 %2035  ;;  %v6924_v38 = vpop.f32.mrf.mxu2  ;;  %v3617_v40 = vld [vmem:[%s7026_s3 + $0x20] sm:$0xff] }
 0x39e   :  { %v2875_v37 = vsel %vm1205_vm15, %v2839_v22, %v2587_v32  ;;  %v2625_v59 = vsel %vm946_vm8, %v6313_v12, %v2036_v56  ;;  %v1449_v32 = vmax.f32 %v1395_v17, 0.0 }
 0x39f   :  { %v1698_v36 = vadd.f32 %v6526_v39, %v1663_v13  ;;  %v2894_v29 = vsel %vm1242_vm6, %v2875_v37, 1065369472  ;;  %v6930_v47 = vpop.f32.mrf.mxu3  ;;  %v3040_v37 = vmax.f32 %v2963_v10, 0.0 }
 0x3a0   :  { %3541 = vmatmul.msk.bf16.gmra.mxu2 %vm1282_vm7, %v2894_v29  ;;  %v3041_v29 = vmax.f32 %v2966_v14, 0.0 }
 0x3a4   :  { %v2109_v51 = vpop.permute.xlu1 %2108 }
 0x3a5   :  { %v2276_v60 = vpop.permute.xlu0 %2275  ;;  %v2661_v25 = vsel %vm983_vm9, %v2625_v59, %v2109_v51  ;;  %v6928_v45 = vpop.f32.mrf.mxu2  ;;  %v3076_v59 = vmul.f32 %v3040_v37, %v5417_v41  ;;  %v3042_v51 = vmax.f32 %v2968_v3, 0.0 }
 0x3a6   :  { %v2697_v44 = vsel %vm1020_vm10, %v2661_v25, %v2155_v16  ;;  %v3620_v16 = vld [vmem:[%s7026_s3 + $0x38] sm:$0xff] }
 0x3a7   :  { %v2733_v2 = vsel %vm1057_vm11, %v2697_v44, %v2276_v60  ;;  %3216 = vmatpush.bf16.msrb.mxu2 %v3620_v16  ;;  %v6937_v13 = vpop.f32.mrf.mxu3  ;;  %v7422_v25 = vld [vmem:[#allocation23_spill] sm:$0xff]  ;;  %v3078_v20 = vmul.f32 %v3042_v51, %v7390_v26  ;;  %v1589_v51 = vpop.permute.xlu2 %1588 }
 0x3a8   :  { %v3077_v44 = vmul.f32 %v3041_v29, %v7422_v25  ;;  %v1450_v25 = vmax.f32 %v6922_v9, 0.0 }
 0x3ab   :  { %3217 = vmatpush.bf16.msrb.mxu2 %v3619_v53 }
 0x3ac   :  { %v2349_v11 = vpop.permute.xlu1 %2348 }
 0x3ad   :  { %v2516_v23 = vpop.permute.xlu0 %2515  ;;  %v2769_v39 = vsel %vm1094_vm12, %v2733_v2, %v2349_v11  ;;  %v6932_v1 = vpop.f32.mrf.mxu2 }
 0x3ae   :  { %v2805_v6 = vsel %vm1131_vm13, %v2769_v39, %v2395_v19  ;;  %v2971_v19 = vpop.f32.mrf.mxu1 }
 0x3af   :  { %v2841_v46 = vsel %vm1168_vm14, %v2805_v6, %v2516_v23  ;;  %3218 = vmatpush.bf16.msrb.mxu2 %v3618_v55  ;;  %v3043_v11 = vmax.f32 %v2971_v19, 0.0  ;;  %v3111_v23 = vadd.f32 %v6770_v57, %v3076_v59  ;;  %v3616_v6 = vld [vmem:[%s7026_s3 + $0x18] sm:$0xff] }
 0x3b3   :  { %3219 = vmatpush.bf16.msrb.mxu2 %v3617_v40  ;;  %v3051_v40 = vmax.f32 %v6902_v0, 0.0 }
 0x3b4   :  { %v2589_v43 = vpop.permute.xlu1 %2588 }
 0x3b5   :  { %v2877_v12 = vsel %vm1205_vm15, %v2841_v46, %v2589_v43  ;;  %v6897_v24 = vpop.permute.xlu0 %1578  ;;  %v6939_v22 = vpop.f32.mrf.mxu2  ;;  %v3079_v46 = vmul.f32 %v3043_v11, %v7391_v50  ;;  %v3087_v29 = vmul.f32 %v3051_v40, %v7408_v7  ;;  %v1451_v7 = vmax.f32 %v6926_v42, 0.0 }
 0x3b6   :  { %v1664_v49 = vmul.f32 %v6897_v24, %v1448_v48  ;;  %v2895_v34 = vsel %vm1242_vm6, %v2877_v12, 1065369472  ;;  %v2973_v54 = vpop.f32.mrf.mxu1  ;;  %v3112_v48 = vadd.f32 %v3111_v23, %v3077_v44  ;;  %v3053_v44 = vmax.f32 %v6920_v35, 0.0 }
 0x3b7   :  { %3542 = vmatmul.msk.bf16.gmra.mxu2 %vm1282_vm7, %v2895_v34  ;;  %v3044_v39 = vmax.f32 %v2973_v54, 0.0  ;;  %v1453_v42 = vmax.f32 %v6937_v13, 0.0 }
 0x3b8   :  { %v1699_v4 = vadd.f32 %v1698_v36, %v1664_v49  ;;  %v6941_v36 = vpop.f32.mrf.mxu3  ;;  %3220 = vmatpush.bf16.msrb.mxu2 %v3616_v6  ;;  %v3113_v12 = vadd.f32 %v3112_v48, %v3078_v20  ;;  %v3089_v20 = vmul.f32 %v3053_v44, %v6880_v15  ;;  %v1452_v6 = vmax.f32 %v6930_v47, 0.0 }
 0x3b9   :  { %v3080_v10 = vmul.f32 %v3044_v39, %v7396_v33  ;;  %v3056_v47 = vmax.f32 %v6932_v1, 0.0 }
 0x3ba   :  { %v3114_v57 = vadd.f32 %v3113_v12, %v3079_v46 }
 0x3bc   :  { %v6904_v18 = vpop.permute.xlu1 %1583 }
 0x3bd   :  { %v1665_v21 = vmul.f32 %v6904_v18, %v1449_v32  ;;  %v6944_v60 = vpop.f32.mrf.mxu2  ;;  %v3115_v32 = vadd.f32 %v3114_v57, %v3080_v10  ;;  %v1594_v48 = vpop.permute.xlu0 %1593 }
 0x3be   :  { %v2976_v27 = vpop.f32.mrf.mxu1  ;;  %v3058_v1 = vmax.f32 %v6944_v60, 0.0 }
 0x3bf   :  { %v6907_v62 = vadd.f32 %v1699_v4, %v1665_v21  ;;  %v3045_v41 = vmax.f32 %v2976_v27, 0.0 }
 0x3c0   :  { %v6953_v43 = vpop.f32.mrf.mxu3 }
 0x3c1   :  { %v3081_v26 = vmul.f32 %v3045_v41, %v7397_v31  ;;  %v3615_v31 = vld [vmem:[%s7026_s3 + $0x10] sm:$0xff] }
 0x3c2   :  { %3221 = vmatpush.bf16.msrb.mxu2 %v3615_v31 }
 0x3c3   :  { %v3116_v50 = vadd.f32 %v3115_v32, %v3081_v26  ;;  %v1604_v26 = vpop.permute.xlu2 %1603  ;;  %v3092_v32 = vmul.f32 %v3056_v47, %v1589_v51 }
 0x3c4   :  { %v1599_v9 = vpop.permute.xlu1 %1598 }
 0x3c5   :  { %v1668_v10 = vmul.f32 %v1599_v9, %v1452_v6 }
 0x3c6   :  { %v2978_v58 = vpop.f32.mrf.mxu1 }
 0x3c7   :  { %v3046_v49 = vmax.f32 %v2978_v58, 0.0 }
 0x3c8   :  { %v6962_v33 = vpop.f32.mrf.mxu3 }
 0x3c9   :  { %v3082_v21 = vmul.f32 %v3046_v49, %v7398_v8  ;;  %v1456_v40 = vmax.f32 %v6962_v33, 0.0 }
 0x3cb   :  { %v3117_v53 = vadd.f32 %v3116_v50, %v3082_v21  ;;  %v1609_v21 = vpop.permute.xlu0 %1608  ;;  %v3057_v50 = vmax.f32 %v6939_v22, 0.0  ;;  %v1619_v31 = vpop.permute.xlu2 %1618 }
 0x3cc   :  { %v6956_v34 = vpop.f32.mrf.mxu2 }
 0x3d4   :  { %v6968_v27 = vpop.f32.mrf.mxu2 }
 0x3d5   :  { %v3060_v60 = vmax.f32 %v6968_v27, 0.0 }
 0x3d7   :  { %v3096_v33 = vmul.f32 %v3060_v60, %v1609_v21 }
 0x3dd   :  { %v2981_v56 = vpop.f32.mrf.mxu1 }
 0x3de   :  { %v3047_v17 = vmax.f32 %v2981_v56, 0.0  ;;  %v3052_v56 = vmax.f32 %v6909_v52, 0.0  ;;  %v3054_v52 = vmax.f32 %v6924_v38, 0.0  ;;  %v1667_v38 = vmul.f32 %v1594_v48, %v1451_v7 }
 0x3e0   :  { %v3083_v16 = vmul.f32 %v3047_v17, %v7400_v63  ;;  %v3088_v0 = vmul.f32 %v3052_v56, %v7409_v5  ;;  %v3055_v5 = vmax.f32 %v6928_v45, 0.0  ;;  %v3090_v35 = vmul.f32 %v3054_v52, %v6897_v24 }
 0x3e1   :  { %v1669_v24 = vmul.f32 %v1604_v26, %v1453_v42 }
 0x3e2   :  { %v3118_v19 = vadd.f32 %v3117_v53, %v3083_v16  ;;  %v3091_v12 = vmul.f32 %v3055_v5, %v6904_v18  ;;  %v1455_v18 = vmax.f32 %v6953_v43, 0.0  ;;  %v3093_v53 = vmul.f32 %v3057_v50, %v1594_v48 }
 0x3e5   :  { %v2983_v2 = vpop.f32.mrf.mxu1 }
 0x3e6   :  { %v3048_v14 = vmax.f32 %v2983_v2, 0.0  ;;  %v1415_v2 = vpop.f32.mrf.mxu3 }
 0x3e7   :  { %v1457_v56 = vmax.f32 %v1415_v2, 0.0  ;;  %v3613_v2 = vld [vmem:[%s7026_s3] sm:$0xff] }
 0x3e8   :  { %v3084_v55 = vmul.f32 %v3048_v14, %v7403_v30  ;;  %v3614_v30 = vld [vmem:[%s7026_s3 + $0x8] sm:$0xff]  ;;  %v1614_v14 = vpop.permute.xlu1 %1613  ;;  %s3772_s3 = smov [#allocation2]  }
 0x3e9   :  { %3222 = vmatpush.bf16.msrb.mxu2 %v3614_v30  ;;  %v1671_v13 = vmul.f32 %v1614_v14, %v1455_v18  ;;  %v1672_v30 = vmul.f32 %v1619_v31, %v1456_v40  ;;  %s3283_s14 = sshll.u32 %s3772_s3, 4  ;;  %s3284_s14 = int_to_ptr.vmem [resolvable:$true] %s3283_s14 }
 0x3ea   :  { %v3119_v58 = vadd.f32 %v3118_v19, %v3084_v55 }
 0x3ed   :  { %3223 = vmatpush.bf16.msrb.mxu2 %v3613_v2 }
 0x3fb   :  { %v6980_v23 = vpop.f32.mrf.mxu2 }
 0x3fc   :  { %v3061_v52 = vmax.f32 %v6980_v23, 0.0 }
 0x403   :  { %v3018_v45 = vpop.f32.mrf.mxu2 }
 0x404   :  { %v3062_v27 = vmax.f32 %v3018_v45, 0.0 }
 0x406   :  { %v2986_v4 = vpop.f32.mrf.mxu1  ;;  %v3098_v23 = vmul.f32 %v3062_v27, %v1619_v31 }
 0x407   :  { %v3049_v3 = vmax.f32 %v2986_v4, 0.0  ;;  %v1417_v4 = vpop.f32.mrf.mxu3 }
 0x409   :  { %v3085_v54 = vmul.f32 %v3049_v3, %v7405_v61 }
 0x40b   :  { %v3120_v37 = vadd.f32 %v3119_v58, %v3085_v54 }
 0x40e   :  { %v2988_v8 = vpop.f32.mrf.mxu1 }
 0x40f   :  { %v3050_v63 = vmax.f32 %v2988_v8, 0.0  ;;  %v1420_v43 = vpop.f32.mrf.mxu3 }
 0x411   :  { %v3086_v61 = vmul.f32 %v3050_v63, %v7407_v28  ;;  %v1666_v28 = vmul.f32 %v1589_v51, %v1450_v25  ;;  %v3059_v63 = vmax.f32 %v6956_v34, 0.0 }
 0x413   :  { %v3121_v59 = vadd.f32 %v3120_v37, %v3086_v61  ;;  %v1701_v46 = vadd.f32 %v6907_v62, %v1666_v28  ;;  %v1454_v62 = vmax.f32 %v6941_v36, 0.0  ;;  %v3094_v36 = vmul.f32 %v3058_v1, %v1599_v9  ;;  %v1624_v37 = vpop.permute.xlu0 %1623  ;;  %v1629_v61 = vpop.permute.xlu1 %1628 }
 0x414   :  { %v1673_v25 = vmul.f32 %v1624_v37, %v1457_v56  ;;  %v1459_v28 = vmax.f32 %v1420_v43, 0.0  ;;  %v3097_v9 = vmul.f32 %v3061_v52, %v1614_v14 }
 0x415   :  { %v3122_v11 = vadd.f32 %v3121_v59, %v3087_v29  ;;  %v1702_v49 = vadd.f32 %v1701_v46, %v1667_v38  ;;  %v1670_v55 = vmul.f32 %v1609_v21, %v1454_v62  ;;  %v1458_v29 = vmax.f32 %v1417_v4, 0.0 }
 0x416   :  { %v3095_v59 = vmul.f32 %v3059_v63, %v1604_v26 }
 0x417   :  { %v3123_v39 = vadd.f32 %v3122_v11, %v3088_v0  ;;  %v1703_v17 = vadd.f32 %v1702_v49, %v1668_v10  ;;  %v1674_v0 = vmul.f32 %v1629_v61, %v1458_v29  ;;  %v1422_v6 = vpop.f32.mrf.mxu3 }
 0x419   :  { %v3124_v41 = vadd.f32 %v3123_v39, %v3089_v20  ;;  %v1704_v16 = vadd.f32 %v1703_v17, %v1669_v24  ;;  %v1634_v20 = vpop.permute.xlu2 %1633 }
 0x41a   :  { %v1675_v48 = vmul.f32 %v1634_v20, %v1459_v28 }
 0x41b   :  { %v3125_v15 = vadd.f32 %v3124_v41, %v3090_v35  ;;  %v1705_v19 = vadd.f32 %v1704_v16, %v1670_v55  ;;  %v1639_v5 = vpop.permute.xlu0 %1638  ;;  %v1460_v35 = vmax.f32 %v1422_v6, 0.0 }
 0x41d   :  { %v3126_v57 = vadd.f32 %v3125_v15, %v3091_v12  ;;  %v1706_v58 = vadd.f32 %v1705_v19, %v1671_v13  ;;  %v1676_v12 = vmul.f32 %v1639_v5, %v1460_v35 }
 0x41f   :  { %v3127_v3 = vadd.f32 %v3126_v57, %v3092_v32  ;;  %v1707_v51 = vadd.f32 %v1706_v58, %v1672_v30 }
 0x421   :  { %v3128_v54 = vadd.f32 %v3127_v3, %v3093_v53  ;;  %v1708_v11 = vadd.f32 %v1707_v51, %v1673_v25  ;;  %v3771_v3 = vmov 2.0  }
 0x422   :  { %3666 = vrcp.f32 %v3771_v3 }
 0x423   :  { %v3021_v8 = vpop.f32.mrf.mxu2  ;;  %v3129_v22 = vadd.f32 %v3128_v54, %v3094_v36  ;;  %v1709_v39 = vadd.f32 %v1708_v11, %v1674_v0 }
 0x424   :  { %v3063_v38 = vmax.f32 %v3021_v8, 0.0 }
 0x425   :  { %v3130_v44 = vadd.f32 %v3129_v22, %v3095_v59  ;;  %v1710_v46 = vadd.f32 %v1709_v39, %v1675_v48 }
 0x426   :  { %v3099_v26 = vmul.f32 %v3063_v38, %v1624_v37 }
 0x427   :  { %v3131_v7 = vadd.f32 %v3130_v44, %v3096_v33  ;;  %v1711_v15 = vadd.f32 %v1710_v46, %v1676_v12  ;;  %v3664_v12 = vld [vmem:[%s7028_s5] ss:$0 sm:$0xff] }
 0x428   :  { %v3667_v1 = vpop.eup %3666 }
 0x429   :  { %v3132_v41 = vadd.f32 %v3131_v7, %v3097_v9  ;;  %v1712_v47 = vrot.slane %v1711_v15, 4  ;;  %v3238_v8 = vmul.f32 2.0, %v3667_v1  ;;  %vm3242_vm2 = vweird.f32 %v3667_v1 }
 0x42b   :  { %v3023_v34 = vpop.f32.mrf.mxu2  ;;  %v3133_v49 = vadd.f32 %v3132_v41, %v3098_v23  ;;  %v1713_v45 = vadd.f32 %v1712_v47, %v1711_v15  ;;  %v3239_v63 = vsub.f32 1.0, %v3238_v8 }
 0x42c   :  { %v3064_v57 = vmax.f32 %v3023_v34, 0.0 }
 0x42d   :  { %v3134_v17 = vadd.f32 %v3133_v49, %v3099_v26  ;;  %v1714_v50 = vrot.slane %v1713_v45, 2  ;;  %v3240_v37 = vmul.f32 %v3667_v1, %v3239_v63 }
 0x42e   :  { %v3100_v4 = vmul.f32 %v3064_v57, %v1629_v61  ;;  %v3663_v57 = vld [vmem:[%s7027_s4] ss:$0 sm:$0xff] }
 0x42f   :  { %v1715_v55 = vadd.f32 %v1714_v50, %v1713_v45  ;;  %v3241_v59 = vadd.f32 %v3667_v1, %v3240_v37 }
 0x430   :  { %v3135_v62 = vadd.f32 %v3134_v17, %v3100_v4 }
 0x431   :  { %v1716_v54 = vrot.slane %v1715_v55, 1  ;;  %v3243_v25 = vsel %vm3242_vm2, %v3667_v1, %v3241_v59 }
 0x433   :  { %v1717_v36 = vadd.f32 %v1716_v54, %v1715_v55 }
 0x43a   :  { %v3026_v10 = vpop.f32.mrf.mxu2 }
 0x43b   :  { %v3065_v42 = vmax.f32 %v3026_v10, 0.0  ;;  %v3665_v10 = vld [vmem:[%s7029_s6] ss:$0 sm:$0xff] }
 0x43d   :  { %v3101_v32 = vmul.f32 %v3065_v42, %v1634_v20 }
 0x43f   :  { %v3136_v14 = vadd.f32 %v3135_v62, %v3101_v32 }
 0x442   :  { %v3028_v24 = vpop.f32.mrf.mxu2 }
 0x443   :  { %v3066_v21 = vmax.f32 %v3028_v24, 0.0 }
 0x445   :  { %v3102_v18 = vmul.f32 %v3066_v21, %v1639_v5 }
 0x447   :  { %v3137_v16 = vadd.f32 %v3136_v14, %v3102_v18 }
 0x449   :  { %v3138_v53 = vrot.slane %v3137_v16, 4 }
 0x44b   :  { %v3139_v13 = vadd.f32 %v3138_v53, %v3137_v16 }
 0x44d   :  { %v3140_v19 = vrot.slane %v3139_v13, 2 }
 0x44f   :  { %v3141_v31 = vadd.f32 %v3140_v19, %v3139_v13 }
 0x451   :  { %v3142_v40 = vrot.slane %v3141_v31, 1 }
 0x453   :  { %v3143_v58 = vadd.f32 %v3142_v40, %v3141_v31 }
 0x455   :  { %v3145_v43 = vsel %vm3144_vm0, %v1717_v36, %v3143_v58 }
 0x456   :  { %v3147_v30 = vpack.c.bf16 %v3145_v43, %v3145_v43  ;;  %v3230_v22 = vsel %vm7423_vm1, %v3145_v43, 0.0  ;;  %3146 = vst [vmem:[#allocation2] sm:$0x3] %v3145_v43 }
 0x457   :  { %v3231_v56 = vrot.slane %v3230_v22, 4  ;;  %3288 = dma.vmem_to_hbm [thread:$0]  %s3284_s14, 32, %s3286_s17, [#allocation3]  }
 0x458   :  { %3224 = vmatmul.bf16.vlgmr.msrb.gmra.mxu2 %v3147_v30 }
 0x459   :  { %v3232_v61 = vadd.f32 %v3231_v56, %v3230_v22 }
 0x45b   :  { %v3233_v29 = vrot.slane %v3232_v61, 2 }
 0x45d   :  { %v3234_v51 = vadd.f32 %v3233_v29, %v3232_v61 }
 0x45f   :  { %v3235_v60 = vrot.slane %v3234_v51, 1 }
 0x461   :  { %v3236_v0 = vadd.f32 %v3235_v60, %v3234_v51 }
 0x463   :  { %v3244_v44 = vmul.f32 %v3243_v25, %v3236_v0 }
 0x465   :  { %v3245_v11 = vsub.f32 %v3145_v43, %v3244_v44 }
 0x467   :  { %v3246_v33 = vmul.f32 %v3245_v11, %v3245_v11 }
 0x469   :  { %v3247_v52 = vsel %vm7424_vm3, %v3246_v33, 0.0 }
 0x46a   :  { %v3248_v20 = vrot.slane %v3247_v52, 4 }
 0x46c   :  { %v3249_v34 = vadd.f32 %v3248_v20, %v3247_v52 }
 0x46e   :  { %v3250_v28 = vrot.slane %v3249_v34, 2 }
 0x470   :  { %v3251_v39 = vadd.f32 %v3250_v28, %v3249_v34 }
 0x472   :  { %v3252_v7 = vrot.slane %v3251_v39, 1 }
 0x474   :  { %v3253_v2 = vadd.f32 %v3252_v7, %v3251_v39 }
 0x476   :  { %v3254_v6 = vmul.f32 %v3253_v2, %v3243_v25 }
 0x478   :  { %v3255_v48 = vadd.f32 1e-05, %v3254_v6 }
 0x47a   :  { %3668 = vrsqrt.f32 %v3255_v48  ;;  %vm3262_vm5 = vweird.f32 %v3255_v48 }
 0x480   :  { %v3669_v9 = vpop.eup %3668 }
 0x481   :  { %v3257_v27 = vmul.f32 %v3669_v9, %v3255_v48  ;;  %vm3263_vm4 = vweird.f32 %v3669_v9 }
 0x482   :  { %vm3264_vm6 = vmor %vm3262_vm5, %vm3263_vm4 }
 0x483   :  { %v3258_v5 = vmul.f32 %v3669_v9, %v3257_v27 }
 0x485   :  { %v3259_v35 = vmul.f32 0.5, %v3258_v5 }
 0x487   :  { %v3260_v46 = vsub.f32 1.5, %v3259_v35 }
 0x489   :  { %v3261_v41 = vmul.f32 %v3669_v9, %v3260_v46 }
 0x48b   :  { %v3265_v23 = vsel %vm3264_vm6, %v3669_v9, %v3261_v41 }
 0x48c   :  { %v3266_v38 = vmul.f32 %v3265_v23, %v3245_v11 }
 0x48e   :  { %v3271_v15 = vmul.f32 %v3664_v12, %v3266_v38 }
 0x490   :  { %v3276_v49 = vadd.f32 %v3665_v10, %v3271_v15 }
 0x492   :  { %3277 = vst [vmem:[#allocation4] sm:$0x3] %v3276_v49 }
 0x493   :  { %3301 = dma.vmem_to_hbm [thread:$0]  %s3297_s0, 32, %s3299_s23, [#allocation5]  }
 0x4db   :  { %v3225_v26 = vpop.f32.mrf.mxu2 }
 0x4dc   :  { %v3226_v42 = vadd.f32 %v3663_v57, %v3225_v26 }
 0x4de   :  { %3229 = vst [vmem:[%s7031_s8] sm:$0x3] %v3226_v42 }
 0x4e3   :  { %v3227_v47 = vpop.f32.mrf.mxu2 }
 0x4e4   :  { %3757 = dma.done.wait [#allocation3], 32  }
 0x4e5   :  { %3758 = vsyncadd [#allocation3], 4294967264 }
 0x4e6   :  { %3759 = dma.done.wait [#allocation5], 32  }
 0x4e7   :  { %3760 = vsyncadd [#allocation5], 4294967264 }
 0x4e8   :  { %3312 = vsyncpa [#allocation3], 1 }
 0x4e9   :  { %3313 = vsyncpa [#allocation5], 1 }

</bundles_post_ra>
